<compile_context>
chip_gen: v7x
topology: tpu7x:2x2x1
jax: 0.10.0
libtpu: 0.0.40
codegen_flags: <defaults>
</compile_context>

<pallas_src>
import math
import functools

import jax
import jax.numpy as jnp
from jax import lax
from jax.experimental import pallas as pl
from jax.experimental.pallas import tpu as pltpu


_NS_COEFFS = ((4.0848, -6.8946, 2.927),
              (3.9505, -6.3029, 2.6377),
              (3.7418, -5.5913, 2.3037),
              (2.8769, -3.1427, 1.2046),
              (2.8366, -3.0525, 1.2012))


# ----------------------------- HW-aware knobs -------------------------------

def _vmem_bytes():
    try:
        return int(pltpu.get_tpu_info().vmem_capacity_bytes)
    except Exception:
        return 64 * 1024 * 1024          # conservative (v7x-sized) fallback


def _vmem_limit():
    return min(_vmem_bytes() * 3 // 4, 100 * 1024 * 1024)


def _pick_tile(extent, candidates):
    """Largest candidate tile that divides `extent`; else one full-extent block."""
    for c in candidates:
        if extent % c == 0:
            return c
    return extent


# --------------------------- tiled matmul kernel ----------------------------

def _matmul_kernel(x_ref, w_ref, o_ref, acc_ref):
    @pl.when(pl.program_id(2) == 0)
    def _():
        acc_ref[...] = jnp.zeros_like(acc_ref)

    acc_ref[...] += jnp.dot(x_ref[...], w_ref[...],
                            preferred_element_type=jnp.float32)

    @pl.when(pl.program_id(2) == pl.num_programs(2) - 1)
    def _():
        o_ref[...] = acc_ref[...].astype(o_ref.dtype)


def matmul(x, w, *, out_dtype=jnp.float32):
    """out = x @ w with x:[M,K], w:[K,N] (weights pre-transposed in wrapper)."""
    M, K = x.shape
    N = w.shape[1]
    big = _vmem_bytes() >= 100 * 1024 * 1024          # v5e/v6e: 128 MiB VMEM
    tm = _pick_tile(M, (512, 256, 128) if big else (256, 128))
    tn = _pick_tile(N, (1024, 512, 256, 128) if big else (512, 256, 128))
    tk = _pick_tile(K, (1024, 512, 256) if big else (512, 256))
    grid = (M // tm, N // tn, K // tk)
    return pl.pallas_call(
        _matmul_kernel,
        out_shape=jax.ShapeDtypeStruct((M, N), out_dtype),
        grid=grid,
        in_specs=[pl.BlockSpec((tm, tk), lambda i, j, k: (i, k)),
                  pl.BlockSpec((tk, tn), lambda i, j, k: (k, j))],
        out_specs=pl.BlockSpec((tm, tn), lambda i, j, k: (i, j)),
        scratch_shapes=[pltpu.VMEM((tm, tn), jnp.float32)],
        compiler_params=pltpu.CompilerParams(
            dimension_semantics=("parallel", "parallel", "arbitrary"),
            vmem_limit_bytes=_vmem_limit()),
    )(x, w)


# ------------------------- batched Newton-Schulz ----------------------------

def _ns5_batched(grad):
    """Batched Muon orthogonalization: 5 Newton-Schulz iterations over [n,r,c].

    Per-matrix Frobenius normalization; only MXU inputs are bf16 (element-wise
    math stays f32 -> friendly to v5e's VPU).  Tall matrices (r > c) use the
    right-multiplication form so no transpose is ever materialized."""
    f32, bf16 = jnp.float32, jnp.bfloat16
    _, r, c = grad.shape
    tall = r > c
    X = grad.astype(f32)
    ss = jnp.sum(jnp.sum(X * X, axis=2, keepdims=True), axis=1, keepdims=True)
    X = X / (jnp.sqrt(ss) + 1e-7)
    bmm_nt = (((2,), (2,)), ((0,), (0,)))   # [n,r,c] x [n,r,c] -> [n,r,r]
    bmm_tn = (((1,), (1,)), ((0,), (0,)))   # [n,r,c] x [n,r,c] -> [n,c,c]
    bmm_nn = (((2,), (1,)), ((0,), (0,)))   # [n,a,b] x [n,b,d] -> [n,a,d]
    for a, b, c3 in _NS_COEFFS:
        Xb = X.astype(bf16)
        if tall:
            A = lax.dot_general(Xb, Xb, bmm_tn, preferred_element_type=f32)
            A2 = lax.dot_general(A.astype(bf16), A.astype(bf16), bmm_nn,
                                 preferred_element_type=f32)
            Bm = (b * A + c3 * A2).astype(bf16)
            X = a * X + lax.dot_general(Xb, Bm, bmm_nn, preferred_element_type=f32)
        else:
            A = lax.dot_general(Xb, Xb, bmm_nt, preferred_element_type=f32)
            A2 = lax.dot_general(A.astype(bf16), A.astype(bf16), bmm_nn,
                                 preferred_element_type=f32)
            Bm = (b * A + c3 * A2).astype(bf16)
            X = a * X + lax.dot_general(Bm, Xb, bmm_nn, preferred_element_type=f32)
    return X


# ------------------------------ LaCT kernel ---------------------------------

def _lact_kernel(qkv_ref, lr_ref, cw_ref, w0_ref, w2_ref, w1t_ref,
                 mask_ref, sel_ref, g_ref, o_ref, *,
                 hg, hd, dh, K, base_lr_inv):
    """One (batch, head-group) step: conv+SiLU, lr, qk-norm, fast-weight TTT
    update with batched Muon, query forward, per-head RMSNorm."""
    f32, bf16 = jnp.float32, jnp.bfloat16
    L = o_ref.shape[1]
    gd = hg * hd          # channels in this head group
    rows = hg * dh        # stacked fast-weight rows in this head group

    # ---- depthwise causal short conv (size K) + SiLU over q|k|v channels ----
    x_qkv = qkv_ref[0].astype(f32)                     # [L, 3*gd]
    cw = cw_ref[...]                                   # [K, 3*gd]; cw[K-1] hits t
    ridx = lax.broadcasted_iota(jnp.int32, (L, 1), 0)
    conv = x_qkv * cw[K - 1:K, :]
    for j in range(1, K):
        shifted = pltpu.roll(x_qkv, shift=j, axis=0)   # row l <- row l-j
        shifted = jnp.where(ridx >= j, shifted, 0.0)   # causal zero pad
        conv = conv + shifted * cw[K - 1 - j:K - j, :]
    conv = conv * jax.nn.sigmoid(conv)                 # SiLU

    q = conv[:, 0 * gd:1 * gd]
    k = conv[:, 1 * gd:2 * gd]
    v = conv[:, 2 * gd:3 * gd]

    sel = sel_ref[...]                                 # [hg, gd] head->channel
    dn_nt = (((1,), (1,)), ((), ()))                   # [m,c] x [n,c] -> [m,n]
    dn_nn = (((1,), (0,)), ((), ()))                   # [m,c] x [c,n] -> [m,n]
    dn_tn = (((0,), (0,)), ((), ()))                   # [c,m] x [c,n] -> [m,n]

    # ---- learning rates: softplus(lr_proj(x) + inv_softplus(base_lr)) ----
    lr_in = lr_ref[0, 0] + base_lr_inv                 # [L, 3*hg] f32
    lr = jnp.maximum(lr_in, 0.0) + jnp.log(1.0 + jnp.exp(-jnp.abs(lr_in)))
    lr0 = lax.dot_general(lr[:, 0 * hg:1 * hg], sel, dn_nn, preferred_element_type=f32)
    lr1 = lax.dot_general(lr[:, 1 * hg:2 * hg], sel, dn_nn, preferred_element_type=f32)
    lr2 = lax.dot_general(lr[:, 2 * hg:3 * hg], sel, dn_nn, preferred_element_type=f32)

    # ---- per-head q/k L2 norm, full-width via the head selector ----
    qss = lax.dot_general(q * q, sel, dn_nt, preferred_element_type=f32)   # [L, hg]
    kss = lax.dot_general(k * k, sel, dn_nt, preferred_element_type=f32)
    q_inv = pl.reciprocal(jnp.sqrt(qss) + 1e-5, approx=True)
    k_inv = pl.reciprocal(jnp.sqrt(kss) + 1e-5, approx=True)
    q = q * lax.dot_general(q_inv, sel, dn_nn, preferred_element_type=f32)
    k = k * lax.dot_general(k_inv, sel, dn_nn, preferred_element_type=f32)

    qb, kb, vb = q.astype(bf16), k.astype(bf16), v.astype(bf16)

    # ---- phase 1: SwiGLU fast-weight forward with key + manual backward ----
    # Fast weights are block-diagonal [rows, gd]: every head of the group runs
    # in ONE gd-deep MXU matmul instead of hg tiny hd-deep launches.
    w0_bd = w0_ref[0]                                  # [rows, gd] f32
    w2_bd = w2_ref[0]
    w1t_bd = w1t_ref[0]

    gate = lax.dot_general(w0_bd.astype(bf16), kb, dn_nt, preferred_element_type=f32)
    hid = lax.dot_general(w2_bd.astype(bf16), kb, dn_nt, preferred_element_type=f32)
    dhid = lax.dot_general(w1t_bd.astype(bf16), vb, dn_nt, preferred_element_type=f32)

    sig = jax.nn.sigmoid(gate)
    silu_g = gate * sig
    hidden = silu_g * hid
    dhid_bm = dhid * silu_g
    dgate = dhid * hid
    dgate_ba = dgate * sig * (1.0 + gate * (1.0 - sig))        # silu backprop

    klr0 = (k * lr0).astype(bf16)
    vlr1 = (v * lr1).astype(bf16)
    klr2 = (k * lr2).astype(bf16)

    # Contraction over L; only the diagonal head-blocks are kept below.
    DW0 = lax.dot_general(dgate_ba.astype(bf16), klr0, dn_nn, preferred_element_type=f32)
    DW2 = lax.dot_general(dhid_bm.astype(bf16), klr2, dn_nn, preferred_element_type=f32)
    DW1T = lax.dot_general(hidden.astype(bf16), vlr1, dn_nn, preferred_element_type=f32)

    def _diag_blocks(mat):
        return [mat[h * dh:(h + 1) * dh, h * hd:(h + 1) * hd] for h in range(hg)]

    dW = jnp.stack(_diag_blocks(DW0) + _diag_blocks(DW2) + _diag_blocks(DW1T),
                   axis=0)                                     # [3*hg, dh, hd]

    # ---- phase 2: ONE batched Newton-Schulz over all 3*hg gradients ----
    # torch (use_muon=True): w_new = zeropower(dw) + dw, then renormed below.
    wnew = _ns5_batched(dW) + dW

    # ---- phase 3: renorm to ORIGINAL fast-weight norms, query forward ----
    mask = mask_ref[...]                                       # block-diag 0/1
    w0_rn = jnp.sqrt(jnp.sum(w0_bd * w0_bd, axis=1, keepdims=True))     # orig row norms
    w2_rn = jnp.sqrt(jnp.sum(w2_bd * w2_bd, axis=1, keepdims=True))
    w1_cn = jnp.sqrt(jnp.sum(w1t_bd * w1t_bd, axis=0, keepdims=True))   # orig col norms

    def _expand(compact):          # [hg, dh, hd] -> block-diagonal [rows, gd]
        return jnp.tile(compact.reshape(rows, hd), (1, hg)) * mask

    w0n = _expand(wnew[0 * hg:1 * hg])
    w2n = _expand(wnew[1 * hg:2 * hg])
    w1tn = _expand(wnew[2 * hg:3 * hg])

    w0n = w0n * (w0_rn * pl.reciprocal(
        jnp.sqrt(jnp.sum(w0n * w0n, axis=1, keepdims=True)) + 1e-5, approx=True))
    w2n = w2n * (w2_rn * pl.reciprocal(
        jnp.sqrt(jnp.sum(w2n * w2n, axis=1, keepdims=True)) + 1e-5, approx=True))
    w1tn = w1tn * (w1_cn * pl.reciprocal(
        jnp.sqrt(jnp.sum(w1tn * w1tn, axis=0, keepdims=True)) + 1e-5, approx=True))

    gq = lax.dot_general(w0n.astype(bf16), qb, dn_nt, preferred_element_type=f32)
    hq = lax.dot_general(w2n.astype(bf16), qb, dn_nt, preferred_element_type=f32)
    gh = (gq * jax.nn.sigmoid(gq)) * hq                        # [rows, L]
    o = lax.dot_general(gh.astype(bf16), w1tn.astype(bf16), dn_tn,
                        preferred_element_type=f32)            # [L, gd]

    # per-head RMSNorm (eps=1e-5, elementwise affine) + one lane-dense store
    ms = lax.dot_general(o * o, sel, dn_nt, preferred_element_type=f32) * (1.0 / hd)
    o = o * lax.dot_general(lax.rsqrt(ms + 1e-5), sel, dn_nn,
                            preferred_element_type=f32)
    o_ref[0] = (o * g_ref[...]).astype(o_ref.dtype)


def lact_swiglu_call(qkv, lr, conv_w, w0_bd, w2_bd, w1t_bd, bd_mask, sel, g_full,
                     *, hg, hd, dh, K, base_lr_inv):
    B, L, threedim = qkv.shape
    dim = threedim // 3
    gd = hg * hd
    G = dim // gd
    rows = hg * dh
    kernel = functools.partial(_lact_kernel, hg=hg, hd=hd, dh=dh, K=K,
                               base_lr_inv=base_lr_inv)
    return pl.pallas_call(
        kernel,
        out_shape=jax.ShapeDtypeStruct((B, L, dim), jnp.bfloat16),
        grid=(B, G),
        in_specs=[
            pl.BlockSpec((1, L, 3 * gd), lambda b, g: (b, 0, g)),        # q|k|v proj
            pl.BlockSpec((1, 1, L, 3 * hg), lambda b, g: (b, g, 0, 0)),  # lr proj
            pl.BlockSpec((K, 3 * gd), lambda b, g: (0, g)),              # conv taps
            pl.BlockSpec((1, rows, gd), lambda b, g: (g, 0, 0)),         # w0 block-diag
            pl.BlockSpec((1, rows, gd), lambda b, g: (g, 0, 0)),         # w2 block-diag
            pl.BlockSpec((1, rows, gd), lambda b, g: (g, 0, 0)),         # w1^T block-diag
            pl.BlockSpec((rows, gd), lambda b, g: (0, 0)),               # block-diag mask
            pl.BlockSpec((hg, gd), lambda b, g: (0, 0)),                 # head selector
            pl.BlockSpec((1, gd), lambda b, g: (0, g)),                  # RMSNorm weight
        ],
        out_specs=pl.BlockSpec((1, L, gd), lambda b, g: (b, 0, g)),
        compiler_params=pltpu.CompilerParams(
            dimension_semantics=("parallel", "parallel"),
            vmem_limit_bytes=_vmem_limit()),
    )(qkv, lr, conv_w, w0_bd, w2_bd, w1t_bd, bd_mask, sel, g_full)


# ------------------------ one-time param preprocessing ----------------------

def _heads_per_group(num_heads, head_dim):
    """Smallest head group whose channel width is a 128-lane multiple; fall
    back to a single group (full dim) for small models."""
    for hg in range(1, num_heads + 1):
        if num_heads % hg == 0 and (hg * head_dim) % 128 == 0:
            return hg
    return num_heads


def prepare_params(params, *, num_heads, head_dim, base_lr=0.01):
    """Hoisted out of the jitted forward: permutes/transposes/block-diagonalizes
    the torch-layout params into the layouts the Pallas kernels consume."""
    H, hd = num_heads, head_dim
    dim = H * hd
    dh = params["w0"].shape[1]
    K = params["conv_q"].shape[0]
    hg = _heads_per_group(H, hd)
    G = H // hg
    gd = hg * hd
    rows = hg * dh

    wq_t, wk_t, wv_t = params["wq"].T, params["wk"].T, params["wv"].T
    qkv_blocks, conv_blocks = [], []
    for g in range(G):
        cs = slice(g * gd, (g + 1) * gd)
        qkv_blocks += [wq_t[:, cs], wk_t[:, cs], wv_t[:, cs]]
        conv_blocks += [params["conv_q"][:, cs], params["conv_k"][:, cs],
                        params["conv_v"][:, cs]]
    w_qkv = jnp.concatenate(qkv_blocks, axis=1).astype(jnp.bfloat16)   # [dim, 3*dim]
    conv_w = jnp.concatenate(conv_blocks, axis=1).astype(jnp.float32)  # [K, 3*dim]

    # torch lr_proj column ordering is head-major (col = 3*h + lr_idx);
    # regroup to [group][lr0 heads | lr1 heads | lr2 heads].
    order = [(g * hg + hh) * 3 + i
             for g in range(G) for i in range(3) for hh in range(hg)]
    w_lr = params["w_lr"][jnp.array(order), :].T.astype(jnp.float32)   # [dim, 3*H]

    def _block_diag(w):            # [H, r, c] -> [G, hg*r, hg*c]
        _, r, c = w.shape
        out = jnp.zeros((G, hg * r, hg * c), jnp.float32)
        for g in range(G):
            for hh in range(hg):
                out = out.at[g, hh * r:(hh + 1) * r, hh * c:(hh + 1) * c].set(
                    w[g * hg + hh])
        return out

    w0_bd = _block_diag(params["w0"].astype(jnp.float32))
    w2_bd = _block_diag(params["w2"].astype(jnp.float32))
    w1t_bd = _block_diag(jnp.swapaxes(params["w1"], 1, 2).astype(jnp.float32))

    cidx = jnp.arange(gd)[None, :] // hd
    bd_mask = (jnp.arange(rows)[:, None] // dh == cidx).astype(jnp.float32)
    sel = (jnp.arange(hg)[:, None] == cidx).astype(jnp.float32)        # [hg, gd]

    g_full = jnp.tile(params["g_onorm"].reshape(1, hd), (1, H)).astype(jnp.float32)
    wo_t = params["wo"].T.astype(jnp.bfloat16)

    arrays = dict(w_qkv=w_qkv, w_lr=w_lr, conv_w=conv_w, w0_bd=w0_bd,
                  w2_bd=w2_bd, w1t_bd=w1t_bd, bd_mask=bd_mask, sel=sel,
                  g_full=g_full, wo_t=wo_t)
    cfg = dict(num_heads=H, head_dim=hd, dh=dh, K=K, hg=hg,
               base_lr_inv=base_lr + math.log(-math.expm1(-base_lr)))
    return arrays, cfg


# ------------------------------ module forward ------------------------------

def bidirectional_lact_swiglu_forward(prep, x, *, cfg):
    """Forward of BidirectionalLaCTSwiGLU (torch returns (out, None, None);
    only `out` is computed here)."""
    B, L, dim = x.shape
    H, hd, hg = cfg["num_heads"], cfg["head_dim"], cfg["hg"]
    G = H // hg

    x2 = x.reshape(B * L, dim)
    qkv = matmul(x2.astype(jnp.bfloat16), prep["w_qkv"], out_dtype=jnp.bfloat16)
    qkv = qkv.reshape(B, L, 3 * dim)
    # lr projection stays f32 (torch runs lr_proj with autocast disabled);
    # it is tiny (3*H output columns) so the f32 MXU pass is negligible.
    lr = matmul(x2, prep["w_lr"], out_dtype=jnp.float32)
    lr = lr.reshape(B, L, G, 3 * hg).transpose(0, 2, 1, 3)     # [B, G, L, 3*hg]

    o = lact_swiglu_call(qkv, lr, prep["conv_w"], prep["w0_bd"], prep["w2_bd"],
                         prep["w1t_bd"], prep["bd_mask"], prep["sel"],
                         prep["g_full"], hg=hg, hd=hd, dh=cfg["dh"], K=cfg["K"],
                         base_lr_inv=cfg["base_lr_inv"])       # [B, L, dim] bf16

    out = matmul(o.reshape(B * L, dim), prep["wo_t"], out_dtype=jnp.float32)
    return out.reshape(B, L, dim)


# ---------------------------------- main ------------------------------------

if __name__ == "__main__":
    B, L = 2, 8
    dim, head_dim = 32, 16          # num_heads = 2, inter_multi = 1 -> d_h = 16
    conv_size = 4
    num_heads = dim // head_dim
    d_h = head_dim

    key = jax.random.PRNGKey(0)
    ks = jax.random.split(key, 12)
    s = 1.0 / math.sqrt(dim)
    params = dict(
        wq=jax.random.normal(ks[0], (dim, dim), jnp.float32) * s,
        wk=jax.random.normal(ks[1], (dim, dim), jnp.float32) * s,
        wv=jax.random.normal(ks[2], (dim, dim), jnp.float32) * s,
        wo=jax.random.normal(ks[3], (dim, dim), jnp.float32) * s,
        w_lr=jax.random.normal(ks[4], (3 * num_heads, dim), jnp.float32) * s,
        conv_q=jax.random.normal(ks[5], (conv_size, dim), jnp.float32) * 0.5,
        conv_k=jax.random.normal(ks[6], (conv_size, dim), jnp.float32) * 0.5,
        conv_v=jax.random.normal(ks[7], (conv_size, dim), jnp.float32) * 0.5,
        w0=jax.random.normal(ks[8], (num_heads, d_h, head_dim), jnp.float32)
            / math.sqrt(head_dim),
        w1=jax.random.normal(ks[9], (num_heads, head_dim, d_h), jnp.float32)
            / math.sqrt(d_h),
        w2=jax.random.normal(ks[10], (num_heads, d_h, head_dim), jnp.float32)
            / math.sqrt(head_dim),
        g_onorm=jnp.ones((head_dim,), jnp.float32),   # RMSNorm affine weight
    )
    x = jax.random.normal(ks[11], (B, L, dim), jnp.float32)

    prep, cfg = prepare_params(params, num_heads=num_heads, head_dim=head_dim)
    fwd = jax.jit(functools.partial(bidirectional_lact_swiglu_forward, cfg=cfg))
    out = fwd(prep, x)
    jax.block_until_ready(out)
    assert out.shape == (B, L, dim)
    assert bool(jnp.all(jnp.isfinite(out)))
    print("KERNEL_OK")
</pallas_src>

<mosaic_0001>
module attributes {stable_mosaic.version = 11 : i64} {
  func.func @_matmul_kernel(%arg0: i32, %arg1: i32, %arg2: i32, %arg3: memref<16x32xbf16, #tpu.memory_space<vmem>>, %arg4: memref<32x96xbf16, #tpu.memory_space<vmem>>, %arg5: memref<16x96xbf16, #tpu.memory_space<vmem>>, %arg6: memref<16x96xf32, #tpu.memory_space<vmem>>) attributes {dimension_semantics = [#tpu.dimension_semantics<parallel>, #tpu.dimension_semantics<parallel>, #tpu.dimension_semantics<arbitrary>], iteration_bounds = array<i64: 1, 1, 1>, scalar_prefetch = 0 : i64, scratch_operands = 1 : i64, tpu.core_type = #tpu.core_type<tc>, window_params = [{transform_indices = @transform_0, window_bounds = array<i64: 16, 32>}, {transform_indices = @transform_1, window_bounds = array<i64: 32, 96>}, {transform_indices = @transform_2, window_bounds = array<i64: 16, 96>}]} {
    %c0_i32 = arith.constant 0 : i32
    %0 = arith.cmpi eq, %arg2, %c0_i32 : i32
    %1 = arith.extui %0 : i1 to i32
    %c0_i32_0 = arith.constant 0 : i32
    %2 = arith.cmpi ne, %1, %c0_i32_0 : i32
    scf.if %2 {
      %cst_10 = arith.constant 0.000000e+00 : f32
      %12 = vector.broadcast %cst_10 : f32 to vector<16x96xf32>
      %c0_11 = arith.constant 0 : index
      %c0_12 = arith.constant 0 : index
      %13 = vector.load %arg6[%c0_11, %c0_12] : memref<16x96xf32, #tpu.memory_space<vmem>>, vector<16x96xf32>
      tpu.vector_store %arg6[%c0_11, %c0_12], %12 {strides = array<i32>} : memref<16x96xf32, #tpu.memory_space<vmem>>, vector<16x96xf32>,
    } else {
    }
    %c0 = arith.constant 0 : index
    %c0_1 = arith.constant 0 : index
    %3 = vector.load %arg6[%c0, %c0_1] : memref<16x96xf32, #tpu.memory_space<vmem>>, vector<16x96xf32>
    %c0_2 = arith.constant 0 : index
    %c0_3 = arith.constant 0 : index
    %4 = vector.load %arg3[%c0_2, %c0_3] : memref<16x32xbf16, #tpu.memory_space<vmem>>, vector<16x32xbf16>
    %c0_4 = arith.constant 0 : index
    %c0_5 = arith.constant 0 : index
    %5 = vector.load %arg4[%c0_4, %c0_5] : memref<32x96xbf16, #tpu.memory_space<vmem>>, vector<32x96xbf16>
    %cst = arith.constant dense<0.000000e+00> : vector<16x96xf32>
    %6 = tpu.matmul %4, %5, %cst {dimension_numbers = #tpu.dot_dimension_numbers<[1], [0], [0], [1], [0, 0, 1, 1], [], []>} : vector<16x32xbf16>, vector<32x96xbf16>, vector<16x96xf32> -> vector<16x96xf32>
    %7 = arith.addf %3, %6 : vector<16x96xf32>
    %c0_6 = arith.constant 0 : index
    %c0_7 = arith.constant 0 : index
    %8 = vector.load %arg6[%c0_6, %c0_7] : memref<16x96xf32, #tpu.memory_space<vmem>>, vector<16x96xf32>
    tpu.vector_store %arg6[%c0_6, %c0_7], %7 {strides = array<i32>} : memref<16x96xf32, #tpu.memory_space<vmem>>, vector<16x96xf32>,
    %c0_i32_8 = arith.constant 0 : i32
    %9 = arith.cmpi eq, %arg2, %c0_i32_8 : i32
    %10 = arith.extui %9 : i1 to i32
    %c0_i32_9 = arith.constant 0 : i32
    %11 = arith.cmpi ne, %10, %c0_i32_9 : i32
    scf.if %11 {
      %c0_10 = arith.constant 0 : index
      %c0_11 = arith.constant 0 : index
      %12 = vector.load %arg6[%c0_10, %c0_11] : memref<16x96xf32, #tpu.memory_space<vmem>>, vector<16x96xf32>
      %13 = arith.truncf %12 : vector<16x96xf32> to vector<16x96xbf16>
      %c0_12 = arith.constant 0 : index
      %c0_13 = arith.constant 0 : index
      %14 = vector.load %arg5[%c0_12, %c0_13] : memref<16x96xbf16, #tpu.memory_space<vmem>>, vector<16x96xbf16>
      tpu.vector_store %arg5[%c0_12, %c0_13], %13 {strides = array<i32>} : memref<16x96xbf16, #tpu.memory_space<vmem>>, vector<16x96xbf16>,
    } else {
    }
    return
  }
  func.func @transform_0(%arg0: i32, %arg1: i32, %arg2: i32) -> (i32, i32) {
    %c0_i32 = arith.constant 0 : i32
    return %arg0, %arg2 : i32, i32
  }
  func.func @transform_1(%arg0: i32, %arg1: i32, %arg2: i32) -> (i32, i32) {
    %c0_i32 = arith.constant 0 : i32
    return %arg2, %arg1 : i32, i32
  }
  func.func @transform_2(%arg0: i32, %arg1: i32, %arg2: i32) -> (i32, i32) {
    %c0_i32 = arith.constant 0 : i32
    return %arg0, %arg1 : i32, i32
  }
}

module attributes {stable_mosaic.version = 11 : i64} {
  func.func @_matmul_kernel(%arg0: i32, %arg1: i32, %arg2: i32, %arg3: memref<16x32xf32, #tpu.memory_space<vmem>>, %arg4: memref<32x6xf32, #tpu.memory_space<vmem>>, %arg5: memref<16x6xf32, #tpu.memory_space<vmem>>, %arg6: memref<16x6xf32, #tpu.memory_space<vmem>>) attributes {dimension_semantics = [#tpu.dimension_semantics<parallel>, #tpu.dimension_semantics<parallel>, #tpu.dimension_semantics<arbitrary>], iteration_bounds = array<i64: 1, 1, 1>, scalar_prefetch = 0 : i64, scratch_operands = 1 : i64, tpu.core_type = #tpu.core_type<tc>, window_params = [{transform_indices = @transform_0, window_bounds = array<i64: 16, 32>}, {transform_indices = @transform_1, window_bounds = array<i64: 32, 6>}, {transform_indices = @transform_2, window_bounds = array<i64: 16, 6>}]} {
    %c0_i32 = arith.constant 0 : i32
    %0 = arith.cmpi eq, %arg2, %c0_i32 : i32
    %1 = arith.extui %0 : i1 to i32
    %c0_i32_0 = arith.constant 0 : i32
    %2 = arith.cmpi ne, %1, %c0_i32_0 : i32
    scf.if %2 {
      %cst_10 = arith.constant 0.000000e+00 : f32
      %12 = vector.broadcast %cst_10 : f32 to vector<16x6xf32>
      %c0_11 = arith.constant 0 : index
      %c0_12 = arith.constant 0 : index
      %13 = vector.load %arg6[%c0_11, %c0_12] : memref<16x6xf32, #tpu.memory_space<vmem>>, vector<16x6xf32>
      tpu.vector_store %arg6[%c0_11, %c0_12], %12 {strides = array<i32>} : memref<16x6xf32, #tpu.memory_space<vmem>>, vector<16x6xf32>,
    } else {
    }
    %c0 = arith.constant 0 : index
    %c0_1 = arith.constant 0 : index
    %3 = vector.load %arg6[%c0, %c0_1] : memref<16x6xf32, #tpu.memory_space<vmem>>, vector<16x6xf32>
    %c0_2 = arith.constant 0 : index
    %c0_3 = arith.constant 0 : index
    %4 = vector.load %arg3[%c0_2, %c0_3] : memref<16x32xf32, #tpu.memory_space<vmem>>, vector<16x32xf32>
    %c0_4 = arith.constant 0 : index
    %c0_5 = arith.constant 0 : index
    %5 = vector.load %arg4[%c0_4, %c0_5] : memref<32x6xf32, #tpu.memory_space<vmem>>, vector<32x6xf32>
    %cst = arith.constant dense<0.000000e+00> : vector<16x6xf32>
    %6 = tpu.matmul %4, %5, %cst {dimension_numbers = #tpu.dot_dimension_numbers<[1], [0], [0], [1], [0, 0, 1, 1], [], []>} : vector<16x32xf32>, vector<32x6xf32>, vector<16x6xf32> -> vector<16x6xf32>
    %7 = arith.addf %3, %6 : vector<16x6xf32>
    %c0_6 = arith.constant 0 : index
    %c0_7 = arith.constant 0 : index
    %8 = vector.load %arg6[%c0_6, %c0_7] : memref<16x6xf32, #tpu.memory_space<vmem>>, vector<16x6xf32>
    tpu.vector_store %arg6[%c0_6, %c0_7], %7 {strides = array<i32>} : memref<16x6xf32, #tpu.memory_space<vmem>>, vector<16x6xf32>,
    %c0_i32_8 = arith.constant 0 : i32
    %9 = arith.cmpi eq, %arg2, %c0_i32_8 : i32
    %10 = arith.extui %9 : i1 to i32
    %c0_i32_9 = arith.constant 0 : i32
    %11 = arith.cmpi ne, %10, %c0_i32_9 : i32
    scf.if %11 {
      %c0_10 = arith.constant 0 : index
      %c0_11 = arith.constant 0 : index
      %12 = vector.load %arg6[%c0_10, %c0_11] : memref<16x6xf32, #tpu.memory_space<vmem>>, vector<16x6xf32>
      %c0_12 = arith.constant 0 : index
      %c0_13 = arith.constant 0 : index
      %13 = vector.load %arg5[%c0_12, %c0_13] : memref<16x6xf32, #tpu.memory_space<vmem>>, vector<16x6xf32>
      tpu.vector_store %arg5[%c0_12, %c0_13], %12 {strides = array<i32>} : memref<16x6xf32, #tpu.memory_space<vmem>>, vector<16x6xf32>,
    } else {
    }
    return
  }
  func.func @transform_0(%arg0: i32, %arg1: i32, %arg2: i32) -> (i32, i32) {
    %c0_i32 = arith.constant 0 : i32
    return %arg0, %arg2 : i32, i32
  }
  func.func @transform_1(%arg0: i32, %arg1: i32, %arg2: i32) -> (i32, i32) {
    %c0_i32 = arith.constant 0 : i32
    return %arg2, %arg1 : i32, i32
  }
  func.func @transform_2(%arg0: i32, %arg1: i32, %arg2: i32) -> (i32, i32) {
    %c0_i32 = arith.constant 0 : i32
    return %arg0, %arg1 : i32, i32
  }
}

module attributes {stable_mosaic.version = 11 : i64} {
  func.func @_matmul_kernel(%arg0: i32, %arg1: i32, %arg2: i32, %arg3: memref<16x32xbf16, #tpu.memory_space<vmem>>, %arg4: memref<32x32xbf16, #tpu.memory_space<vmem>>, %arg5: memref<16x32xf32, #tpu.memory_space<vmem>>, %arg6: memref<16x32xf32, #tpu.memory_space<vmem>>) attributes {dimension_semantics = [#tpu.dimension_semantics<parallel>, #tpu.dimension_semantics<parallel>, #tpu.dimension_semantics<arbitrary>], iteration_bounds = array<i64: 1, 1, 1>, scalar_prefetch = 0 : i64, scratch_operands = 1 : i64, tpu.core_type = #tpu.core_type<tc>, window_params = [{transform_indices = @transform_0, window_bounds = array<i64: 16, 32>}, {transform_indices = @transform_1, window_bounds = array<i64: 32, 32>}, {transform_indices = @transform_2, window_bounds = array<i64: 16, 32>}]} {
    %c0_i32 = arith.constant 0 : i32
    %0 = arith.cmpi eq, %arg2, %c0_i32 : i32
    %1 = arith.extui %0 : i1 to i32
    %c0_i32_0 = arith.constant 0 : i32
    %2 = arith.cmpi ne, %1, %c0_i32_0 : i32
    scf.if %2 {
      %cst_10 = arith.constant 0.000000e+00 : f32
      %12 = vector.broadcast %cst_10 : f32 to vector<16x32xf32>
      %c0_11 = arith.constant 0 : index
      %c0_12 = arith.constant 0 : index
      %13 = vector.load %arg6[%c0_11, %c0_12] : memref<16x32xf32, #tpu.memory_space<vmem>>, vector<16x32xf32>
      tpu.vector_store %arg6[%c0_11, %c0_12], %12 {strides = array<i32>} : memref<16x32xf32, #tpu.memory_space<vmem>>, vector<16x32xf32>,
    } else {
    }
    %c0 = arith.constant 0 : index
    %c0_1 = arith.constant 0 : index
    %3 = vector.load %arg6[%c0, %c0_1] : memref<16x32xf32, #tpu.memory_space<vmem>>, vector<16x32xf32>
    %c0_2 = arith.constant 0 : index
    %c0_3 = arith.constant 0 : index
    %4 = vector.load %arg3[%c0_2, %c0_3] : memref<16x32xbf16, #tpu.memory_space<vmem>>, vector<16x32xbf16>
    %c0_4 = arith.constant 0 : index
    %c0_5 = arith.constant 0 : index
    %5 = vector.load %arg4[%c0_4, %c0_5] : memref<32x32xbf16, #tpu.memory_space<vmem>>, vector<32x32xbf16>
    %cst = arith.constant dense<0.000000e+00> : vector<16x32xf32>
    %6 = tpu.matmul %4, %5, %cst {dimension_numbers = #tpu.dot_dimension_numbers<[1], [0], [0], [1], [0, 0, 1, 1], [], []>} : vector<16x32xbf16>, vector<32x32xbf16>, vector<16x32xf32> -> vector<16x32xf32>
    %7 = arith.addf %3, %6 : vector<16x32xf32>
    %c0_6 = arith.constant 0 : index
    %c0_7 = arith.constant 0 : index
    %8 = vector.load %arg6[%c0_6, %c0_7] : memref<16x32xf32, #tpu.memory_space<vmem>>, vector<16x32xf32>
    tpu.vector_store %arg6[%c0_6, %c0_7], %7 {strides = array<i32>} : memref<16x32xf32, #tpu.memory_space<vmem>>, vector<16x32xf32>,
    %c0_i32_8 = arith.constant 0 : i32
    %9 = arith.cmpi eq, %arg2, %c0_i32_8 : i32
    %10 = arith.extui %9 : i1 to i32
    %c0_i32_9 = arith.constant 0 : i32
    %11 = arith.cmpi ne, %10, %c0_i32_9 : i32
    scf.if %11 {
      %c0_10 = arith.constant 0 : index
      %c0_11 = arith.constant 0 : index
      %12 = vector.load %arg6[%c0_10, %c0_11] : memref<16x32xf32, #tpu.memory_space<vmem>>, vector<16x32xf32>
      %c0_12 = arith.constant 0 : index
      %c0_13 = arith.constant 0 : index
      %13 = vector.load %arg5[%c0_12, %c0_13] : memref<16x32xf32, #tpu.memory_space<vmem>>, vector<16x32xf32>
      tpu.vector_store %arg5[%c0_12, %c0_13], %12 {strides = array<i32>} : memref<16x32xf32, #tpu.memory_space<vmem>>, vector<16x32xf32>,
    } else {
    }
    return
  }
  func.func @transform_0(%arg0: i32, %arg1: i32, %arg2: i32) -> (i32, i32) {
    %c0_i32 = arith.constant 0 : i32
    return %arg0, %arg2 : i32, i32
  }
  func.func @transform_1(%arg0: i32, %arg1: i32, %arg2: i32) -> (i32, i32) {
    %c0_i32 = arith.constant 0 : i32
    return %arg2, %arg1 : i32, i32
  }
  func.func @transform_2(%arg0: i32, %arg1: i32, %arg2: i32) -> (i32, i32) {
    %c0_i32 = arith.constant 0 : i32
    return %arg0, %arg1 : i32, i32
  }
}

module attributes {stable_mosaic.version = 11 : i64} {
  func.func @_lact_kernel(%arg0: i32, %arg1: i32, %arg2: memref<1x8x96xbf16, #tpu.memory_space<vmem>>, %arg3: memref<1x1x8x6xf32, #tpu.memory_space<vmem>>, %arg4: memref<4x96xf32, #tpu.memory_space<vmem>>, %arg5: memref<1x32x32xf32, #tpu.memory_space<vmem>>, %arg6: memref<1x32x32xf32, #tpu.memory_space<vmem>>, %arg7: memref<1x32x32xf32, #tpu.memory_space<vmem>>, %arg8: memref<32x32xf32, #tpu.memory_space<vmem>>, %arg9: memref<2x32xf32, #tpu.memory_space<vmem>>, %arg10: memref<1x32xf32, #tpu.memory_space<vmem>>, %arg11: memref<1x8x32xbf16, #tpu.memory_space<vmem>>) attributes {dimension_semantics = [#tpu.dimension_semantics<parallel>, #tpu.dimension_semantics<parallel>], iteration_bounds = array<i64: 2, 1>, scalar_prefetch = 0 : i64, scratch_operands = 0 : i64, tpu.core_type = #tpu.core_type<tc>, window_params = [{transform_indices = @transform_0, window_bounds = array<i64: 1, 8, 96>}, {transform_indices = @transform_1, window_bounds = array<i64: 1, 1, 8, 6>}, {transform_indices = @transform_2, window_bounds = array<i64: 4, 96>}, {transform_indices = @transform_3, window_bounds = array<i64: 1, 32, 32>}, {transform_indices = @transform_4, window_bounds = array<i64: 1, 32, 32>}, {transform_indices = @transform_5, window_bounds = array<i64: 1, 32, 32>}, {pipeline_mode = #tpu.pipeline_mode<synchronous>, transform_indices = @transform_6, window_bounds = array<i64: 32, 32>}, {pipeline_mode = #tpu.pipeline_mode<synchronous>, transform_indices = @transform_7, window_bounds = array<i64: 2, 32>}, {transform_indices = @transform_8, window_bounds = array<i64: 1, 32>}, {transform_indices = @transform_9, window_bounds = array<i64: 1, 8, 32>}]} {
    %c0 = arith.constant 0 : index
    %c0_0 = arith.constant 0 : index
    %c0_1 = arith.constant 0 : index
    %0 = vector.load %arg2[%c0, %c0_0, %c0_1] : memref<1x8x96xbf16, #tpu.memory_space<vmem>>, vector<1x8x96xbf16>
    %1 = vector.shape_cast %0 : vector<1x8x96xbf16> to vector<8x96xbf16>
    %2 = arith.extf %1 : vector<8x96xbf16> to vector<8x96xf32>
    %c0_2 = arith.constant 0 : index
    %c0_3 = arith.constant 0 : index
    %3 = vector.load %arg4[%c0_2, %c0_3] : memref<4x96xf32, #tpu.memory_space<vmem>>, vector<4x96xf32>
    %4 = tpu.iota {dimensions = array<i32: 0>} : vector<8x1xi32>
    %5 = vector.extract_strided_slice %3 {offsets = [3, 0], sizes = [1, 96], strides = [1, 1]} : vector<4x96xf32> to vector<1x96xf32>
    %6 = vector.broadcast %5 : vector<1x96xf32> to vector<8x96xf32>
    %7 = arith.mulf %2, %6 : vector<8x96xf32>
    %c1_i32 = arith.constant 1 : i32
    %8 = tpu.dynamic_rotate %2 by %c1_i32 dim 0 : vector<8x96xf32>, i32 -> vector<8x96xf32>
    %c1_i32_4 = arith.constant 1 : i32
    %9 = vector.broadcast %c1_i32_4 : i32 to vector<8x1xi32>
    %10 = arith.cmpi sge, %4, %9 : vector<8x1xi32>
    %cst = arith.constant 0.000000e+00 : f32
    %11 = vector.shape_cast %10 : vector<8x1xi1> to vector<8x1xi1>
    %12 = vector.broadcast %11 : vector<8x1xi1> to vector<8x96xi1>
    %13 = vector.broadcast %cst : f32 to vector<8x96xf32>
    %14 = arith.select %12, %8, %13 : vector<8x96xi1>, vector<8x96xf32>
    %15 = vector.extract_strided_slice %3 {offsets = [2, 0], sizes = [1, 96], strides = [1, 1]} : vector<4x96xf32> to vector<1x96xf32>
    %16 = vector.broadcast %15 : vector<1x96xf32> to vector<8x96xf32>
    %17 = arith.mulf %14, %16 : vector<8x96xf32>
    %18 = arith.addf %7, %17 : vector<8x96xf32>
    %c2_i32 = arith.constant 2 : i32
    %19 = tpu.dynamic_rotate %2 by %c2_i32 dim 0 : vector<8x96xf32>, i32 -> vector<8x96xf32>
    %c2_i32_5 = arith.constant 2 : i32
    %20 = vector.broadcast %c2_i32_5 : i32 to vector<8x1xi32>
    %21 = arith.cmpi sge, %4, %20 : vector<8x1xi32>
    %cst_6 = arith.constant 0.000000e+00 : f32
    %22 = vector.shape_cast %21 : vector<8x1xi1> to vector<8x1xi1>
    %23 = vector.broadcast %22 : vector<8x1xi1> to vector<8x96xi1>
    %24 = vector.broadcast %cst_6 : f32 to vector<8x96xf32>
    %25 = arith.select %23, %19, %24 : vector<8x96xi1>, vector<8x96xf32>
    %26 = vector.extract_strided_slice %3 {offsets = [1, 0], sizes = [1, 96], strides = [1, 1]} : vector<4x96xf32> to vector<1x96xf32>
    %27 = vector.broadcast %26 : vector<1x96xf32> to vector<8x96xf32>
    %28 = arith.mulf %25, %27 : vector<8x96xf32>
    %29 = arith.addf %18, %28 : vector<8x96xf32>
    %c3_i32 = arith.constant 3 : i32
    %30 = tpu.dynamic_rotate %2 by %c3_i32 dim 0 : vector<8x96xf32>, i32 -> vector<8x96xf32>
    %c3_i32_7 = arith.constant 3 : i32
    %31 = vector.broadcast %c3_i32_7 : i32 to vector<8x1xi32>
    %32 = arith.cmpi sge, %4, %31 : vector<8x1xi32>
    %cst_8 = arith.constant 0.000000e+00 : f32
    %33 = vector.shape_cast %32 : vector<8x1xi1> to vector<8x1xi1>
    %34 = vector.broadcast %33 : vector<8x1xi1> to vector<8x96xi1>
    %35 = vector.broadcast %cst_8 : f32 to vector<8x96xf32>
    %36 = arith.select %34, %30, %35 : vector<8x96xi1>, vector<8x96xf32>
    %37 = vector.extract_strided_slice %3 {offsets = [0, 0], sizes = [1, 96], strides = [1, 1]} : vector<4x96xf32> to vector<1x96xf32>
    %38 = vector.broadcast %37 : vector<1x96xf32> to vector<8x96xf32>
    %39 = arith.mulf %36, %38 : vector<8x96xf32>
    %40 = arith.addf %29, %39 : vector<8x96xf32>
    %41 = arith.negf %40 : vector<8x96xf32>
    %42 = math.exp %41 : vector<8x96xf32>
    %cst_9 = arith.constant 1.000000e+00 : f32
    %43 = vector.broadcast %cst_9 : f32 to vector<8x96xf32>
    %44 = arith.addf %43, %42 : vector<8x96xf32>
    %45 = arith.divf %43, %44 : vector<8x96xf32>
    %46 = arith.mulf %40, %45 : vector<8x96xf32>
    %47 = vector.extract_strided_slice %46 {offsets = [0, 0], sizes = [8, 32], strides = [1, 1]} : vector<8x96xf32> to vector<8x32xf32>
    %48 = vector.extract_strided_slice %46 {offsets = [0, 32], sizes = [8, 32], strides = [1, 1]} : vector<8x96xf32> to vector<8x32xf32>
    %49 = vector.extract_strided_slice %46 {offsets = [0, 64], sizes = [8, 32], strides = [1, 1]} : vector<8x96xf32> to vector<8x32xf32>
    %c0_10 = arith.constant 0 : index
    %c0_11 = arith.constant 0 : index
    %50 = vector.load %arg9[%c0_10, %c0_11] : memref<2x32xf32, #tpu.memory_space<vmem>>, vector<2x32xf32>
    %c0_12 = arith.constant 0 : index
    %c0_13 = arith.constant 0 : index
    %c0_14 = arith.constant 0 : index
    %c0_15 = arith.constant 0 : index
    %51 = vector.load %arg3[%c0_12, %c0_13, %c0_14, %c0_15] : memref<1x1x8x6xf32, #tpu.memory_space<vmem>>, vector<1x1x8x6xf32>
    %52 = vector.shape_cast %51 : vector<1x1x8x6xf32> to vector<8x6xf32>
    %cst_16 = arith.constant -4.60016584 : f32
    %53 = vector.broadcast %cst_16 : f32 to vector<8x6xf32>
    %54 = arith.addf %52, %53 : vector<8x6xf32>
    %cst_17 = arith.constant 0.000000e+00 : f32
    %55 = vector.broadcast %cst_17 : f32 to vector<8x6xf32>
    %56 = arith.maximumf %54, %55 : vector<8x6xf32>
    %57 = math.absf %54 : vector<8x6xf32>
    %cst_18 = arith.constant 0.000000e+00 : f32
    %58 = vector.broadcast %cst_18 : f32 to vector<8x6xf32>
    %59 = arith.subf %58, %57 : vector<8x6xf32>
    %60 = math.exp %59 : vector<8x6xf32>
    %cst_19 = arith.constant 1.000000e+00 : f32
    %61 = vector.broadcast %cst_19 : f32 to vector<8x6xf32>
    %62 = arith.addf %61, %60 : vector<8x6xf32>
    %63 = math.log %62 : vector<8x6xf32>
    %64 = arith.addf %56, %63 : vector<8x6xf32>
    %65 = vector.extract_strided_slice %64 {offsets = [0, 0], sizes = [8, 2], strides = [1, 1]} : vector<8x6xf32> to vector<8x2xf32>
    %cst_20 = arith.constant dense<0.000000e+00> : vector<8x32xf32>
    %66 = tpu.matmul %65, %50, %cst_20 {dimension_numbers = #tpu.dot_dimension_numbers<[1], [0], [0], [1], [0, 0, 1, 1], [], []>} : vector<8x2xf32>, vector<2x32xf32>, vector<8x32xf32> -> vector<8x32xf32>
    %67 = vector.extract_strided_slice %64 {offsets = [0, 2], sizes = [8, 2], strides = [1, 1]} : vector<8x6xf32> to vector<8x2xf32>
    %cst_21 = arith.constant dense<0.000000e+00> : vector<8x32xf32>
    %68 = tpu.matmul %67, %50, %cst_21 {dimension_numbers = #tpu.dot_dimension_numbers<[1], [0], [0], [1], [0, 0, 1, 1], [], []>} : vector<8x2xf32>, vector<2x32xf32>, vector<8x32xf32> -> vector<8x32xf32>
    %69 = vector.extract_strided_slice %64 {offsets = [0, 4], sizes = [8, 2], strides = [1, 1]} : vector<8x6xf32> to vector<8x2xf32>
    %cst_22 = arith.constant dense<0.000000e+00> : vector<8x32xf32>
    %70 = tpu.matmul %69, %50, %cst_22 {dimension_numbers = #tpu.dot_dimension_numbers<[1], [0], [0], [1], [0, 0, 1, 1], [], []>} : vector<8x2xf32>, vector<2x32xf32>, vector<8x32xf32> -> vector<8x32xf32>
    %71 = arith.mulf %47, %47 : vector<8x32xf32>
    %cst_23 = arith.constant dense<0.000000e+00> : vector<8x2xf32>
    %72 = tpu.matmul %71, %50, %cst_23 {dimension_numbers = #tpu.dot_dimension_numbers<[1], [1], [0], [0], [0, 0, 1, 0], [], []>} : vector<8x32xf32>, vector<2x32xf32>, vector<8x2xf32> -> vector<8x2xf32>
    %73 = arith.mulf %48, %48 : vector<8x32xf32>
    %cst_24 = arith.constant dense<0.000000e+00> : vector<8x2xf32>
    %74 = tpu.matmul %73, %50, %cst_24 {dimension_numbers = #tpu.dot_dimension_numbers<[1], [1], [0], [0], [0, 0, 1, 0], [], []>} : vector<8x32xf32>, vector<2x32xf32>, vector<8x2xf32> -> vector<8x2xf32>
    %75 = math.sqrt %72 : vector<8x2xf32>
    %cst_25 = arith.constant 9.99999974E-6 : f32
    %76 = vector.broadcast %cst_25 : f32 to vector<8x2xf32>
    %77 = arith.addf %75, %76 : vector<8x2xf32>
    %78 = tpu.reciprocal %77 {approx = true} : vector<8x2xf32> -> vector<8x2xf32>
    %79 = math.sqrt %74 : vector<8x2xf32>
    %cst_26 = arith.constant 9.99999974E-6 : f32
    %80 = vector.broadcast %cst_26 : f32 to vector<8x2xf32>
    %81 = arith.addf %79, %80 : vector<8x2xf32>
    %82 = tpu.reciprocal %81 {approx = true} : vector<8x2xf32> -> vector<8x2xf32>
    %cst_27 = arith.constant dense<0.000000e+00> : vector<8x32xf32>
    %83 = tpu.matmul %78, %50, %cst_27 {dimension_numbers = #tpu.dot_dimension_numbers<[1], [0], [0], [1], [0, 0, 1, 1], [], []>} : vector<8x2xf32>, vector<2x32xf32>, vector<8x32xf32> -> vector<8x32xf32>
    %84 = arith.mulf %47, %83 : vector<8x32xf32>
    %cst_28 = arith.constant dense<0.000000e+00> : vector<8x32xf32>
    %85 = tpu.matmul %82, %50, %cst_28 {dimension_numbers = #tpu.dot_dimension_numbers<[1], [0], [0], [1], [0, 0, 1, 1], [], []>} : vector<8x2xf32>, vector<2x32xf32>, vector<8x32xf32> -> vector<8x32xf32>
    %86 = arith.mulf %48, %85 : vector<8x32xf32>
    %87 = arith.truncf %84 : vector<8x32xf32> to vector<8x32xbf16>
    %88 = arith.truncf %86 : vector<8x32xf32> to vector<8x32xbf16>
    %89 = arith.truncf %49 : vector<8x32xf32> to vector<8x32xbf16>
    %c0_29 = arith.constant 0 : index
    %c0_30 = arith.constant 0 : index
    %c0_31 = arith.constant 0 : index
    %90 = vector.load %arg5[%c0_29, %c0_30, %c0_31] : memref<1x32x32xf32, #tpu.memory_space<vmem>>, vector<1x32x32xf32>
    %91 = vector.shape_cast %90 : vector<1x32x32xf32> to vector<32x32xf32>
    %c0_32 = arith.constant 0 : index
    %c0_33 = arith.constant 0 : index
    %c0_34 = arith.constant 0 : index
    %92 = vector.load %arg6[%c0_32, %c0_33, %c0_34] : memref<1x32x32xf32, #tpu.memory_space<vmem>>, vector<1x32x32xf32>
    %93 = vector.shape_cast %92 : vector<1x32x32xf32> to vector<32x32xf32>
    %c0_35 = arith.constant 0 : index
    %c0_36 = arith.constant 0 : index
    %c0_37 = arith.constant 0 : index
    %94 = vector.load %arg7[%c0_35, %c0_36, %c0_37] : memref<1x32x32xf32, #tpu.memory_space<vmem>>, vector<1x32x32xf32>
    %95 = vector.shape_cast %94 : vector<1x32x32xf32> to vector<32x32xf32>
    %96 = arith.truncf %91 : vector<32x32xf32> to vector<32x32xbf16>
    %cst_38 = arith.constant dense<0.000000e+00> : vector<32x8xf32>
    %97 = tpu.matmul %96, %88, %cst_38 {dimension_numbers = #tpu.dot_dimension_numbers<[1], [1], [0], [0], [0, 0, 1, 0], [], []>} : vector<32x32xbf16>, vector<8x32xbf16>, vector<32x8xf32> -> vector<32x8xf32>
    %98 = arith.truncf %93 : vector<32x32xf32> to vector<32x32xbf16>
    %cst_39 = arith.constant dense<0.000000e+00> : vector<32x8xf32>
    %99 = tpu.matmul %98, %88, %cst_39 {dimension_numbers = #tpu.dot_dimension_numbers<[1], [1], [0], [0], [0, 0, 1, 0], [], []>} : vector<32x32xbf16>, vector<8x32xbf16>, vector<32x8xf32> -> vector<32x8xf32>
    %100 = arith.truncf %95 : vector<32x32xf32> to vector<32x32xbf16>
    %cst_40 = arith.constant dense<0.000000e+00> : vector<32x8xf32>
    %101 = tpu.matmul %100, %89, %cst_40 {dimension_numbers = #tpu.dot_dimension_numbers<[1], [1], [0], [0], [0, 0, 1, 0], [], []>} : vector<32x32xbf16>, vector<8x32xbf16>, vector<32x8xf32> -> vector<32x8xf32>
    %102 = arith.negf %97 : vector<32x8xf32>
    %103 = math.exp %102 : vector<32x8xf32>
    %cst_41 = arith.constant 1.000000e+00 : f32
    %104 = vector.broadcast %cst_41 : f32 to vector<32x8xf32>
    %105 = arith.addf %104, %103 : vector<32x8xf32>
    %106 = arith.divf %104, %105 : vector<32x8xf32>
    %107 = arith.mulf %97, %106 : vector<32x8xf32>
    %108 = arith.mulf %107, %99 : vector<32x8xf32>
    %109 = arith.mulf %101, %107 : vector<32x8xf32>
    %110 = arith.mulf %101, %99 : vector<32x8xf32>
    %111 = arith.mulf %110, %106 : vector<32x8xf32>
    %cst_42 = arith.constant 1.000000e+00 : f32
    %112 = vector.broadcast %cst_42 : f32 to vector<32x8xf32>
    %113 = arith.subf %112, %106 : vector<32x8xf32>
    %114 = arith.mulf %97, %113 : vector<32x8xf32>
    %cst_43 = arith.constant 1.000000e+00 : f32
    %115 = vector.broadcast %cst_43 : f32 to vector<32x8xf32>
    %116 = arith.addf %115, %114 : vector<32x8xf32>
    %117 = arith.mulf %111, %116 : vector<32x8xf32>
    %118 = arith.mulf %86, %66 : vector<8x32xf32>
    %119 = arith.truncf %118 : vector<8x32xf32> to vector<8x32xbf16>
    %120 = arith.mulf %49, %68 : vector<8x32xf32>
    %121 = arith.truncf %120 : vector<8x32xf32> to vector<8x32xbf16>
    %122 = arith.mulf %86, %70 : vector<8x32xf32>
    %123 = arith.truncf %122 : vector<8x32xf32> to vector<8x32xbf16>
    %124 = arith.truncf %117 : vector<32x8xf32> to vector<32x8xbf16>
    %cst_44 = arith.constant dense<0.000000e+00> : vector<32x32xf32>
    %125 = tpu.matmul %124, %119, %cst_44 {dimension_numbers = #tpu.dot_dimension_numbers<[1], [0], [0], [1], [0, 0, 1, 1], [], []>} : vector<32x8xbf16>, vector<8x32xbf16>, vector<32x32xf32> -> vector<32x32xf32>
    %126 = arith.truncf %109 : vector<32x8xf32> to vector<32x8xbf16>
    %cst_45 = arith.constant dense<0.000000e+00> : vector<32x32xf32>
    %127 = tpu.matmul %126, %123, %cst_45 {dimension_numbers = #tpu.dot_dimension_numbers<[1], [0], [0], [1], [0, 0, 1, 1], [], []>} : vector<32x8xbf16>, vector<8x32xbf16>, vector<32x32xf32> -> vector<32x32xf32>
    %128 = arith.truncf %108 : vector<32x8xf32> to vector<32x8xbf16>
    %cst_46 = arith.constant dense<0.000000e+00> : vector<32x32xf32>
    %129 = tpu.matmul %128, %121, %cst_46 {dimension_numbers = #tpu.dot_dimension_numbers<[1], [0], [0], [1], [0, 0, 1, 1], [], []>} : vector<32x8xbf16>, vector<8x32xbf16>, vector<32x32xf32> -> vector<32x32xf32>
    %130 = vector.extract_strided_slice %125 {offsets = [0, 0], sizes = [16, 16], strides = [1, 1]} : vector<32x32xf32> to vector<16x16xf32>
    %131 = vector.extract_strided_slice %125 {offsets = [16, 16], sizes = [16, 16], strides = [1, 1]} : vector<32x32xf32> to vector<16x16xf32>
    %132 = vector.extract_strided_slice %127 {offsets = [0, 0], sizes = [16, 16], strides = [1, 1]} : vector<32x32xf32> to vector<16x16xf32>
    %133 = vector.extract_strided_slice %127 {offsets = [16, 16], sizes = [16, 16], strides = [1, 1]} : vector<32x32xf32> to vector<16x16xf32>
    %134 = vector.extract_strided_slice %129 {offsets = [0, 0], sizes = [16, 16], strides = [1, 1]} : vector<32x32xf32> to vector<16x16xf32>
    %135 = vector.extract_strided_slice %129 {offsets = [16, 16], sizes = [16, 16], strides = [1, 1]} : vector<32x32xf32> to vector<16x16xf32>
    %136 = vector.shape_cast %130 : vector<16x16xf32> to vector<1x16x16xf32>
    %137 = vector.shape_cast %131 : vector<16x16xf32> to vector<1x16x16xf32>
    %138 = vector.shape_cast %132 : vector<16x16xf32> to vector<1x16x16xf32>
    %139 = vector.shape_cast %133 : vector<16x16xf32> to vector<1x16x16xf32>
    %140 = vector.shape_cast %134 : vector<16x16xf32> to vector<1x16x16xf32>
    %141 = vector.shape_cast %135 : vector<16x16xf32> to vector<1x16x16xf32>
    %142 = tpu.concatenate %136, %137, %138, %139, %140, %141 in 0 : vector<1x16x16xf32>, vector<1x16x16xf32>, vector<1x16x16xf32>, vector<1x16x16xf32>, vector<1x16x16xf32>, vector<1x16x16xf32> -> vector<6x16x16xf32>
    %143 = arith.mulf %142, %142 : vector<6x16x16xf32>
    %cst_47 = arith.constant dense<0.000000e+00> : vector<6x16xf32>
    %144 = vector.multi_reduction <add>, %143, %cst_47 [2] : vector<6x16x16xf32> to vector<6x16xf32>
    %145 = vector.shape_cast %144 : vector<6x16xf32> to vector<6x16x1xf32>
    %cst_48 = arith.constant dense<0.000000e+00> : vector<6x1xf32>
    %146 = vector.multi_reduction <add>, %145, %cst_48 [1] : vector<6x16x1xf32> to vector<6x1xf32>
    %147 = vector.shape_cast %146 : vector<6x1xf32> to vector<6x1x1xf32>
    %148 = math.sqrt %147 : vector<6x1x1xf32>
    %cst_49 = arith.constant 1.000000e-07 : f32
    %149 = vector.broadcast %cst_49 : f32 to vector<6x1x1xf32>
    %150 = arith.addf %148, %149 : vector<6x1x1xf32>
    %151 = vector.broadcast %150 : vector<6x1x1xf32> to vector<6x16x16xf32>
    %152 = arith.divf %142, %151 : vector<6x16x16xf32>
    %153 = arith.truncf %152 : vector<6x16x16xf32> to vector<6x16x16xbf16>
    %cst_50 = arith.constant dense<0.000000e+00> : vector<6x16x16xf32>
    %154 = tpu.matmul %153, %153, %cst_50 {dimension_numbers = #tpu.dot_dimension_numbers<[2], [2], [1], [1], [0, 0, 0, 1, 1, 1], [0], [0]>} : vector<6x16x16xbf16>, vector<6x16x16xbf16>, vector<6x16x16xf32> -> vector<6x16x16xf32>
    %155 = arith.truncf %154 : vector<6x16x16xf32> to vector<6x16x16xbf16>
    %156 = arith.truncf %154 : vector<6x16x16xf32> to vector<6x16x16xbf16>
    %cst_51 = arith.constant dense<0.000000e+00> : vector<6x16x16xf32>
    %157 = tpu.matmul %155, %156, %cst_51 {dimension_numbers = #tpu.dot_dimension_numbers<[2], [1], [1], [2], [0, 0, 0, 1, 1, 2], [0], [0]>} : vector<6x16x16xbf16>, vector<6x16x16xbf16>, vector<6x16x16xf32> -> vector<6x16x16xf32>
    %cst_52 = arith.constant -6.89459991 : f32
    %158 = vector.broadcast %cst_52 : f32 to vector<6x16x16xf32>
    %159 = arith.mulf %158, %154 : vector<6x16x16xf32>
    %cst_53 = arith.constant 2.927000e+00 : f32
    %160 = vector.broadcast %cst_53 : f32 to vector<6x16x16xf32>
    %161 = arith.mulf %160, %157 : vector<6x16x16xf32>
    %162 = arith.addf %159, %161 : vector<6x16x16xf32>
    %163 = arith.truncf %162 : vector<6x16x16xf32> to vector<6x16x16xbf16>
    %cst_54 = arith.constant 4.084800e+00 : f32
    %164 = vector.broadcast %cst_54 : f32 to vector<6x16x16xf32>
    %165 = arith.mulf %164, %152 : vector<6x16x16xf32>
    %cst_55 = arith.constant dense<0.000000e+00> : vector<6x16x16xf32>
    %166 = tpu.matmul %163, %153, %cst_55 {dimension_numbers = #tpu.dot_dimension_numbers<[2], [1], [1], [2], [0, 0, 0, 1, 1, 2], [0], [0]>} : vector<6x16x16xbf16>, vector<6x16x16xbf16>, vector<6x16x16xf32> -> vector<6x16x16xf32>
    %167 = arith.addf %165, %166 : vector<6x16x16xf32>
    %168 = arith.truncf %167 : vector<6x16x16xf32> to vector<6x16x16xbf16>
    %cst_56 = arith.constant dense<0.000000e+00> : vector<6x16x16xf32>
    %169 = tpu.matmul %168, %168, %cst_56 {dimension_numbers = #tpu.dot_dimension_numbers<[2], [2], [1], [1], [0, 0, 0, 1, 1, 1], [0], [0]>} : vector<6x16x16xbf16>, vector<6x16x16xbf16>, vector<6x16x16xf32> -> vector<6x16x16xf32>
    %170 = arith.truncf %169 : vector<6x16x16xf32> to vector<6x16x16xbf16>
    %171 = arith.truncf %169 : vector<6x16x16xf32> to vector<6x16x16xbf16>
    %cst_57 = arith.constant dense<0.000000e+00> : vector<6x16x16xf32>
    %172 = tpu.matmul %170, %171, %cst_57 {dimension_numbers = #tpu.dot_dimension_numbers<[2], [1], [1], [2], [0, 0, 0, 1, 1, 2], [0], [0]>} : vector<6x16x16xbf16>, vector<6x16x16xbf16>, vector<6x16x16xf32> -> vector<6x16x16xf32>
    %cst_58 = arith.constant -6.302900e+00 : f32
    %173 = vector.broadcast %cst_58 : f32 to vector<6x16x16xf32>
    %174 = arith.mulf %173, %169 : vector<6x16x16xf32>
    %cst_59 = arith.constant 2.637700e+00 : f32
    %175 = vector.broadcast %cst_59 : f32 to vector<6x16x16xf32>
    %176 = arith.mulf %175, %172 : vector<6x16x16xf32>
    %177 = arith.addf %174, %176 : vector<6x16x16xf32>
    %178 = arith.truncf %177 : vector<6x16x16xf32> to vector<6x16x16xbf16>
    %cst_60 = arith.constant 3.950500e+00 : f32
    %179 = vector.broadcast %cst_60 : f32 to vector<6x16x16xf32>
    %180 = arith.mulf %179, %167 : vector<6x16x16xf32>
    %cst_61 = arith.constant dense<0.000000e+00> : vector<6x16x16xf32>
    %181 = tpu.matmul %178, %168, %cst_61 {dimension_numbers = #tpu.dot_dimension_numbers<[2], [1], [1], [2], [0, 0, 0, 1, 1, 2], [0], [0]>} : vector<6x16x16xbf16>, vector<6x16x16xbf16>, vector<6x16x16xf32> -> vector<6x16x16xf32>
    %182 = arith.addf %180, %181 : vector<6x16x16xf32>
    %183 = arith.truncf %182 : vector<6x16x16xf32> to vector<6x16x16xbf16>
    %cst_62 = arith.constant dense<0.000000e+00> : vector<6x16x16xf32>
    %184 = tpu.matmul %183, %183, %cst_62 {dimension_numbers = #tpu.dot_dimension_numbers<[2], [2], [1], [1], [0, 0, 0, 1, 1, 1], [0], [0]>} : vector<6x16x16xbf16>, vector<6x16x16xbf16>, vector<6x16x16xf32> -> vector<6x16x16xf32>
    %185 = arith.truncf %184 : vector<6x16x16xf32> to vector<6x16x16xbf16>
    %186 = arith.truncf %184 : vector<6x16x16xf32> to vector<6x16x16xbf16>
    %cst_63 = arith.constant dense<0.000000e+00> : vector<6x16x16xf32>
    %187 = tpu.matmul %185, %186, %cst_63 {dimension_numbers = #tpu.dot_dimension_numbers<[2], [1], [1], [2], [0, 0, 0, 1, 1, 2], [0], [0]>} : vector<6x16x16xbf16>, vector<6x16x16xbf16>, vector<6x16x16xf32> -> vector<6x16x16xf32>
    %cst_64 = arith.constant -5.591300e+00 : f32
    %188 = vector.broadcast %cst_64 : f32 to vector<6x16x16xf32>
    %189 = arith.mulf %188, %184 : vector<6x16x16xf32>
    %cst_65 = arith.constant 2.303700e+00 : f32
    %190 = vector.broadcast %cst_65 : f32 to vector<6x16x16xf32>
    %191 = arith.mulf %190, %187 : vector<6x16x16xf32>
    %192 = arith.addf %189, %191 : vector<6x16x16xf32>
    %193 = arith.truncf %192 : vector<6x16x16xf32> to vector<6x16x16xbf16>
    %cst_66 = arith.constant 3.741800e+00 : f32
    %194 = vector.broadcast %cst_66 : f32 to vector<6x16x16xf32>
    %195 = arith.mulf %194, %182 : vector<6x16x16xf32>
    %cst_67 = arith.constant dense<0.000000e+00> : vector<6x16x16xf32>
    %196 = tpu.matmul %193, %183, %cst_67 {dimension_numbers = #tpu.dot_dimension_numbers<[2], [1], [1], [2], [0, 0, 0, 1, 1, 2], [0], [0]>} : vector<6x16x16xbf16>, vector<6x16x16xbf16>, vector<6x16x16xf32> -> vector<6x16x16xf32>
    %197 = arith.addf %195, %196 : vector<6x16x16xf32>
    %198 = arith.truncf %197 : vector<6x16x16xf32> to vector<6x16x16xbf16>
    %cst_68 = arith.constant dense<0.000000e+00> : vector<6x16x16xf32>
    %199 = tpu.matmul %198, %198, %cst_68 {dimension_numbers = #tpu.dot_dimension_numbers<[2], [2], [1], [1], [0, 0, 0, 1, 1, 1], [0], [0]>} : vector<6x16x16xbf16>, vector<6x16x16xbf16>, vector<6x16x16xf32> -> vector<6x16x16xf32>
    %200 = arith.truncf %199 : vector<6x16x16xf32> to vector<6x16x16xbf16>
    %201 = arith.truncf %199 : vector<6x16x16xf32> to vector<6x16x16xbf16>
    %cst_69 = arith.constant dense<0.000000e+00> : vector<6x16x16xf32>
    %202 = tpu.matmul %200, %201, %cst_69 {dimension_numbers = #tpu.dot_dimension_numbers<[2], [1], [1], [2], [0, 0, 0, 1, 1, 2], [0], [0]>} : vector<6x16x16xbf16>, vector<6x16x16xbf16>, vector<6x16x16xf32> -> vector<6x16x16xf32>
    %cst_70 = arith.constant -3.142700e+00 : f32
    %203 = vector.broadcast %cst_70 : f32 to vector<6x16x16xf32>
    %204 = arith.mulf %203, %199 : vector<6x16x16xf32>
    %cst_71 = arith.constant 1.204600e+00 : f32
    %205 = vector.broadcast %cst_71 : f32 to vector<6x16x16xf32>
    %206 = arith.mulf %205, %202 : vector<6x16x16xf32>
    %207 = arith.addf %204, %206 : vector<6x16x16xf32>
    %208 = arith.truncf %207 : vector<6x16x16xf32> to vector<6x16x16xbf16>
    %cst_72 = arith.constant 2.876900e+00 : f32
    %209 = vector.broadcast %cst_72 : f32 to vector<6x16x16xf32>
    %210 = arith.mulf %209, %197 : vector<6x16x16xf32>
    %cst_73 = arith.constant dense<0.000000e+00> : vector<6x16x16xf32>
    %211 = tpu.matmul %208, %198, %cst_73 {dimension_numbers = #tpu.dot_dimension_numbers<[2], [1], [1], [2], [0, 0, 0, 1, 1, 2], [0], [0]>} : vector<6x16x16xbf16>, vector<6x16x16xbf16>, vector<6x16x16xf32> -> vector<6x16x16xf32>
    %212 = arith.addf %210, %211 : vector<6x16x16xf32>
    %213 = arith.truncf %212 : vector<6x16x16xf32> to vector<6x16x16xbf16>
    %cst_74 = arith.constant dense<0.000000e+00> : vector<6x16x16xf32>
    %214 = tpu.matmul %213, %213, %cst_74 {dimension_numbers = #tpu.dot_dimension_numbers<[2], [2], [1], [1], [0, 0, 0, 1, 1, 1], [0], [0]>} : vector<6x16x16xbf16>, vector<6x16x16xbf16>, vector<6x16x16xf32> -> vector<6x16x16xf32>
    %215 = arith.truncf %214 : vector<6x16x16xf32> to vector<6x16x16xbf16>
    %216 = arith.truncf %214 : vector<6x16x16xf32> to vector<6x16x16xbf16>
    %cst_75 = arith.constant dense<0.000000e+00> : vector<6x16x16xf32>
    %217 = tpu.matmul %215, %216, %cst_75 {dimension_numbers = #tpu.dot_dimension_numbers<[2], [1], [1], [2], [0, 0, 0, 1, 1, 2], [0], [0]>} : vector<6x16x16xbf16>, vector<6x16x16xbf16>, vector<6x16x16xf32> -> vector<6x16x16xf32>
    %cst_76 = arith.constant -3.052500e+00 : f32
    %218 = vector.broadcast %cst_76 : f32 to vector<6x16x16xf32>
    %219 = arith.mulf %218, %214 : vector<6x16x16xf32>
    %cst_77 = arith.constant 1.201200e+00 : f32
    %220 = vector.broadcast %cst_77 : f32 to vector<6x16x16xf32>
    %221 = arith.mulf %220, %217 : vector<6x16x16xf32>
    %222 = arith.addf %219, %221 : vector<6x16x16xf32>
    %223 = arith.truncf %222 : vector<6x16x16xf32> to vector<6x16x16xbf16>
    %cst_78 = arith.constant 2.836600e+00 : f32
    %224 = vector.broadcast %cst_78 : f32 to vector<6x16x16xf32>
    %225 = arith.mulf %224, %212 : vector<6x16x16xf32>
    %cst_79 = arith.constant dense<0.000000e+00> : vector<6x16x16xf32>
    %226 = tpu.matmul %223, %213, %cst_79 {dimension_numbers = #tpu.dot_dimension_numbers<[2], [1], [1], [2], [0, 0, 0, 1, 1, 2], [0], [0]>} : vector<6x16x16xbf16>, vector<6x16x16xbf16>, vector<6x16x16xf32> -> vector<6x16x16xf32>
    %227 = arith.addf %225, %226 : vector<6x16x16xf32>
    %228 = arith.addf %227, %142 : vector<6x16x16xf32>
    %c0_80 = arith.constant 0 : index
    %c0_81 = arith.constant 0 : index
    %229 = vector.load %arg8[%c0_80, %c0_81] : memref<32x32xf32, #tpu.memory_space<vmem>>, vector<32x32xf32>
    %230 = arith.mulf %91, %91 : vector<32x32xf32>
    %cst_82 = arith.constant dense<0.000000e+00> : vector<32xf32>
    %231 = vector.multi_reduction <add>, %230, %cst_82 [1] : vector<32x32xf32> to vector<32xf32>
    %232 = vector.shape_cast %231 : vector<32xf32> to vector<32x1xf32>
    %233 = math.sqrt %232 : vector<32x1xf32>
    %234 = arith.mulf %93, %93 : vector<32x32xf32>
    %cst_83 = arith.constant dense<0.000000e+00> : vector<32xf32>
    %235 = vector.multi_reduction <add>, %234, %cst_83 [1] : vector<32x32xf32> to vector<32xf32>
    %236 = vector.shape_cast %235 : vector<32xf32> to vector<32x1xf32>
    %237 = math.sqrt %236 : vector<32x1xf32>
    %238 = arith.mulf %95, %95 : vector<32x32xf32>
    %cst_84 = arith.constant dense<0.000000e+00> : vector<32xf32>
    %239 = vector.multi_reduction <add>, %238, %cst_84 [0] : vector<32x32xf32> to vector<32xf32>
    %240 = vector.shape_cast %239 : vector<32xf32> to vector<1x32xf32>
    %241 = math.sqrt %240 : vector<1x32xf32>
    %242 = vector.extract_strided_slice %228 {offsets = [0, 0, 0], sizes = [2, 16, 16], strides = [1, 1, 1]} : vector<6x16x16xf32> to vector<2x16x16xf32>
    %243 = vector.shape_cast %242 : vector<2x16x16xf32> to vector<32x16xf32>
    %244 = tpu.concatenate %243, %243 in 1 : vector<32x16xf32>, vector<32x16xf32> -> vector<32x32xf32>
    %245 = arith.mulf %244, %229 : vector<32x32xf32>
    %246 = vector.extract_strided_slice %228 {offsets = [2, 0, 0], sizes = [2, 16, 16], strides = [1, 1, 1]} : vector<6x16x16xf32> to vector<2x16x16xf32>
    %247 = vector.shape_cast %246 : vector<2x16x16xf32> to vector<32x16xf32>
    %248 = tpu.concatenate %247, %247 in 1 : vector<32x16xf32>, vector<32x16xf32> -> vector<32x32xf32>
    %249 = arith.mulf %248, %229 : vector<32x32xf32>
    %250 = vector.extract_strided_slice %228 {offsets = [4, 0, 0], sizes = [2, 16, 16], strides = [1, 1, 1]} : vector<6x16x16xf32> to vector<2x16x16xf32>
    %251 = vector.shape_cast %250 : vector<2x16x16xf32> to vector<32x16xf32>
    %252 = tpu.concatenate %251, %251 in 1 : vector<32x16xf32>, vector<32x16xf32> -> vector<32x32xf32>
    %253 = arith.mulf %252, %229 : vector<32x32xf32>
    %254 = arith.mulf %245, %245 : vector<32x32xf32>
    %cst_85 = arith.constant dense<0.000000e+00> : vector<32xf32>
    %255 = vector.multi_reduction <add>, %254, %cst_85 [1] : vector<32x32xf32> to vector<32xf32>
    %256 = vector.shape_cast %255 : vector<32xf32> to vector<32x1xf32>
    %257 = math.sqrt %256 : vector<32x1xf32>
    %cst_86 = arith.constant 9.99999974E-6 : f32
    %258 = vector.broadcast %cst_86 : f32 to vector<32x1xf32>
    %259 = arith.addf %257, %258 : vector<32x1xf32>
    %260 = tpu.reciprocal %259 {approx = true} : vector<32x1xf32> -> vector<32x1xf32>
    %261 = arith.mulf %233, %260 : vector<32x1xf32>
    %262 = vector.broadcast %261 : vector<32x1xf32> to vector<32x32xf32>
    %263 = arith.mulf %245, %262 : vector<32x32xf32>
    %264 = arith.mulf %249, %249 : vector<32x32xf32>
    %cst_87 = arith.constant dense<0.000000e+00> : vector<32xf32>
    %265 = vector.multi_reduction <add>, %264, %cst_87 [1] : vector<32x32xf32> to vector<32xf32>
    %266 = vector.shape_cast %265 : vector<32xf32> to vector<32x1xf32>
    %267 = math.sqrt %266 : vector<32x1xf32>
    %cst_88 = arith.constant 9.99999974E-6 : f32
    %268 = vector.broadcast %cst_88 : f32 to vector<32x1xf32>
    %269 = arith.addf %267, %268 : vector<32x1xf32>
    %270 = tpu.reciprocal %269 {approx = true} : vector<32x1xf32> -> vector<32x1xf32>
    %271 = arith.mulf %237, %270 : vector<32x1xf32>
    %272 = vector.broadcast %271 : vector<32x1xf32> to vector<32x32xf32>
    %273 = arith.mulf %249, %272 : vector<32x32xf32>
    %274 = arith.mulf %253, %253 : vector<32x32xf32>
    %cst_89 = arith.constant dense<0.000000e+00> : vector<32xf32>
    %275 = vector.multi_reduction <add>, %274, %cst_89 [0] : vector<32x32xf32> to vector<32xf32>
    %276 = vector.shape_cast %275 : vector<32xf32> to vector<1x32xf32>
    %277 = math.sqrt %276 : vector<1x32xf32>
    %cst_90 = arith.constant 9.99999974E-6 : f32
    %278 = vector.broadcast %cst_90 : f32 to vector<1x32xf32>
    %279 = arith.addf %277, %278 : vector<1x32xf32>
    %280 = tpu.reciprocal %279 {approx = true} : vector<1x32xf32> -> vector<1x32xf32>
    %281 = arith.mulf %241, %280 : vector<1x32xf32>
    %282 = vector.broadcast %281 : vector<1x32xf32> to vector<32x32xf32>
    %283 = arith.mulf %253, %282 : vector<32x32xf32>
    %284 = arith.truncf %263 : vector<32x32xf32> to vector<32x32xbf16>
    %cst_91 = arith.constant dense<0.000000e+00> : vector<32x8xf32>
    %285 = tpu.matmul %284, %87, %cst_91 {dimension_numbers = #tpu.dot_dimension_numbers<[1], [1], [0], [0], [0, 0, 1, 0], [], []>} : vector<32x32xbf16>, vector<8x32xbf16>, vector<32x8xf32> -> vector<32x8xf32>
    %286 = arith.truncf %273 : vector<32x32xf32> to vector<32x32xbf16>
    %cst_92 = arith.constant dense<0.000000e+00> : vector<32x8xf32>
    %287 = tpu.matmul %286, %87, %cst_92 {dimension_numbers = #tpu.dot_dimension_numbers<[1], [1], [0], [0], [0, 0, 1, 0], [], []>} : vector<32x32xbf16>, vector<8x32xbf16>, vector<32x8xf32> -> vector<32x8xf32>
    %288 = arith.negf %285 : vector<32x8xf32>
    %289 = math.exp %288 : vector<32x8xf32>
    %cst_93 = arith.constant 1.000000e+00 : f32
    %290 = vector.broadcast %cst_93 : f32 to vector<32x8xf32>
    %291 = arith.addf %290, %289 : vector<32x8xf32>
    %292 = arith.divf %290, %291 : vector<32x8xf32>
    %293 = arith.mulf %285, %292 : vector<32x8xf32>
    %294 = arith.mulf %293, %287 : vector<32x8xf32>
    %295 = arith.truncf %294 : vector<32x8xf32> to vector<32x8xbf16>
    %296 = arith.truncf %283 : vector<32x32xf32> to vector<32x32xbf16>
    %cst_94 = arith.constant dense<0.000000e+00> : vector<8x32xf32>
    %297 = tpu.matmul %295, %296, %cst_94 {dimension_numbers = #tpu.dot_dimension_numbers<[0], [0], [1], [1], [0, 1, 1, 1], [], []>} : vector<32x8xbf16>, vector<32x32xbf16>, vector<8x32xf32> -> vector<8x32xf32>
    %298 = arith.mulf %297, %297 : vector<8x32xf32>
    %cst_95 = arith.constant dense<0.000000e+00> : vector<8x2xf32>
    %299 = tpu.matmul %298, %50, %cst_95 {dimension_numbers = #tpu.dot_dimension_numbers<[1], [1], [0], [0], [0, 0, 1, 0], [], []>} : vector<8x32xf32>, vector<2x32xf32>, vector<8x2xf32> -> vector<8x2xf32>
    %cst_96 = arith.constant 6.250000e-02 : f32
    %300 = vector.broadcast %cst_96 : f32 to vector<8x2xf32>
    %301 = arith.mulf %299, %300 : vector<8x2xf32>
    %cst_97 = arith.constant 9.99999974E-6 : f32
    %302 = vector.broadcast %cst_97 : f32 to vector<8x2xf32>
    %303 = arith.addf %301, %302 : vector<8x2xf32>
    %304 = math.rsqrt %303 : vector<8x2xf32>
    %cst_98 = arith.constant dense<0.000000e+00> : vector<8x32xf32>
    %305 = tpu.matmul %304, %50, %cst_98 {dimension_numbers = #tpu.dot_dimension_numbers<[1], [0], [0], [1], [0, 0, 1, 1], [], []>} : vector<8x2xf32>, vector<2x32xf32>, vector<8x32xf32> -> vector<8x32xf32>
    %306 = arith.mulf %297, %305 : vector<8x32xf32>
    %c0_99 = arith.constant 0 : index
    %c0_100 = arith.constant 0 : index
    %307 = vector.load %arg10[%c0_99, %c0_100] : memref<1x32xf32, #tpu.memory_space<vmem>>, vector<1x32xf32>
    %308 = vector.broadcast %307 : vector<1x32xf32> to vector<8x32xf32>
    %309 = arith.mulf %306, %308 : vector<8x32xf32>
    %310 = arith.truncf %309 : vector<8x32xf32> to vector<8x32xbf16>
    %c0_101 = arith.constant 0 : index
    %c0_102 = arith.constant 0 : index
    %c0_103 = arith.constant 0 : index
    %311 = vector.load %arg11[%c0_101, %c0_102, %c0_103] : memref<1x8x32xbf16, #tpu.memory_space<vmem>>, vector<1x8x32xbf16>
    %312 = vector.shape_cast %311 : vector<1x8x32xbf16> to vector<8x32xbf16>
    %313 = vector.shape_cast %310 : vector<8x32xbf16> to vector<1x8x32xbf16>
    tpu.vector_store %arg11[%c0_101, %c0_102, %c0_103], %313 {strides = array<i32>} : memref<1x8x32xbf16, #tpu.memory_space<vmem>>, vector<1x8x32xbf16>,
    return
  }
  func.func @transform_0(%arg0: i32, %arg1: i32) -> (i32, i32, i32) {
    %c0_i32 = arith.constant 0 : i32
    %c0_i32_0 = arith.constant 0 : i32
    return %arg0, %c0_i32, %arg1 : i32, i32, i32
  }
  func.func @transform_1(%arg0: i32, %arg1: i32) -> (i32, i32, i32, i32) {
    %c0_i32 = arith.constant 0 : i32
    %c0_i32_0 = arith.constant 0 : i32
    %c0_i32_1 = arith.constant 0 : i32
    return %arg0, %arg1, %c0_i32, %c0_i32_0 : i32, i32, i32, i32
  }
  func.func @transform_2(%arg0: i32, %arg1: i32) -> (i32, i32) {
    %c0_i32 = arith.constant 0 : i32
    %c0_i32_0 = arith.constant 0 : i32
    return %c0_i32, %arg1 : i32, i32
  }
  func.func @transform_3(%arg0: i32, %arg1: i32) -> (i32, i32, i32) {
    %c0_i32 = arith.constant 0 : i32
    %c0_i32_0 = arith.constant 0 : i32
    %c0_i32_1 = arith.constant 0 : i32
    return %arg1, %c0_i32, %c0_i32_0 : i32, i32, i32
  }
  func.func @transform_4(%arg0: i32, %arg1: i32) -> (i32, i32, i32) {
    %c0_i32 = arith.constant 0 : i32
    %c0_i32_0 = arith.constant 0 : i32
    %c0_i32_1 = arith.constant 0 : i32
    return %arg1, %c0_i32, %c0_i32_0 : i32, i32, i32
  }
  func.func @transform_5(%arg0: i32, %arg1: i32) -> (i32, i32, i32) {
    %c0_i32 = arith.constant 0 : i32
    %c0_i32_0 = arith.constant 0 : i32
    %c0_i32_1 = arith.constant 0 : i32
    return %arg1, %c0_i32, %c0_i32_0 : i32, i32, i32
  }
  func.func @transform_6(%arg0: i32, %arg1: i32) -> (i32, i32) {
    %c0_i32 = arith.constant 0 : i32
    %c0_i32_0 = arith.constant 0 : i32
    %c0_i32_1 = arith.constant 0 : i32
    return %c0_i32, %c0_i32_0 : i32, i32
  }
  func.func @transform_7(%arg0: i32, %arg1: i32) -> (i32, i32) {
    %c0_i32 = arith.constant 0 : i32
    %c0_i32_0 = arith.constant 0 : i32
    %c0_i32_1 = arith.constant 0 : i32
    return %c0_i32, %c0_i32_0 : i32, i32
  }
  func.func @transform_8(%arg0: i32, %arg1: i32) -> (i32, i32) {
    %c0_i32 = arith.constant 0 : i32
    %c0_i32_0 = arith.constant 0 : i32
    return %c0_i32, %arg1 : i32, i32
  }
  func.func @transform_9(%arg0: i32, %arg1: i32) -> (i32, i32, i32) {
    %c0_i32 = arith.constant 0 : i32
    %c0_i32_0 = arith.constant 0 : i32
    return %arg0, %c0_i32, %arg1 : i32, i32, i32
  }
}

</mosaic_0001>

<bundles_post_ra>
// kernel: bidirectional_lact_swiglu_forward.4
= control target key start
LH: loop header
LB: loop body
LE: loop exit
PB: predicated region body
PF: predicated region fallthrough
CT: control target
= control target key end

     0   :  { %vm16_vm0 = vcmask 785408   ;;  %v138_v0 = vmov 0.0   ;;  %vm139_vm1 = vmmov 0   ;;  %vm44_vm2 = vcmask 261120   ;;  %s174_s1 = inlined_call_operand.vmem [shape: bf16[32,96], index: 1, kind: input, shape index: {}]   ;;  %s175_s0 = inlined_call_operand.vmem [shape: bf16[16,32], index: 0, kind: input, shape index: {}]   ;;  %s176_s2 = inlined_call_operand.vmem [shape: bf16[16,96], index: 2, kind: output, shape index: {}]  }
   0x1   :  { %125 = vmatprep.subr.bf16.mxu0 %v138_v0  ;;  %v135_v1 = vld [vmem:[%s174_s1] sm:$0xff]   ;;  %129 = vmatprep.mubr.msk.bf16.mxu0 %vm139_vm1, %v138_v0  ;;  %17 = vst.msk [vmem:[#allocation2] sm:$0xff] %vm16_vm0, %v138_v0  ;;  %18 = vst.msk [vmem:[#allocation2 + $0x8] sm:$0xff] %vm16_vm0, %v138_v0  ;;  %v136_v2 = vld [vmem:[%s174_s1 + $0x8] sm:$0xff]   ;;  %vm107_vm3 = vcmask 781312  }
   0x2   :  { %126 = vmatpush3.bf16.msra.mxu0 %v135_v1  ;;  %v137_v3 = vld [vmem:[%s175_s0] sm:$0xff]  }
   0x3   :  { %127 = vmatprep.subr.bf16.mxu0 %v138_v0 }
   0x6   :  { %128 = vmatpush3.bf16.msra.mxu0 %v136_v2 }
   0x8   :  { %v19_v4 = vld [vmem:[#allocation2] sm:$0xff]  ;;  %v20_v6 = vld [vmem:[#allocation2 + $0x8] sm:$0xff] }
   0x9   :  { %130 = vmatmul.mubr.msk.bf16.vlgmr.msra.gmra.mrb[0].mxu0 %vm44_vm2, %v137_v3 }
  0xdc   :  { %v82_v5 = vpop.f32.mrb[0].mxu0 }
  0xdd   :  { %v89_v7 = vadd.f32 %v82_v5, %v19_v4  ;;  %v131_v8 = vpop.f32.mrb[1].mxu0 }
  0xde   :  { %v85_v9 = vpop.f32.mrb[2].mxu0 }
  0xdf   :  { %92 = vst.msk [vmem:[#allocation2] sm:$0xff] %vm16_vm0, %v89_v7  ;;  %v90_v10 = vadd.f32 %v85_v9, %v20_v6  ;;  %v132_v11 = vpop.f32.mrb[3].mxu0 }
  0xe1   :  { %93 = vst.msk [vmem:[#allocation2 + $0x8] sm:$0xff] %vm16_vm0, %v90_v10 }
  0xe6   :  { %v97_v12 = vld [vmem:[#allocation2] sm:$0xff] }
  0xe7   :  { %v120_v13 = vpack.c.bf16 %v97_v12, %v97_v12 }
  0xe8   :  { %v98_v14 = vld [vmem:[#allocation2 + $0x8] sm:$0xff] }
  0xe9   :  { %108 = vst.msk [vmem:[%s176_s2] sm:$0xf] %vm107_vm3, %v120_v13  ;;  %v121_v15 = vpack.c.bf16 %v98_v14, %v98_v14 }
  0xeb   :  { %109 = vst.msk [vmem:[%s176_s2 + $0x4] sm:$0xf] %vm107_vm3, %v121_v15 }

// kernel: bidirectional_lact_swiglu_forward.5
= control target key start
LH: loop header
LB: loop body
LE: loop exit
PB: predicated region body
PF: predicated region fallthrough
CT: control target
= control target key end

     0   :  { %vm26_vm0 = vcmask 261120   ;;  %vm15_vm1 = vcmask 48128   ;;  %v152_v3 = vmov 0.0   ;;  %s200_s1 = inlined_call_operand.vmem [shape: f32[32,6], index: 1, kind: input, shape index: {}]   ;;  %s201_s0 = inlined_call_operand.vmem [shape: f32[16,32], index: 0, kind: input, shape index: {}]   ;;  %s202_s2 = inlined_call_operand.vmem [shape: f32[16,6], index: 2, kind: output, shape index: {}]  }
   0x1   :  { %v22_v0 = vld [vmem:[%s200_s1] sm:$0xff]  ;;  %v23_v1 = vld [vmem:[%s200_s1 + $0x8] sm:$0xff]  ;;  %v24_v2 = vld [vmem:[%s200_s1 + $0x10] sm:$0xff]  ;;  %17 = vst.msk [vmem:[#allocation2 + $0x8] sm:$0xff] %vm15_vm1, %v152_v3 }
   0x2   :  { %16 = vst.msk [vmem:[#allocation2] sm:$0xff] %vm15_vm1, %v152_v3  ;;  %v143_v4 = vpack.c.bf16 %v23_v1, %v22_v0  ;;  %v25_v5 = vld [vmem:[%s200_s1 + $0x18] sm:$0xff]  ;;  %v20_v6 = vld [vmem:[%s201_s0] sm:$0xff]  ;;  %v21_v8 = vld [vmem:[%s201_s0 + $0x8] sm:$0xff] }
   0x3   :  { %v147_v7 = vpack.c.bf16 %v25_v5, %v24_v2  ;;  %140 = vmatprep.mubr.msk.f32.mxu0 %vm26_vm0, %v20_v6 }
   0x4   :  { %144 = vmatprep.subr.bf16.mxu0 %v143_v4 }
   0x5   :  { %146 = vmatpush3.bf16.msra.mxu0 %v143_v4 }
   0x6   :  { %148 = vmatprep.subr.bf16.mxu0 %v147_v7 }
   0x8   :  { %v19_v9 = vld [vmem:[#allocation2 + $0x8] sm:$0xff] }
   0x9   :  { %150 = vmatpush3.bf16.msra.mxu0 %v147_v7  ;;  %v18_v10 = vld [vmem:[#allocation2] sm:$0xff] }
   0xc   :  { %141 = vmatmul.mubr.msk.f32.vlgmr.msra.gmra.mrb[0].mxu0 %vm26_vm0, %v21_v8 }
  0xdf   :  { %v142_v11 = vpop.f32.mrb[0].mxu0 }
  0xe0   :  { %v109_v12 = vadd.f32 %v142_v11, %v19_v9  ;;  %v99_v13 = vpop.f32.mrb[1].mxu0 }
  0xe1   :  { %v108_v14 = vadd.f32 %v99_v13, %v18_v10 }
  0xe2   :  { %112 = vst.msk [vmem:[#allocation2 + $0x8] sm:$0xff] %vm15_vm1, %v109_v12 }
  0xe3   :  { %111 = vst.msk [vmem:[#allocation2] sm:$0xff] %vm15_vm1, %v108_v14 }
  0xe9   :  { %v117_v15 = vld [vmem:[#allocation2 + $0x8] sm:$0xff] }
  0xea   :  { %119 = vst.msk [vmem:[%s202_s2 + $0x8] sm:$0xff] %vm15_vm1, %v117_v15  ;;  %v116_v16 = vld [vmem:[#allocation2] sm:$0xff] }
  0xeb   :  { %118 = vst.msk [vmem:[%s202_s2] sm:$0xff] %vm15_vm1, %v116_v16 }

// kernel: bidirectional_lact_swiglu_forward.7
= control target key start
LH: loop header
LB: loop body
LE: loop exit
PB: predicated region body
PF: predicated region fallthrough
CT: control target
= control target key end

     0   :  { %v164_v1 = vmov 0.0   ;;  %vm165_vm0 = vmmov 0   ;;  %vm17_vm1 = vcmask 261120   ;;  %s212_s0 = inlined_call_operand.vmem [shape: bf16[16,32], index: 0, kind: input, shape index: {}]   ;;  %s213_s1 = inlined_call_operand.vmem [shape: bf16[32,32], index: 1, kind: input, shape index: {}]   ;;  %s214_s2 = inlined_call_operand.hbm [shape: f32[16,32], index: 2, kind: output, shape index: {}]  }
   0x1   :  { %v137_v0 = vld [vmem:[%s213_s1] sm:$0xff]   ;;  %124 = vmatprep.subr.bf16.mxu0 %v164_v1  ;;  %v138_v2 = vld [vmem:[%s213_s1 + $0x8] sm:$0xff]   ;;  %128 = vmatprep.mubr.msk.bf16.mxu0 %vm165_vm0, %v164_v1  ;;  %18 = vst.msk [vmem:[#allocation2] sm:$0xff] %vm17_vm1, %v164_v1  ;;  %19 = vst.msk [vmem:[#allocation2 + $0x8] sm:$0xff] %vm17_vm1, %v164_v1 }
   0x2   :  { %125 = vmatpush3.bf16.msra.mxu0 %v137_v0 }
   0x3   :  { %126 = vmatprep.subr.bf16.mxu0 %v164_v1 }
   0x4   :  { %7 = vsyncpa [#allocation4], 0  ;;  %v139_v3 = vld [vmem:[%s212_s0] sm:$0xff]   ;;  %s166_s1 = smov [#allocation3]  }
   0x5   :  { %s106_s15 = sshll.u32 %s166_s1, 4  ;;  %s107_s15 = int_to_ptr.vmem [resolvable:$true] %s106_s15 }
   0x6   :  { %127 = vmatpush3.bf16.msra.mxu0 %v138_v2  ;;  %s140_s0 = scalar_lea.vmem %s107_s15, 256  ;;  %p145_p1 = scmp.lt.s32.totalorder %s107_s15, %s107_s15 }
   0x7   :  { %p141_p0 = scmp.ne.s32.totalorder %s107_s15, %s140_s0  ;;  %p146_p2 = scmp.lt.s32.totalorder %s140_s0, %s140_s0 }
   0x8   :  { %v20_v4 = vld [vmem:[#allocation2] sm:$0xff]  ;;  %v21_v6 = vld [vmem:[#allocation2 + $0x8] sm:$0xff] }
   0x9   :  { %129 = vmatmul.mubr.msk.bf16.vlgmr.msra.gmra.mrb[0].mxu0 %vm17_vm1, %v139_v3  ;;  %p147_p3 = por %p146_p2, %p145_p1 }
   0xb   :  { %p148_p4 = pnand %p147_p3, %p141_p0 }
  0xdc   :  { %v83_v5 = vpop.f32.mrb[0].mxu0 }
  0xdd   :  { %v90_v7 = vadd.f32 %v83_v5, %v20_v4  ;;  %v130_v8 = vpop.f32.mrb[1].mxu0 }
  0xde   :  { %v86_v9 = vpop.f32.mrb[2].mxu0 }
  0xdf   :  { %92 = vst.msk [vmem:[#allocation2] sm:$0xff] %vm17_vm1, %v90_v7  ;;  %v91_v10 = vadd.f32 %v86_v9, %v21_v6  ;;  %v131_v11 = vpop.f32.mrb[3].mxu0 }
  0xe1   :  { %93 = vst.msk [vmem:[#allocation2 + $0x8] sm:$0xff] %vm17_vm1, %v91_v10 }
  0xe6   :  { %v97_v12 = vld [vmem:[#allocation2] sm:$0xff] }
  0xe7   :  { %99 = vst.msk [vmem:[#allocation3] sm:$0xff] %vm17_vm1, %v97_v12 }
  0xe8   :  { %v98_v13 = vld [vmem:[#allocation2 + $0x8] sm:$0xff] }
  0xe9   :  { %100 = vst.msk [vmem:[#allocation3 + $0x8] sm:$0xff] %vm17_vm1, %v98_v13 }
  0xea   :  { %151 = shalt.err (!%p148_p4)
}
  0xeb   :  { %s152_s18 = scalar_lea.hbm %s214_s2, 256 }
  0xec   :  { %p153_p5 = scmp.ne.s32.totalorder %s214_s2, %s152_s18  ;;  %p156_p6 = scmp.lt.u32.totalorder %s152_s18, %s214_s2 }
  0xee   :  { %p158_p7 = pnand %p156_p6, %p153_p5 }
  0xf0   :  { %161 = shalt.err (!%p158_p7)
}
  0xf1   :  { %s167_s23 = smov 128   ;;  %s168_s24 = smov 8  }
  0xf2   :  { %112 = dma.vmem_to_hbm [thread:$0]  %s107_s15, 256, %s214_s2, [#allocation4], %s167_s23, %s167_s23, %s168_s24  }
  0xf3   :  { %162 = dma.done.wait [#allocation4], 256  }
  0xf4   :  { %163 = vsyncadd [#allocation4], 4294967040 }
  0xf5   :  { %116 = vsyncpa [#allocation4], 1 }

// kernel: bidirectional_lact_swiglu_forward.6
= control target key start
LH: loop header
LB: loop body
LE: loop exit
PB: predicated region body
PF: predicated region fallthrough
CT: control target
= control target key end

     0   :  { %s8251_s30 = smov 0   ;;  %s8253_s10 = smov 0   ;;  %s9845_s0 = inlined_call_operand.vmem [shape: bf16[2,8,96], index: 0, kind: input, shape index: {}]   ;;  %s9846_s1 = inlined_call_operand.vmem [shape: f32[2,1,8,6], index: 1, kind: input, shape index: {}]   ;;  %s9847_s2 = inlined_call_operand.vmem [shape: f32[4,96], index: 2, kind: input, shape index: {}]   ;;  %s9848_s3 = inlined_call_operand.vmem [shape: f32[1,32,32], index: 3, kind: input, shape index: {}]   ;;  %s9849_s4 = inlined_call_operand.vmem [shape: f32[1,32,32], index: 4, kind: input, shape index: {}]   ;;  %s9850_s5 = inlined_call_operand.vmem [shape: f32[1,32,32], index: 5, kind: input, shape index: {}]   ;;  %s9851_s6 = inlined_call_operand.vmem [shape: f32[32,32], index: 6, kind: input, shape index: {}]   ;;  %s9852_s7 = inlined_call_operand.vmem [shape: f32[2,32], index: 7, kind: input, shape index: {}]   ;;  %s9853_s8 = inlined_call_operand.vmem [shape: f32[1,32], index: 8, kind: input, shape index: {}]   ;;  %s9854_s9 = inlined_call_operand.vmem [shape: bf16[2,8,32], index: 9, kind: output, shape index: {}]  }
   0x1   :  { %s8255_s11 = smov 0  }
   0x2 LB: > { %s31_s12 = sadd.s32 1, %s8186_s10  ;;  %p6982_p0 = scmp.ge.s32.totalorder %s8190_s11, 1  ;;  %s8190_s11 = sphi %s8255_s11, %s19_s11   ;;  %s8186_s10 = sphi %s8253_s10, %s9856_s10   ;;  %s8182_s30 = sphi %s8251_s30, %s9855_s30  }
   0x3   : > { %p33_p1 = scmp.ge.s32.totalorder %s31_s12, 2  ;;  %p366_p2 = scmp.lt.s32.totalorder %s8190_s11, 3 }
   0x5   : > { %s9858_s12 = smov (%p33_p1, %s31_s12), 0  ;;  %p367_p3 = pnand %p6982_p0, %p366_p2 }
   0x6   : > { %p435_p4 = scmp.lt.s32.totalorder (!%p367_p3), %s8182_s30, 1  ;;  %v482_v0 = vlaneseq (!%p367_p3)  ;;  %vm545_vm0 = vcmask (!%p367_p3), 1041408   ;;  %v8192_v1 = vmov (!%p367_p3), 0.0   ;;  %v8273_v2 = vld [vmem:[%s9852_s7] sm:$0x3] (!%p367_p3)  ;;  %vm8193_vm1 = vmmov (!%p367_p3), 0  }
   0x7   : > { %370 = sbr.rel (%p367_p3) target bundleno = 6281 (0x1889), region = 56  ;;  %7348 = vmatprep.subr.mxu0 (!%p367_p3), %v8192_v1  ;;  %7353 = vmatprep.subr.mxu1 (!%p367_p3), %v8192_v1  ;;  %v481_v4 = vld [vmem:[%s9847_s2] sm:$0xf] (!%p367_p3)  ;;  %vm541_vm5 = vcmask (!%p367_p3), 15360   ;;  %s8194_s25 = smov (!%p367_p3), 124   ;;  %vm768_vm6 = vcmask (!%p367_p3), 261120  }
   0x8   : > { %v483_v3 = vshrl.u32 (!%p367_p3), %v482_v0, 7  ;;  %7349 = vmatpush3.msk.msra.mxu0 (!%p367_p3), %vm545_vm0, %v8273_v2  ;;  %7350 = vmatprep.mubr.msk.f32.mxu0 (!%p367_p3), %vm8193_vm1, %v8192_v1  ;;  %s8195_s26 = smov (!%p367_p3), 96   ;;  %s8196_s27 = smov (!%p367_p3), 126   ;;  %vm1376_vm11 = vcmask (!%p367_p3), 1043456   ;;  %vm1369_vm12 = vcmask (!%p367_p3), 64512   ;;  %vm1591_vm13 = vcmask (!%p367_p3), 130048  }
   0x9   : > { %7358 = vmatprep.subr.mxu0 (!%p367_p3), %v8192_v1  ;;  %7354 = vmatpush3.msk.msra.mxu1 (!%p367_p3), %vm545_vm0, %v8273_v2  ;;  %s8197_s28 = smov (!%p367_p3), 32   ;;  %s8198_s29 = smov (!%p367_p3), 64  }
   0xa   : > { %v486_v5 = vsub.s32 (!%p367_p3), 3, %v483_v3  ;;  %v496_v6 = vsub.s32 (!%p367_p3), 2, %v483_v3  ;;  %7355 = vmatprep.mubr.msk.f32.mxu1 (!%p367_p3), %vm8193_vm1, %v8192_v1  ;;  %7363 = vmatprep.subr.mxu1 (!%p367_p3), %v8192_v1  ;;  %v507_v7 = vsub.s32 (!%p367_p3), 1, %v483_v3  ;;  %v518_v11 = vsub.s32 (!%p367_p3), 0, %v483_v3 }
   0xb   : > { %vm490_vm2 = vcmp.ge.s32.totalorder (!%p367_p3), %v483_v3, 1  ;;  %vm501_vm3 = vcmp.ge.s32.totalorder (!%p367_p3), %v483_v3, 2  ;;  %vm512_vm4 = vcmp.ge.s32.totalorder (!%p367_p3), %v483_v3, 3 }
   0xc   : > { %v487_v8 = vrot.slane (!%p367_p3), %v481_v4, %v486_v5  ;;  %v497_v14 = vrot.slane (!%p367_p3), %v481_v4, %v496_v6  ;;  %v508_v17 = vrot.slane (!%p367_p3), %v481_v4, %v507_v7  ;;  %v519_v21 = vrot.slane (!%p367_p3), %v481_v4, %v518_v11 }
   0xe   : > { %s9860_s30 = smov (!%p435_p4, %s8182_s30), 1 }
   0xf   : > { %s6984_s17 = sshll.u32 %s9860_s30, 3  ;;  %s6983_s18 = sshll.u32 %s9860_s30, 2 }
  0x10   : > { %s448_s21 = scalar_lea.vmem %s9846_s1, %s6984_s17  ;;  %s441_s24 = scalar_lea.vmem %s9845_s0, %s6983_s18 }
  0x11   : > { %v530_v9 = vld [vmem:[%s448_s21] sm:$0xff] }
  0x12   : > { %v479_v10 = vld [vmem:[%s441_s24] sm:$0xf]  ;;  %v531_v12 = vadd.f32 -4.600166, %v530_v9 }
  0x13   : > { %v480_v13 = vunpack.c.l.bf16 %v479_v10 }
  0x14   : > { %v533_v15 = vand.u32 2147483647, %v531_v12  ;;  %v532_v38 = vmax.f32 %v531_v12, 0.0  ;;  %v1091_v12 = vld [vmem:[%s9848_s3] sm:$0xff] }
  0x15   : > { %v489_v16 = vrot.slane %v480_v13, 7  ;;  %v488_v18 = vmul.f32 %v487_v8, %v480_v13  ;;  %v500_v19 = vrot.slane %v480_v13, 6  ;;  %v511_v20 = vrot.slane %v480_v13, 5  ;;  %v1092_v13 = vld [vmem:[%s9848_s3 + $0x8] sm:$0xff] }
  0x16   : > { %v534_v22 = vsub.f32 0.0, %v533_v15 }
  0x17   : > { %v493_v23 = vsel %vm490_vm2, %v489_v16, 0.0  ;;  %v504_v25 = vsel %vm501_vm3, %v500_v19, 0.0  ;;  %v515_v26 = vsel %vm512_vm4, %v511_v20, 0.0  ;;  %v1099_v19 = vld [vmem:[%s9850_s5] sm:$0xff]  ;;  %v1100_v20 = vld [vmem:[%s9850_s5 + $0x8] sm:$0xff] }
  0x18   : > { %v498_v24 = vmul.f32 %v497_v14, %v493_v23  ;;  %v535_v27 = vmul.f32 1.442695, %v534_v22  ;;  %v509_v28 = vmul.f32 %v508_v17, %v504_v25  ;;  %v520_v30 = vmul.f32 %v519_v21, %v515_v26  ;;  %v1101_v25 = vld [vmem:[%s9850_s5 + $0x10] sm:$0xff]  ;;  %v1102_v26 = vld [vmem:[%s9850_s5 + $0x18] sm:$0xff] }
  0x19   : > { %v1103_v14 = vpack.c.bf16 %v1092_v13, %v1091_v12  ;;  %v6190_v21 = vmul.f32 %v1099_v19, %v1099_v19  ;;  %v6191_v22 = vmul.f32 %v1100_v20, %v1100_v20 }
  0x1a   : > { %v499_v29 = vadd.f32 %v498_v24, %v488_v18  ;;  %8031 = vpow2.f32 %v535_v27 }
  0x1b   : > { %v6194_v23 = vsel %vm768_vm6, %v6190_v21, 0.0  ;;  %v6195_v24 = vsel %vm768_vm6, %v6191_v22, 0.0 }
  0x1c   : > { %v510_v31 = vadd.f32 %v509_v28, %v499_v29  ;;  %v6196_v28 = vadd.f32 %v6195_v24, %v6194_v23  ;;  %v6192_v29 = vmul.f32 %v1101_v25, %v1101_v25 }
  0x1e   : > { %v521_v32 = vadd.f32 %v520_v30, %v510_v31  ;;  %v6193_v30 = vmul.f32 %v1102_v26, %v1102_v26 }
  0x20   : > { %v6986_v33 = vmul.f32 -1.442695, %v521_v32 }
  0x22   : > { %8033 = vpow2.f32 %v6986_v33  ;;  %v1096_v33 = vld [vmem:[%s9849_s4 + $0x8] sm:$0xff] }
  0x24   : > { %v8032_v34 = vpop.eup %8031 }
  0x25   : > { %v537_v35 = vadd.f32 1.0, %v8032_v34  ;;  %v6197_v34 = vsel %vm768_vm6, %v6192_v29, 0.0 }
  0x27   : > { %8035 = vlog2.f32 %v537_v35  ;;  %v6199_v35 = vsel %vm768_vm6, %v6193_v30, 0.0 }
  0x2c   : > { %v8034_v36 = vpop.eup %8033 }
  0x2d   : > { %v525_v37 = vadd.f32 1.0, %v8034_v36 }
  0x2f   : > { %8037 = vrcp.f32 %v525_v37 }
  0x31   : > { %v8036_v39 = vpop.eup %8035 }
  0x32   : > { %v539_v40 = vmul.f32 0.6931472, %v8036_v39 }
  0x34   : > { %v540_v41 = vadd.f32 %v539_v40, %v532_v38  ;;  %v6198_v38 = vadd.f32 %v6197_v34, %v6196_v28 }
  0x36   : > { %693 = vrot.lane.b32.xlu0 %v540_v41, %s8194_s25  ;;  %7351 = vmatmul.mubr.msk.f32.vlgmr.msra.gmra.mrb[0].mxu0 %vm541_vm5, %v540_v41  ;;  %v8380_v39 = vadd.f32 %v6199_v35, %v6198_v38 }
  0x37   : > { %7359 = vmatpush3.msk.msra.mxu0 %vm545_vm0, %v8273_v2  ;;  %7360 = vmatprep.mubr.msk.f32.mxu0 %vm8193_vm1, %v8192_v1 }
  0x38   : > { %7368 = vmatprep.subr.mxu0 %v8192_v1  ;;  %619 = vrot.lane.b32.xlu1 %v540_v41, %s8196_s27 }
  0x39   : > { %v8038_v42 = vpop.eup %8037 }
  0x3a   : > { %v8307_v43 = vmul.f32 %v8038_v42, %v521_v32  ;;  %v1095_v32 = vld [vmem:[%s9849_s4] sm:$0xff]  ;;  %v1093_v42 = vld [vmem:[%s9848_s3 + $0x10] sm:$0xff] }
  0x3b   : > { %v1166_v36 = vpack.c.bf16 %v1096_v33, %v1095_v32 }
  0x3c   : > { %v767_v44 = vmul.f32 %v8307_v43, %v8307_v43  ;;  %v1090_v0 = vpack.c.bf16 %v8307_v43, %v8307_v43 }
  0x3e   : > { %844 = vrot.lane.b32.xlu0 %v767_v44, %s8195_s26 }
  0xa8   : > { %v694_v45 = vpop.permute.xlu0 %693 }
  0xa9   : > { %7361 = vmatmul.mubr.msk.f32.vlgmr.msra.gmra.mrb[2].mxu0 %vm541_vm5, %v694_v45 }
  0xaa   : > { %7369 = vmatpush3.xpose.msk.msra.mxu0 %vm768_vm6, %v8273_v2  ;;  %7370 = vmatprep.mubr.msk.f32.mxu0 %vm8193_vm1, %v8192_v1  ;;  %v620_v59 = vpop.permute.xlu1 %619 }
  0xab   : > { %7378 = vmatprep.subr.mxu0 %v8192_v1  ;;  %7356 = vmatmul.mubr.msk.f32.vlgmr.msra.gmra.mrb[0].mxu1 %vm541_vm5, %v620_v59 }
  0xac   : > { %7364 = vmatpush3.xpose.msk.msra.mxu1 %vm768_vm6, %v8273_v2  ;;  %7365 = vmatprep.mubr.msk.f32.mxu1 %vm8193_vm1, %v8192_v1 }
  0xad   : > { %7373 = vmatprep.subr.mxu1 %v8192_v1 }
  0xaf   : > { %7366 = vmatmul.mubr.msk.f32.vlgmr.msra.gmra.mrb[2].mxu1 %vm768_vm6, %v767_v44  ;;  %v1094_v44 = vld [vmem:[%s9848_s3 + $0x18] sm:$0xff] }
  0xb0   : > { %v845_v46 = vpop.permute.xlu0 %844  ;;  %7374 = vmatpush3.msk.msra.mxu1 %vm545_vm0, %v8273_v2  ;;  %7375 = vmatprep.mubr.msk.f32.mxu1 %vm8193_vm1, %v8192_v1 }
  0xb1   : > { %7371 = vmatmul.mubr.msk.f32.vlgmr.msra.gmra.mrb[4].mxu0 %vm768_vm6, %v845_v46  ;;  %v1097_v46 = vld [vmem:[%s9849_s4 + $0x10] sm:$0xff] }
  0xb2   : > { %7379 = vmatpush3.msk.msra.mxu0 %vm545_vm0, %v8273_v2  ;;  %7380 = vmatprep.mubr.msk.f32.mxu0 %vm8193_vm1, %v8192_v1 }
 0x109   : > { %v8323_v47 = vpop.f32.mrb[0].mxu0 }
 0x10a   : > { %v7352_v48 = vpop.f32.mrb[1].mxu0 }
 0x17c   : > { %v763_v49 = vpop.f32.mrb[2].mxu0 }
 0x17d   : > { %v7362_v50 = vpop.f32.mrb[3].mxu0 }
 0x17e   : > { %v8337_v62 = vpop.f32.mrb[0].mxu1  ;;  %v1223_v50 = vpack.c.bf16 %v1100_v20, %v1099_v19 }
 0x17f   : > { %v7357_v3 = vpop.f32.mrb[1].mxu1 }
 0x182   : > { %v840_v4 = vpop.f32.mrb[2].mxu1 }
 0x183   : > { %v7367_v2 = vpop.f32.mrb[3].mxu1  ;;  %vm920_vm9 = vcmp.eq.f32.partialorder %v840_v4, inf  ;;  %v923_v6 = vand.u32 2147483648, %v840_v4  ;;  %vm922_vm10 = vcmp.eq.f32.partialorder %v840_v4, 0.0 }
 0x184   : > { %v914_v51 = vpop.f32.mrb[4].mxu0 }
 0x185   : > { %8039 = vrsqrt.f32 %v914_v51  ;;  %v7372_v52 = vpop.f32.mrb[5].mxu0  ;;  %vm929_vm7 = vcmp.eq.f32.partialorder %v914_v51, inf  ;;  %v932_v55 = vand.u32 2147483648, %v914_v51  ;;  %vm931_vm8 = vcmp.eq.f32.partialorder %v914_v51, 0.0 }
 0x18f   : > { %v8040_v53 = vpop.eup %8039 }
 0x190   : > { %v928_v54 = vmul.f32 %v8040_v53, %v914_v51 }
 0x192   : > { %v930_v56 = vsel %vm929_vm7, %v914_v51, %v928_v54 }
 0x193   : > { %v933_v57 = vsel %vm931_vm8, %v932_v55, %v930_v56 }
 0x194   : > { %v934_v58 = vadd.f32 1e-05, %v933_v57  ;;  %v1224_v57 = vpack.c.bf16 %v1102_v26, %v1101_v25 }
 0x196   : > { %8041 = vrcp.f32 %v934_v58 }
 0x197   : > { %8043 = vrsqrt.f32 %v840_v4 }
 0x1a0   : > { %v8042_v60 = vpop.eup %8041 }
 0x1a1   : > { %7381 = vmatmul.mubr.msk.f32.vlgmr.msra.gmra.mrb[6].mxu0 %vm541_vm5, %v8042_v60  ;;  %v8044_v5 = vpop.eup %8043 }
 0x1a2   : > { %v919_v7 = vmul.f32 %v8044_v5, %v840_v4  ;;  %7391 = vmatprep.mubr.msk.bf16.mxu0 %vm768_vm6, %v1166_v36 }
 0x1a4   : > { %v921_v8 = vsel %vm920_vm9, %v840_v4, %v919_v7 }
 0x1a5   : > { %v924_v9 = vsel %vm922_vm10, %v923_v6, %v921_v8 }
 0x1a6   : > { %v925_v10 = vadd.f32 1e-05, %v924_v9 }
 0x1a8   : > { %8045 = vrcp.f32 %v925_v10 }
 0x1b2   : > { %v8046_v11 = vpop.eup %8045 }
 0x1b3   : > { %7376 = vmatmul.mubr.msk.f32.vlgmr.msra.gmra.mrb[4].mxu1 %vm541_vm5, %v8046_v11 }
 0x1b4   : > { %7385 = vmatprep.mubr.msk.bf16.mxu1 %vm768_vm6, %v1103_v14 }
 0x274   : > { %v1079_v61 = vpop.f32.mrb[6].mxu0 }
 0x275   : > { %1084 = vrot.lane.b32.xlu1 %v1079_v61, %s8197_s28  ;;  %v7382_v63 = vpop.f32.mrb[7].mxu0 }
 0x279   : > { %1226 = vrot.lane.b32.xlu1 %v1090_v0, %s8198_s29 }
 0x27d   : > { %1359 = vrot.lane.b32.xlu1 %v763_v49, %s8197_s28  ;;  %v1104_v49 = vpack.c.bf16 %v1094_v44, %v1093_v42 }
 0x286   : > { %v8399_v54 = vpop.f32.mrb[4].mxu1 }
 0x287   : > { %v7377_v55 = vpop.f32.mrb[5].mxu1 }
 0x2e7   : > { %v1085_v15 = vpop.permute.xlu1 %1084 }
 0x2e8   : > { %v1087_v16 = vmul.f32 %v1085_v15, %v8307_v43 }
 0x2ea   : > { %v1089_v17 = vpack.c.bf16 %v1087_v16, %v1087_v16 }
 0x2eb   : > { %v1227_v18 = vpop.permute.xlu1 %1226 }
 0x2ec   : > { %1106 = vrot.lane.b32.xlu0 %v1089_v17, %s8195_s26  ;;  %v1235_v51 = vsel %vm768_vm6, %v1227_v18, 0 }
 0x2ef   : > { %v1360_v27 = vpop.permute.xlu1 %1359 }
 0x2f0   : > { %v1362_v31 = vmul.f32 %v1360_v27, %v1087_v16  ;;  %1347 = vrot.lane.b32.xlu0 %v8323_v47, %s8197_s28  ;;  %v1098_v47 = vld [vmem:[%s9849_s4 + $0x18] sm:$0xff] }
 0x2f1   : > { %v1167_v53 = vpack.c.bf16 %v1098_v47, %v1097_v46 }
 0x2f2   : > { %v1363_v37 = vpack.c.bf16 %v1362_v31, %v1362_v31 }
 0x2f4   : > { %1432 = vrot.lane.b32.xlu1 %v1363_v37, %s8195_s26 }
 0x35e   : > { %v1107_v40 = vpop.permute.xlu0 %1106 }
 0x35f   : > { %7989 = vmatprep.subr.msk.bf16.mxu1 %vm768_vm6, %v1107_v40  ;;  %7990 = vmatprep.subr.msk.bf16.mxu0 %vm768_vm6, %v1107_v40  ;;  %v1115_v41 = vsel %vm768_vm6, %v1107_v40, 0 }
 0x360   : > { %7384 = vmatpush3.bf16.xpose.msra.mxu1 %v1115_v41  ;;  %7390 = vmatpush3.bf16.xpose.msra.mxu0 %v1115_v41 }
 0x361   : > { %7991 = vmatprep.subr.msk.bf16.mxu1 %vm768_vm6, %v1227_v18 }
 0x362   : > { %v1348_v45 = vpop.permute.xlu0 %1347 }
 0x363   : > { %v1350_v48 = vmul.f32 %v1348_v45, %v1087_v16 }
 0x365   : > { %v1351_v52 = vpack.c.bf16 %v1350_v48, %v1350_v48 }
 0x366   : > { %v1433_v56 = vpop.permute.xlu1 %1432 }
 0x367   : > { %1367 = vrot.lane.b32.xlu0 %v1351_v52, %s8195_s26  ;;  %7386 = vmatmul.mubr.msk.bf16.vlgmr.msra.gmra.mrb[8].mxu1 %vm768_vm6, %v1104_v49  ;;  %v1441_v58 = vsel %vm1376_vm11, %v1433_v56, 0  ;;  %s8199_s26 = smov 112  }
 0x368   : > { %7396 = vmatpush3.bf16.xpose.msra.mxu1 %v1235_v51  ;;  %7397 = vmatprep.mubr.msk.bf16.mxu1 %vm768_vm6, %v1223_v50 }
 0x369   : > { %7993 = vmatprep.subr.msk.bf16.mxu1 %vm1376_vm11, %v1433_v56  ;;  %7392 = vmatmul.mubr.msk.bf16.vlgmr.msra.gmra.mrb[8].mxu0 %vm768_vm6, %v1167_v53 }
 0x36b   : > { %1353 = vrot.lane.b32.xlu0 %v8337_v62, %s8198_s29 }
 0x36f   : > { %7398 = vmatmul.mubr.msk.bf16.vlgmr.msra.gmra.mrb[12].mxu1 %vm768_vm6, %v1224_v57 }
 0x370   : > { %7408 = vmatpush3.bf16.msra.mxu1 %v1441_v58 }
 0x371   : > { %7419 = vmatprep.subr.bf16.mxu1 %v8192_v1 }
 0x3d9   : > { %v1368_v59 = vpop.permute.xlu0 %1367 }
 0x3da   : > { %v1378_v60 = vsel %vm1376_vm11, %v1368_v59, 0  ;;  %7992 = vmatprep.subr.msk.bf16.mxu0 %vm1376_vm11, %v1368_v59 }
 0x3db   : > { %7402 = vmatpush3.bf16.msra.mxu0 %v1378_v60 }
 0x3dd   : > { %v1354_v61 = vpop.permute.xlu0 %1353 }
 0x3de   : > { %v1356_v63 = vmul.f32 %v1354_v61, %v8307_v43 }
 0x3e0   : > { %v1357_v0 = vpack.c.bf16 %v1356_v63, %v1356_v63 }
 0x3e2   : > { %1495 = vrot.lane.b32.xlu1 %v1357_v0, %s8198_s29  ;;  %s8200_s29 = smov 16  }
 0x43a   : > { %v7387_v62 = vpop.f32.mrb[8].mxu1 }
 0x43b   : > { %v7009_v3 = vmul.f32 -1.442695, %v7387_v62  ;;  %v1151_v4 = vpop.f32.mrb[9].mxu1 }
 0x43c   : > { %v7007_v2 = vmul.f32 -1.442695, %v1151_v4  ;;  %v7388_v5 = vpop.f32.mrb[10].mxu1  ;;  %v7393_v6 = vpop.f32.mrb[8].mxu0 }
 0x43d   : > { %8047 = vpow2.f32 %v7009_v3  ;;  %v7010_v7 = vmul.f32 -1.442695, %v7388_v5  ;;  %v1154_v8 = vpop.f32.mrb[11].mxu1  ;;  %v1208_v9 = vpop.f32.mrb[9].mxu0 }
 0x43e   : > { %8049 = vpow2.f32 %v7007_v2  ;;  %v7008_v10 = vmul.f32 -1.442695, %v1154_v8  ;;  %v7394_v11 = vpop.f32.mrb[10].mxu0 }
 0x43f   : > { %8051 = vpow2.f32 %v7010_v7  ;;  %v1211_v12 = vpop.f32.mrb[11].mxu0 }
 0x440   : > { %8053 = vpow2.f32 %v7008_v10 }
 0x442   : > { %v7399_v13 = vpop.f32.mrb[12].mxu1 }
 0x443   : > { %v1324_v14 = vmul.f32 %v7399_v13, %v7393_v6  ;;  %v1271_v15 = vpop.f32.mrb[13].mxu1 }
 0x444   : > { %v1322_v16 = vmul.f32 %v1271_v15, %v1208_v9  ;;  %v7400_v17 = vpop.f32.mrb[14].mxu1 }
 0x445   : > { %v1325_v18 = vmul.f32 %v7400_v17, %v7394_v11  ;;  %v1274_v19 = vpop.f32.mrb[15].mxu1 }
 0x446   : > { %v1323_v20 = vmul.f32 %v1274_v19, %v1211_v12 }
 0x447   : > { %v8048_v21 = vpop.eup %8047 }
 0x448   : > { %v8050_v22 = vpop.eup %8049  ;;  %v1300_v23 = vadd.f32 1.0, %v8048_v21 }
 0x449   : > { %v8052_v24 = vpop.eup %8051  ;;  %v1298_v25 = vadd.f32 1.0, %v8050_v22 }
 0x44a   : > { %v8054_v26 = vpop.eup %8053  ;;  %8055 = vrcp.f32 %v1300_v23  ;;  %v1301_v27 = vadd.f32 1.0, %v8052_v24 }
 0x44b   : > { %8057 = vrcp.f32 %v1298_v25  ;;  %v1299_v28 = vadd.f32 1.0, %v8054_v26 }
 0x44c   : > { %8059 = vrcp.f32 %v1301_v27 }
 0x44d   : > { %8061 = vrcp.f32 %v1299_v28 }
 0x454   : > { %v8056_v29 = vpop.eup %8055  ;;  %v1496_v30 = vpop.permute.xlu1 %1495 }
 0x455   : > { %v8058_v31 = vpop.eup %8057  ;;  %v1312_v32 = vmul.f32 %v8056_v29, %v7387_v62  ;;  %v1332_v33 = vsub.f32 1.0, %v8056_v29  ;;  %v1328_v34 = vmul.f32 %v8056_v29, %v1324_v14  ;;  %7994 = vmatprep.subr.msk.bf16.mxu0 %vm1376_vm11, %v1496_v30 }
 0x456   : > { %v8060_v35 = vpop.eup %8059  ;;  %v1310_v36 = vmul.f32 %v8058_v31, %v1151_v4  ;;  %v1330_v37 = vsub.f32 1.0, %v8058_v31  ;;  %v1326_v38 = vmul.f32 %v8058_v31, %v1322_v16 }
 0x457   : > { %v8062_v40 = vpop.eup %8061  ;;  %v1336_v41 = vmul.f32 %v7387_v62, %v1332_v33  ;;  %v1313_v42 = vmul.f32 %v8060_v35, %v7388_v5  ;;  %v1333_v44 = vsub.f32 1.0, %v8060_v35  ;;  %v1316_v45 = vmul.f32 %v7393_v6, %v1312_v32 }
 0x458   : > { %v1334_v46 = vmul.f32 %v1330_v37, %v1151_v4  ;;  %v1311_v47 = vmul.f32 %v8062_v40, %v1154_v8  ;;  %v1331_v48 = vsub.f32 1.0, %v8062_v40  ;;  %v1320_v49 = vmul.f32 %v7399_v13, %v1312_v32 }
 0x459   : > { %v1340_v50 = vadd.f32 1.0, %v1336_v41  ;;  %v1337_v51 = vmul.f32 %v7388_v5, %v1333_v44  ;;  %v1314_v52 = vmul.f32 %v1310_v36, %v1208_v9  ;;  %v1318_v53 = vmul.f32 %v1310_v36, %v1271_v15 }
 0x45a   : > { %v1338_v55 = vadd.f32 1.0, %v1334_v46  ;;  %v1335_v56 = vmul.f32 %v1331_v48, %v1154_v8  ;;  %v1317_v57 = vmul.f32 %v7394_v11, %v1313_v42  ;;  %v1321_v58 = vmul.f32 %v7400_v17, %v1313_v42 }
 0x45b   : > { %v1341_v59 = vadd.f32 1.0, %v1337_v51  ;;  %v1344_v60 = vmul.f32 %v1340_v50, %v1328_v34  ;;  %v1329_v61 = vmul.f32 %v8060_v35, %v1325_v18  ;;  %v1315_v63 = vmul.f32 %v1311_v47, %v1211_v12 }
 0x45c   : > { %v1339_v0 = vadd.f32 1.0, %v1335_v56  ;;  %v1342_v62 = vmul.f32 %v1338_v55, %v1326_v38  ;;  %v1493_v3 = vpack.c.bf16 %v1317_v57, %v1316_v45  ;;  %v1430_v2 = vpack.c.bf16 %v1321_v58, %v1320_v49 }
 0x45d   : > { %v1345_v4 = vmul.f32 %v1341_v59, %v1329_v61  ;;  %v1492_v6 = vpack.c.bf16 %v1315_v63, %v1314_v52  ;;  %v1319_v7 = vmul.f32 %v1311_v47, %v1274_v19  ;;  %v1327_v10 = vmul.f32 %v8062_v40, %v1323_v20 }
 0x45e   : > { %v1504_v11 = vsel %vm1376_vm11, %v1496_v30, 0 }
 0x45f   : > { %v1365_v5 = vpack.c.bf16 %v1345_v4, %v1344_v60  ;;  %v1343_v9 = vmul.f32 %v1339_v0, %v1327_v10  ;;  %v1429_v13 = vpack.c.bf16 %v1319_v7, %v1318_v53 }
 0x461   : > { %7409 = vmatprep.mubr.msk.bf16.mxu1 %vm1369_vm12, %v1429_v13  ;;  %v1364_v8 = vpack.c.bf16 %v1343_v9, %v1342_v62 }
 0x462   : > { %7410 = vmatmul.mubr.msk.bf16.vlgmr.msra.gmra.mrb[16].mxu1 %vm1369_vm12, %v1430_v2 }
 0x463   : > { %7403 = vmatprep.mubr.msk.bf16.mxu0 %vm1369_vm12, %v1364_v8  ;;  %7421 = vmatprep.mubr.msk.bf16.mxu1 %vm8193_vm1, %v8192_v1 }
 0x464   : > { %7404 = vmatmul.mubr.msk.bf16.vlgmr.msra.gmra.mrb[12].mxu0 %vm1369_vm12, %v1365_v5 }
 0x465   : > { %7414 = vmatpush3.bf16.msra.mxu0 %v1504_v11  ;;  %7415 = vmatprep.mubr.msk.bf16.mxu0 %vm1369_vm12, %v1492_v6 }
 0x466   : > { %7425 = vmatprep.subr.bf16.mxu0 %v8192_v1 }
 0x46c   : > { %7416 = vmatmul.mubr.msk.bf16.vlgmr.msra.gmra.mrb[16].mxu0 %vm1369_vm12, %v1493_v3 }
 0x46d   : > { %7427 = vmatprep.mubr.msk.bf16.mxu0 %vm8193_vm1, %v8192_v1 }
 0x535   : > { %v7411_v12 = vpop.f32.mrb[16].mxu1 }
 0x536   : > { %v8422_v14 = vpop.f32.mrb[17].mxu1 }
 0x537   : > { %v7412_v15 = vpop.f32.mrb[18].mxu1  ;;  %v7405_v16 = vpop.f32.mrb[12].mxu0  ;;  %v1583_v29 = vmul.f32 %v8422_v14, %v8422_v14 }
 0x538   : > { %v8424_v17 = vpop.f32.mrb[19].mxu1  ;;  %1557 = vrot.lane.b32.xlu0 %v7405_v16, %s8199_s26  ;;  %v8427_v18 = vpop.f32.mrb[13].mxu0 }
 0x539   : > { %v7406_v19 = vpop.f32.mrb[14].mxu0  ;;  %v1579_v25 = vmul.f32 %v8427_v18, %v8427_v18  ;;  %v1604_v30 = vsel %vm1591_vm13, %v1583_v29, 0.0  ;;  %v1584_v41 = vmul.f32 %v8424_v17, %v8424_v17 }
 0x53a   : > { %1559 = vrot.lane.b32.xlu1 %v7406_v19, %s8199_s26  ;;  %v8430_v20 = vpop.f32.mrb[15].mxu0 }
 0x53b   : > { %v1592_v26 = vsel %vm1591_vm13, %v1579_v25, 0.0  ;;  %v1580_v27 = vmul.f32 %v8430_v20, %v8430_v20  ;;  %v1607_v44 = vsel %vm1591_vm13, %v1584_v41, 0.0 }
 0x53c   : > { %1565 = vrot.lane.b32.xlu0 %v7411_v12, %s8199_s26 }
 0x53d   : > { %v1595_v28 = vsel %vm1591_vm13, %v1580_v27, 0.0 }
 0x53e   : > { %1567 = vrot.lane.b32.xlu1 %v7412_v15, %s8199_s26 }
 0x53f   : > { %v7417_v21 = vpop.f32.mrb[16].mxu0 }
 0x540   : > { %v8434_v22 = vpop.f32.mrb[17].mxu0 }
 0x541   : > { %v7418_v23 = vpop.f32.mrb[18].mxu0  ;;  %v1587_v47 = vmul.f32 %v8434_v22, %v8434_v22 }
 0x542   : > { %v8436_v24 = vpop.f32.mrb[19].mxu0 }
 0x543   : > { %v1616_v48 = vsel %vm1591_vm13, %v1587_v47, 0.0  ;;  %v1588_v49 = vmul.f32 %v8436_v24, %v8436_v24 }
 0x545   : > { %v1619_v50 = vsel %vm1591_vm13, %v1588_v49, 0.0 }
 0x55b   : > { %1593 = vadd.xlane.f32.xlu0 %v1592_v26 }
 0x562   : > { %1596 = vadd.xlane.f32.xlu1 %v1595_v28 }
 0x566   : > { %1605 = vadd.xlane.f32.xlu1 %v1604_v30 }
 0x5aa   : > { %v8447_v31 = vpop.permute.xlu0 %1557 }
 0x5ab   : > { %v1581_v32 = vmul.f32 %v8447_v31, %v8447_v31 }
 0x5ac   : > { %v8451_v33 = vpop.permute.xlu1 %1559 }
 0x5ad   : > { %v1598_v34 = vsel %vm1591_vm13, %v1581_v32, 0.0  ;;  %v1582_v35 = vmul.f32 %v8451_v33, %v8451_v33 }
 0x5ae   : > { %1599 = vadd.xlane.f32.xlu0 %v1598_v34  ;;  %v8456_v36 = vpop.permute.xlu0 %1565 }
 0x5af   : > { %v1585_v37 = vmul.f32 %v8456_v36, %v8456_v36  ;;  %v1601_v38 = vsel %vm1591_vm13, %v1582_v35, 0.0 }
 0x5b0   : > { %v8464_v42 = vpop.permute.xlu1 %1567 }
 0x5b1   : > { %v1610_v40 = vsel %vm1591_vm13, %v1585_v37, 0.0  ;;  %v1586_v45 = vmul.f32 %v8464_v42, %v8464_v42 }
 0x5b2   : > { %1602 = vadd.xlane.f32.xlu0 %v1601_v38  ;;  %1611 = vadd.xlane.f32.xlu1 %v1610_v40 }
 0x5b3   : > { %v1613_v46 = vsel %vm1591_vm13, %v1586_v45, 0.0 }
 0x5b6   : > { %1608 = vadd.xlane.f32.xlu0 %v1607_v44 }
 0x5ba   : > { %1614 = vadd.xlane.f32.xlu0 %v1613_v46 }
 0x5c3   : > { %1573 = vrot.lane.b32.xlu1 %v7417_v21, %s8199_s26 }
 0x5d0   : > { %1575 = vrot.lane.b32.xlu0 %v7418_v23, %s8199_s26  ;;  %s477_s26 = scalar_lea.vmem %s9854_s9, %s6983_s18 }
 0x5e7   : > { %1617 = vadd.xlane.f32.xlu1 %v1616_v48 }
 0x5e8   : > { %v1594_v51 = vpop.xlane.xlu0 %1593 }
 0x5ef   : > { %v1597_v52 = vpop.xlane.xlu1 %1596  ;;  %1620 = vadd.xlane.f32.xlu0 %v1619_v50 }
 0x5f0   : > { %v1628_v53 = vadd.f32 %v1597_v52, %v1594_v51 }
 0x5f2   : > { %v1629_v55 = vrot.slane %v1628_v53, 4 }
 0x5f3   : > { %v1606_v9 = vpop.xlane.xlu1 %1605 }
 0x5f4   : > { %v1630_v56 = vadd.f32 %v1629_v55, %v1628_v53 }
 0x5f6   : > { %v1631_v57 = vrot.slane %v1630_v56, 2 }
 0x5f8   : > { %v1632_v58 = vadd.f32 %v1631_v57, %v1630_v56 }
 0x5fa   : > { %v1633_v59 = vrot.slane %v1632_v58, 1 }
 0x5fc   : > { %v1634_v60 = vadd.f32 %v1633_v59, %v1632_v58 }
 0x5fe   : > { %8063 = vrsqrt.f32 %v1634_v60  ;;  %vm1672_vm14 = vcmp.eq.f32.partialorder %v1634_v60, inf  ;;  %v1675_v0 = vand.u32 2147483648, %v1634_v60  ;;  %vm1674_vm15 = vcmp.eq.f32.partialorder %v1634_v60, 0.0 }
 0x608   : > { %v8064_v61 = vpop.eup %8063 }
 0x609   : > { %v1671_v63 = vmul.f32 %v8064_v61, %v1634_v60 }
 0x60b   : > { %v1673_v62 = vsel %vm1672_vm14, %v1634_v60, %v1671_v63 }
 0x60c   : > { %v1676_v3 = vsel %vm1674_vm15, %v1675_v0, %v1673_v62 }
 0x60d   : > { %v1712_v2 = vadd.f32 1e-07, %v1676_v3 }
 0x60f   : > { %8065 = vrcp.f32 %v1712_v2 }
 0x619   : > { %v8066_v4 = vpop.eup %8065 }
 0x61a   : > { %v8479_v6 = vmul.f32 %v8066_v4, %v8427_v18  ;;  %v8482_v7 = vmul.f32 %v8066_v4, %v8430_v20 }
 0x61c   : > { %v8486_v10 = vpack.c.bf16 %v8482_v7, %v8479_v6 }
 0x61e   : > { %v1743_v5 = vsel %vm1591_vm13, %v8486_v10, 0 }
 0x61f   : > { %7420 = vmatpush3.bf16.xpose.msra.mxu1 %v1743_v5 }
 0x620   : > { %7431 = vmatprep.subr.bf16.mxu1 %v8192_v1 }
 0x626   : > { %7422 = vmatmul.mubr.msk.bf16.vlgmr.msra.gmra.mrb[20].mxu1 %vm1591_vm13, %v8486_v10 }
 0x627   : > { %7433 = vmatprep.mubr.msk.bf16.mxu1 %vm8193_vm1, %v8192_v1 }
 0x63b   : > { %v1600_v13 = vpop.xlane.xlu0 %1599 }
 0x63f   : > { %v1603_v8 = vpop.xlane.xlu0 %1602  ;;  %v1612_v11 = vpop.xlane.xlu1 %1611 }
 0x640   : > { %v1635_v12 = vadd.f32 %v1603_v8, %v1600_v13 }
 0x642   : > { %v1636_v15 = vrot.slane %v1635_v12, 4 }
 0x643   : > { %v8495_v16 = vpop.permute.xlu1 %1573  ;;  %v1609_v19 = vpop.xlane.xlu0 %1608 }
 0x644   : > { %v1637_v21 = vadd.f32 %v1636_v15, %v1635_v12  ;;  %v1642_v23 = vadd.f32 %v1609_v19, %v1606_v9  ;;  %v1589_v25 = vmul.f32 %v8495_v16, %v8495_v16 }
 0x646   : > { %v1638_v26 = vrot.slane %v1637_v21, 2  ;;  %v1643_v27 = vrot.slane %v1642_v23, 4  ;;  %v1622_v28 = vsel %vm1591_vm13, %v1589_v25, 0.0 }
 0x647   : > { %1623 = vadd.xlane.f32.xlu1 %v1622_v28  ;;  %v1615_v29 = vpop.xlane.xlu0 %1614 }
 0x648   : > { %v1639_v30 = vadd.f32 %v1638_v26, %v1637_v21  ;;  %v1644_v32 = vadd.f32 %v1643_v27, %v1642_v23  ;;  %v1649_v34 = vadd.f32 %v1615_v29, %v1612_v11 }
 0x64a   : > { %v1640_v35 = vrot.slane %v1639_v30, 1  ;;  %v1645_v37 = vrot.slane %v1644_v32, 2  ;;  %v1650_v38 = vrot.slane %v1649_v34, 4 }
 0x64b   : > { %v8500_v40 = vpop.permute.xlu0 %1575 }
 0x64c   : > { %v1641_v41 = vadd.f32 %v1640_v35, %v1639_v30  ;;  %v1646_v44 = vadd.f32 %v1645_v37, %v1644_v32  ;;  %v1651_v45 = vadd.f32 %v1650_v38, %v1649_v34  ;;  %v1590_v46 = vmul.f32 %v8500_v40, %v8500_v40 }
 0x64e   : > { %8067 = vrsqrt.f32 %v1641_v41  ;;  %v1647_v47 = vrot.slane %v1646_v44, 1  ;;  %v1652_v48 = vrot.slane %v1651_v45, 2  ;;  %v1625_v49 = vsel %vm1591_vm13, %v1590_v46, 0.0 }
 0x64f   : > { %1626 = vadd.xlane.f32.xlu0 %v1625_v49  ;;  %vm1679_vm2 = vcmp.eq.f32.partialorder %v1641_v41, inf  ;;  %v1682_v57 = vand.u32 2147483648, %v1641_v41  ;;  %vm1681_vm3 = vcmp.eq.f32.partialorder %v1641_v41, 0.0 }
 0x650   : > { %v1648_v50 = vadd.f32 %v1647_v47, %v1646_v44  ;;  %v1653_v51 = vadd.f32 %v1652_v48, %v1651_v45 }
 0x652   : > { %8069 = vrsqrt.f32 %v1648_v50  ;;  %v1654_v52 = vrot.slane %v1653_v51, 1  ;;  %vm1686_vm4 = vcmp.eq.f32.partialorder %v1648_v50, inf  ;;  %v1689_v0 = vand.u32 2147483648, %v1648_v50 }
 0x653   : > { %vm1688_vm7 = vcmp.eq.f32.partialorder %v1648_v50, 0.0 }
 0x654   : > { %v1655_v53 = vadd.f32 %v1654_v52, %v1653_v51 }
 0x656   : > { %8071 = vrsqrt.f32 %v1655_v53  ;;  %vm1693_vm8 = vcmp.eq.f32.partialorder %v1655_v53, inf  ;;  %v1696_v9 = vand.u32 2147483648, %v1655_v53  ;;  %vm1695_vm9 = vcmp.eq.f32.partialorder %v1655_v53, 0.0 }
 0x658   : > { %v8068_v55 = vpop.eup %8067 }
 0x659   : > { %v1678_v56 = vmul.f32 %v8068_v55, %v1641_v41 }
 0x65b   : > { %v1680_v58 = vsel %vm1679_vm2, %v1641_v41, %v1678_v56 }
 0x65c   : > { %v8070_v59 = vpop.eup %8069  ;;  %v1683_v60 = vsel %vm1681_vm3, %v1682_v57, %v1680_v58 }
 0x65d   : > { %v1685_v61 = vmul.f32 %v8070_v59, %v1648_v50  ;;  %v1713_v63 = vadd.f32 1e-07, %v1683_v60 }
 0x65f   : > { %8073 = vrcp.f32 %v1713_v63  ;;  %v1687_v62 = vsel %vm1686_vm4, %v1648_v50, %v1685_v61 }
 0x660   : > { %v1690_v3 = vsel %vm1688_vm7, %v1689_v0, %v1687_v62  ;;  %v8072_v2 = vpop.eup %8071 }
 0x661   : > { %v1714_v4 = vadd.f32 1e-07, %v1690_v3  ;;  %v1692_v5 = vmul.f32 %v8072_v2, %v1655_v53 }
 0x663   : > { %8075 = vrcp.f32 %v1714_v4  ;;  %v1694_v13 = vsel %vm1693_vm8, %v1655_v53, %v1692_v5 }
 0x664   : > { %v1697_v8 = vsel %vm1695_vm9, %v1696_v9, %v1694_v13 }
 0x665   : > { %v1715_v11 = vadd.f32 1e-07, %v1697_v8 }
 0x667   : > { %8077 = vrcp.f32 %v1715_v11 }
 0x669   : > { %v8074_v12 = vpop.eup %8073 }
 0x66a   : > { %v8506_v15 = vmul.f32 %v8074_v12, %v8447_v31  ;;  %v8509_v19 = vmul.f32 %v8074_v12, %v8451_v33 }
 0x66c   : > { %v8513_v21 = vpack.c.bf16 %v8509_v19, %v8506_v15 }
 0x66d   : > { %v8076_v23 = vpop.eup %8075 }
 0x66e   : > { %v1787_v25 = vsel %vm1591_vm13, %v8513_v21, 0  ;;  %v8518_v26 = vmul.f32 %v8076_v23, %v8422_v14  ;;  %v8521_v27 = vmul.f32 %v8076_v23, %v8424_v17 }
 0x66f   : > { %7426 = vmatpush3.bf16.xpose.msra.mxu0 %v1787_v25 }
 0x670   : > { %v8525_v28 = vpack.c.bf16 %v8521_v27, %v8518_v26  ;;  %7437 = vmatprep.subr.bf16.mxu0 %v8192_v1 }
 0x671   : > { %v8078_v29 = vpop.eup %8077 }
 0x672   : > { %v1831_v30 = vsel %vm1591_vm13, %v8525_v28, 0  ;;  %v8531_v32 = vmul.f32 %v8078_v29, %v8456_v36  ;;  %v8534_v34 = vmul.f32 %v8078_v29, %v8464_v42 }
 0x673   : > { %7432 = vmatpush3.bf16.xpose.msra.mxu1 %v1831_v30 }
 0x674   : > { %7443 = vmatprep.subr.bf16.mxu1 %v8192_v1  ;;  %v8539_v35 = vpack.c.bf16 %v8534_v34, %v8531_v32  ;;  %v1618_v38 = vpop.xlane.xlu1 %1617 }
 0x676   : > { %7428 = vmatmul.mubr.msk.bf16.vlgmr.msra.gmra.mrb[20].mxu0 %vm1591_vm13, %v8513_v21  ;;  %v1875_v37 = vsel %vm1591_vm13, %v8539_v35, 0 }
 0x677   : > { %7439 = vmatprep.mubr.msk.bf16.mxu0 %vm8193_vm1, %v8192_v1  ;;  %7438 = vmatpush3.bf16.xpose.msra.mxu0 %v1875_v37 }
 0x678   : > { %7449 = vmatprep.subr.bf16.mxu0 %v8192_v1 }
 0x67a   : > { %7434 = vmatmul.mubr.msk.bf16.vlgmr.msra.gmra.mrb[24].mxu1 %vm1591_vm13, %v8525_v28 }
 0x67b   : > { %7445 = vmatprep.mubr.msk.bf16.mxu1 %vm8193_vm1, %v8192_v1 }
 0x67c   : > { %v1621_v41 = vpop.xlane.xlu0 %1620 }
 0x67d   : > { %v1656_v44 = vadd.f32 %v1621_v41, %v1618_v38 }
 0x67e   : > { %7440 = vmatmul.mubr.msk.bf16.vlgmr.msra.gmra.mrb[24].mxu0 %vm1591_vm13, %v8539_v35 }
 0x67f   : > { %v1657_v45 = vrot.slane %v1656_v44, 4  ;;  %7451 = vmatprep.mubr.msk.bf16.mxu0 %vm8193_vm1, %v8192_v1 }
 0x681   : > { %v1658_v46 = vadd.f32 %v1657_v45, %v1656_v44 }
 0x683   : > { %v1659_v47 = vrot.slane %v1658_v46, 2 }
 0x685   : > { %v1660_v48 = vadd.f32 %v1659_v47, %v1658_v46 }
 0x687   : > { %v1661_v49 = vrot.slane %v1660_v48, 1 }
 0x689   : > { %v1662_v50 = vadd.f32 %v1661_v49, %v1660_v48 }
 0x68b   : > { %8079 = vrsqrt.f32 %v1662_v50  ;;  %vm1700_vm10 = vcmp.eq.f32.partialorder %v1662_v50, inf  ;;  %v1703_v53 = vand.u32 2147483648, %v1662_v50  ;;  %vm1702_vm11 = vcmp.eq.f32.partialorder %v1662_v50, 0.0 }
 0x695   : > { %v8080_v51 = vpop.eup %8079 }
 0x696   : > { %v1699_v52 = vmul.f32 %v8080_v51, %v1662_v50 }
 0x698   : > { %v1701_v55 = vsel %vm1700_vm10, %v1662_v50, %v1699_v52 }
 0x699   : > { %v1704_v56 = vsel %vm1702_vm11, %v1703_v53, %v1701_v55 }
 0x69a   : > { %v1716_v57 = vadd.f32 1e-07, %v1704_v56 }
 0x69c   : > { %8081 = vrcp.f32 %v1716_v57 }
 0x6a6   : > { %v8082_v58 = vpop.eup %8081 }
 0x6a7   : > { %v8557_v59 = vmul.f32 %v8082_v58, %v8434_v22  ;;  %v8560_v60 = vmul.f32 %v8082_v58, %v8436_v24 }
 0x6a9   : > { %v8564_v61 = vpack.c.bf16 %v8560_v60, %v8557_v59 }
 0x6ab   : > { %v1919_v63 = vsel %vm1591_vm13, %v8564_v61, 0 }
 0x6ac   : > { %7444 = vmatpush3.bf16.xpose.msra.mxu1 %v1919_v63 }
 0x6ad   : > { %7455 = vmatprep.subr.bf16.mxu1 %v8192_v1 }
 0x6b3   : > { %7446 = vmatmul.mubr.msk.bf16.vlgmr.msra.gmra.mrb[28].mxu1 %vm1591_vm13, %v8564_v61 }
 0x6b4   : > { %7457 = vmatprep.mubr.msk.bf16.mxu1 %vm8193_vm1, %v8192_v1 }
 0x6d4   : > { %v1624_v0 = vpop.xlane.xlu1 %1623 }
 0x6dc   : > { %v1627_v62 = vpop.xlane.xlu0 %1626 }
 0x6dd   : > { %v1663_v3 = vadd.f32 %v1627_v62, %v1624_v0 }
 0x6df   : > { %v1664_v2 = vrot.slane %v1663_v3, 4 }
 0x6e1   : > { %v1665_v4 = vadd.f32 %v1664_v2, %v1663_v3 }
 0x6e3   : > { %v1666_v5 = vrot.slane %v1665_v4, 2 }
 0x6e5   : > { %v1667_v9 = vadd.f32 %v1666_v5, %v1665_v4 }
 0x6e7   : > { %v1668_v13 = vrot.slane %v1667_v9, 1 }
 0x6e9   : > { %v1669_v8 = vadd.f32 %v1668_v13, %v1667_v9 }
 0x6eb   : > { %8083 = vrsqrt.f32 %v1669_v8  ;;  %vm1707_vm12 = vcmp.eq.f32.partialorder %v1669_v8, inf  ;;  %v1710_v23 = vand.u32 2147483648, %v1669_v8  ;;  %vm1709_vm14 = vcmp.eq.f32.partialorder %v1669_v8, 0.0 }
 0x6f5   : > { %v8084_v11 = vpop.eup %8083 }
 0x6f6   : > { %v1706_v12 = vmul.f32 %v8084_v11, %v1669_v8 }
 0x6f8   : > { %v1708_v29 = vsel %vm1707_vm12, %v1669_v8, %v1706_v12 }
 0x6f9   : > { %v1779_v25 = vpop.f32.mrb[20].mxu1  ;;  %v1711_v37 = vsel %vm1709_vm14, %v1710_v23, %v1708_v29 }
 0x6fa   : > { %v7423_v30 = vpop.f32.mrb[21].mxu1  ;;  %v1717_v41 = vadd.f32 1e-07, %v1711_v37 }
 0x6fb   : > { %v1782_v38 = vpop.f32.mrb[22].mxu1  ;;  %v2276_v30 = vmul.f32 -6.8946, %v1779_v25 }
 0x6fc   : > { %v2006_v44 = vpack.c.bf16 %v1782_v38, %v1779_v25  ;;  %v7424_v45 = vpop.f32.mrb[23].mxu1  ;;  %8085 = vrcp.f32 %v1717_v41 }
 0x6fd   : > { %v2277_v45 = vmul.f32 -6.8946, %v1782_v38 }
 0x6fe   : > { %7456 = vmatpush3.bf16.msra.mxu1 %v2006_v44 }
 0x6ff   : > { %7467 = vmatprep.subr.bf16.mxu1 %v8192_v1 }
 0x701   : > { %7458 = vmatmul.mubr.msk.bf16.vlgmr.msra.gmra.mrb[32].mxu1 %vm1591_vm13, %v2006_v44 }
 0x702   : > { %7469 = vmatprep.mubr.msk.bf16.mxu1 %vm8193_vm1, %v8192_v1 }
 0x706   : > { %v8086_v46 = vpop.eup %8085 }
 0x707   : > { %v8578_v47 = vmul.f32 %v8086_v46, %v8495_v16  ;;  %v8581_v48 = vmul.f32 %v8086_v46, %v8500_v40 }
 0x709   : > { %v8585_v49 = vpack.c.bf16 %v8581_v48, %v8578_v47 }
 0x70b   : > { %v1963_v50 = vsel %vm1591_vm13, %v8585_v49, 0 }
 0x70c   : > { %7450 = vmatpush3.bf16.xpose.msra.mxu0 %v1963_v50 }
 0x70d   : > { %7461 = vmatprep.subr.bf16.mxu0 %v8192_v1 }
 0x713   : > { %7452 = vmatmul.mubr.msk.bf16.vlgmr.msra.gmra.mrb[28].mxu0 %vm1591_vm13, %v8585_v49 }
 0x714   : > { %7463 = vmatprep.mubr.msk.bf16.mxu0 %vm8193_vm1, %v8192_v1 }
 0x749   : > { %v8594_v51 = vpop.f32.mrb[20].mxu0 }
 0x74a   : > { %v7429_v52 = vpop.f32.mrb[21].mxu0 }
 0x74b   : > { %v8596_v53 = vpop.f32.mrb[22].mxu0 }
 0x74c   : > { %v2007_v55 = vpack.c.bf16 %v8596_v53, %v8594_v51  ;;  %v7430_v56 = vpop.f32.mrb[23].mxu0 }
 0x74d   : > { %v8600_v57 = vpop.f32.mrb[24].mxu1 }
 0x74e   : > { %v7435_v58 = vpop.f32.mrb[25].mxu1  ;;  %7462 = vmatpush3.bf16.msra.mxu0 %v2007_v55 }
 0x74f   : > { %v8602_v63 = vpop.f32.mrb[26].mxu1  ;;  %7473 = vmatprep.subr.bf16.mxu0 %v8192_v1 }
 0x750   : > { %v2008_v0 = vpack.c.bf16 %v8602_v63, %v8600_v57  ;;  %v7436_v62 = vpop.f32.mrb[27].mxu1 }
 0x751   : > { %7464 = vmatmul.mubr.msk.bf16.vlgmr.msra.gmra.mrb[32].mxu0 %vm1591_vm13, %v2007_v55  ;;  %v8608_v3 = vpop.f32.mrb[24].mxu0  ;;  %v2278_v62 = vmul.f32 -6.8946, %v8594_v51 }
 0x752   : > { %7468 = vmatpush3.bf16.msra.mxu1 %v2008_v0  ;;  %7475 = vmatprep.mubr.msk.bf16.mxu0 %vm8193_vm1, %v8192_v1  ;;  %v7441_v2 = vpop.f32.mrb[25].mxu0 }
 0x753   : > { %7479 = vmatprep.subr.bf16.mxu1 %v8192_v1  ;;  %v8613_v4 = vpop.f32.mrb[26].mxu0 }
 0x754   : > { %v2009_v5 = vpack.c.bf16 %v8613_v4, %v8608_v3  ;;  %v7442_v9 = vpop.f32.mrb[27].mxu0 }
 0x755   : > { %7470 = vmatmul.mubr.msk.bf16.vlgmr.msra.gmra.mrb[36].mxu1 %vm1591_vm13, %v2008_v0 }
 0x756   : > { %7481 = vmatprep.mubr.msk.bf16.mxu1 %vm8193_vm1, %v8192_v1  ;;  %7474 = vmatpush3.bf16.msra.mxu0 %v2009_v5 }
 0x757   : > { %7485 = vmatprep.subr.bf16.mxu0 %v8192_v1 }
 0x759   : > { %7476 = vmatmul.mubr.msk.bf16.vlgmr.msra.gmra.mrb[36].mxu0 %vm1591_vm13, %v2009_v5 }
 0x75a   : > { %7487 = vmatprep.mubr.msk.bf16.mxu0 %vm8193_vm1, %v8192_v1 }
 0x786   : > { %v8624_v13 = vpop.f32.mrb[28].mxu1 }
 0x787   : > { %v7447_v8 = vpop.f32.mrb[29].mxu1 }
 0x788   : > { %v8626_v11 = vpop.f32.mrb[30].mxu1  ;;  %v2279_v8 = vmul.f32 -6.8946, %v8596_v53  ;;  %v2282_v53 = vmul.f32 -6.8946, %v8608_v3 }
 0x789   : > { %v2010_v12 = vpack.c.bf16 %v8626_v11, %v8624_v13  ;;  %v7448_v23 = vpop.f32.mrb[31].mxu1 }
 0x78b   : > { %7480 = vmatpush3.bf16.msra.mxu1 %v2010_v12 }
 0x78c   : > { %7491 = vmatprep.subr.bf16.mxu1 %v8192_v1 }
 0x78e   : > { %7482 = vmatmul.mubr.msk.bf16.vlgmr.msra.gmra.mrb[40].mxu1 %vm1591_vm13, %v2010_v12 }
 0x78f   : > { %7492 = vmatpush3.bf16.msra.mxu1 %v8486_v10  ;;  %7493 = vmatprep.mubr.msk.bf16.mxu1 %vm8193_vm1, %v8192_v1 }
 0x790   : > { %7503 = vmatprep.subr.bf16.mxu1 %v8192_v1 }
 0x7d4   : > { %v2049_v29 = vpop.f32.mrb[32].mxu1 }
 0x7d5   : > { %v2288_v37 = vmul.f32 2.927, %v2049_v29  ;;  %v7459_v41 = vpop.f32.mrb[33].mxu1 }
 0x7d6   : > { %v2052_v44 = vpop.f32.mrb[34].mxu1 }
 0x7d7   : > { %v2300_v46 = vadd.f32 %v2288_v37, %v2276_v30  ;;  %v2289_v50 = vmul.f32 2.927, %v2052_v44  ;;  %v7460_v52 = vpop.f32.mrb[35].mxu1  ;;  %v2280_v37 = vmul.f32 -6.8946, %v8600_v57 }
 0x7d9   : > { %v2301_v55 = vadd.f32 %v2289_v50, %v2277_v45 }
 0x7db   : > { %v2312_v56 = vpack.c.bf16 %v2301_v55, %v2300_v46  ;;  %v2281_v46 = vmul.f32 -6.8946, %v8602_v63  ;;  %v2283_v63 = vmul.f32 -6.8946, %v8613_v4  ;;  %v2284_v4 = vmul.f32 -6.8946, %v8624_v13 }
 0x7dd   : > { %7494 = vmatmul.mubr.msk.bf16.vlgmr.msra.gmra.mrb[44].mxu1 %vm1591_vm13, %v2312_v56 }
 0x7de   : > { %7504 = vmatpush3.bf16.msra.mxu1 %v8525_v28  ;;  %7505 = vmatprep.mubr.msk.bf16.mxu1 %vm8193_vm1, %v8192_v1 }
 0x7df   : > { %7515 = vmatprep.subr.bf16.mxu1 %v8192_v1 }
 0x7e6   : > { %v8641_v10 = vpop.f32.mrb[28].mxu0 }
 0x7e7   : > { %v7453_v25 = vpop.f32.mrb[29].mxu0 }
 0x7e8   : > { %v8643_v58 = vpop.f32.mrb[30].mxu0 }
 0x7e9   : > { %v2011_v38 = vpack.c.bf16 %v8643_v58, %v8641_v10  ;;  %v7454_v0 = vpop.f32.mrb[31].mxu0 }
 0x7eb   : > { %7486 = vmatpush3.bf16.msra.mxu0 %v2011_v38 }
 0x7ec   : > { %7497 = vmatprep.subr.bf16.mxu0 %v8192_v1 }
 0x7ee   : > { %7488 = vmatmul.mubr.msk.bf16.vlgmr.msra.gmra.mrb[40].mxu0 %vm1591_vm13, %v2011_v38 }
 0x7ef   : > { %7498 = vmatpush3.bf16.msra.mxu0 %v8513_v21  ;;  %7499 = vmatprep.mubr.msk.bf16.mxu0 %vm8193_vm1, %v8192_v1 }
 0x7f0   : > { %7509 = vmatprep.subr.bf16.mxu0 %v8192_v1 }
 0x824   : > { %v2093_v28 = vpop.f32.mrb[32].mxu0 }
 0x825   : > { %v2290_v2 = vmul.f32 2.927, %v2093_v28  ;;  %v7465_v5 = vpop.f32.mrb[33].mxu0 }
 0x826   : > { %v2096_v9 = vpop.f32.mrb[34].mxu0 }
 0x827   : > { %v2302_v12 = vadd.f32 %v2290_v2, %v2278_v62  ;;  %v2291_v23 = vmul.f32 2.927, %v2096_v9  ;;  %v7466_v29 = vpop.f32.mrb[35].mxu0 }
 0x828   : > { %v2137_v30 = vpop.f32.mrb[36].mxu1 }
 0x829   : > { %v2303_v21 = vadd.f32 %v2291_v23, %v2279_v8  ;;  %v2292_v41 = vmul.f32 2.927, %v2137_v30  ;;  %v7471_v44 = vpop.f32.mrb[37].mxu1  ;;  %v2285_v23 = vmul.f32 -6.8946, %v8626_v11 }
 0x82a   : > { %v2140_v45 = vpop.f32.mrb[38].mxu1 }
 0x82b   : > { %v2313_v50 = vpack.c.bf16 %v2303_v21, %v2302_v12  ;;  %v2304_v52 = vadd.f32 %v2292_v41, %v2280_v37  ;;  %v2293_v51 = vmul.f32 2.927, %v2140_v45  ;;  %v7472_v55 = vpop.f32.mrb[39].mxu1 }
 0x82c   : > { %v2181_v25 = vpop.f32.mrb[36].mxu0 }
 0x82d   : > { %v2305_v56 = vadd.f32 %v2293_v51, %v2281_v46  ;;  %7500 = vmatmul.mubr.msk.bf16.vlgmr.msra.gmra.mrb[44].mxu0 %vm1591_vm13, %v2313_v50  ;;  %v2294_v38 = vmul.f32 2.927, %v2181_v25  ;;  %v7477_v0 = vpop.f32.mrb[37].mxu0  ;;  %v2319_v46 = vmul.f32 4.0848, %v8482_v7 }
 0x82e   : > { %7510 = vmatpush3.bf16.msra.mxu0 %v8539_v35  ;;  %7511 = vmatprep.mubr.msk.bf16.mxu0 %vm8193_vm1, %v8192_v1  ;;  %v2184_v28 = vpop.f32.mrb[38].mxu0  ;;  %v2286_v7 = vmul.f32 -6.8946, %v8641_v10 }
 0x82f   : > { %v2314_v57 = vpack.c.bf16 %v2305_v56, %v2304_v52  ;;  %7521 = vmatprep.subr.bf16.mxu0 %v8192_v1  ;;  %v2306_v62 = vadd.f32 %v2294_v38, %v2282_v53  ;;  %v2295_v2 = vmul.f32 2.927, %v2184_v28  ;;  %v7478_v5 = vpop.f32.mrb[39].mxu0  ;;  %v2287_v38 = vmul.f32 -6.8946, %v8643_v58 }
 0x831   : > { %7506 = vmatmul.mubr.msk.bf16.vlgmr.msra.gmra.mrb[48].mxu1 %vm1591_vm13, %v2314_v57  ;;  %v2307_v9 = vadd.f32 %v2295_v2, %v2283_v63  ;;  %v2320_v2 = vmul.f32 4.0848, %v8506_v15 }
 0x832   : > { %7516 = vmatpush3.bf16.msra.mxu1 %v8564_v61  ;;  %7517 = vmatprep.mubr.msk.bf16.mxu1 %vm8193_vm1, %v8192_v1 }
 0x833   : > { %7527 = vmatprep.subr.bf16.mxu1 %v8192_v1  ;;  %v2315_v35 = vpack.c.bf16 %v2307_v9, %v2306_v62 }
 0x835   : > { %7512 = vmatmul.mubr.msk.bf16.vlgmr.msra.gmra.mrb[48].mxu0 %vm1591_vm13, %v2315_v35  ;;  %v2321_v35 = vmul.f32 4.0848, %v8509_v19 }
 0x836   : > { %7522 = vmatpush3.bf16.msra.mxu0 %v8585_v49  ;;  %7523 = vmatprep.mubr.msk.bf16.mxu0 %vm8193_vm1, %v8192_v1  ;;  %v2318_v49 = vmul.f32 4.0848, %v8479_v6 }
 0x837   : > { %7533 = vmatprep.subr.bf16.mxu0 %v8192_v1 }
 0x861   : > { %v2225_v3 = vpop.f32.mrb[40].mxu1 }
 0x862   : > { %v2296_v8 = vmul.f32 2.927, %v2225_v3  ;;  %v7483_v61 = vpop.f32.mrb[41].mxu1 }
 0x863   : > { %v2228_v12 = vpop.f32.mrb[42].mxu1 }
 0x864   : > { %v2308_v29 = vadd.f32 %v2296_v8, %v2284_v4  ;;  %v2297_v30 = vmul.f32 2.927, %v2228_v12  ;;  %v7484_v37 = vpop.f32.mrb[43].mxu1  ;;  %v2322_v8 = vmul.f32 4.0848, %v8518_v26 }
 0x866   : > { %v2309_v21 = vadd.f32 %v2297_v30, %v2285_v23 }
 0x868   : > { %v2316_v41 = vpack.c.bf16 %v2309_v21, %v2308_v29  ;;  %v2323_v29 = vmul.f32 4.0848, %v8521_v27 }
 0x86a   : > { %7518 = vmatmul.mubr.msk.bf16.vlgmr.msra.gmra.mrb[52].mxu1 %vm1591_vm13, %v2316_v41  ;;  %v2324_v41 = vmul.f32 4.0848, %v8531_v32 }
 0x86b   : > { %7529 = vmatprep.mubr.msk.bf16.mxu1 %vm8193_vm1, %v8192_v1 }
 0x8b0   : > { %v2367_v44 = vpop.f32.mrb[44].mxu1 }
 0x8b1   : > { %v8680_v45 = vadd.f32 %v2367_v44, %v2318_v49  ;;  %v7495_v13 = vpop.f32.mrb[45].mxu1 }
 0x8b2   : > { %v2370_v50 = vpop.f32.mrb[46].mxu1  ;;  %v2325_v13 = vmul.f32 4.0848, %v8534_v34 }
 0x8b3   : > { %v8683_v11 = vadd.f32 %v2370_v50, %v2319_v46  ;;  %v7496_v52 = vpop.f32.mrb[47].mxu1 }
 0x8b5   : > { %v8687_v51 = vpack.c.bf16 %v8683_v11, %v8680_v45 }
 0x8b7   : > { %v2613_v55 = vsel %vm1591_vm13, %v8687_v51, 0 }
 0x8b8   : > { %7528 = vmatpush3.bf16.xpose.msra.mxu1 %v2613_v55 }
 0x8b9   : > { %7539 = vmatprep.subr.bf16.mxu1 %v8192_v1 }
 0x8bf   : > { %7530 = vmatmul.mubr.msk.bf16.vlgmr.msra.gmra.mrb[56].mxu1 %vm1591_vm13, %v8687_v51 }
 0x8c0   : > { %7541 = vmatprep.mubr.msk.bf16.mxu1 %vm8193_vm1, %v8192_v1 }
 0x8c1   : > { %v2269_v6 = vpop.f32.mrb[40].mxu0 }
 0x8c2   : > { %v2298_v56 = vmul.f32 2.927, %v2269_v6  ;;  %v7489_v25 = vpop.f32.mrb[41].mxu0  ;;  %v2326_v6 = vmul.f32 4.0848, %v8557_v59 }
 0x8c3   : > { %v2272_v53 = vpop.f32.mrb[42].mxu0 }
 0x8c4   : > { %v2310_v0 = vadd.f32 %v2298_v56, %v2286_v7  ;;  %v2299_v57 = vmul.f32 2.927, %v2272_v53  ;;  %v7490_v28 = vpop.f32.mrb[43].mxu0  ;;  %v2327_v53 = vmul.f32 4.0848, %v8560_v60 }
 0x8c6   : > { %v2311_v63 = vadd.f32 %v2299_v57, %v2287_v38 }
 0x8c8   : > { %v2317_v62 = vpack.c.bf16 %v2311_v63, %v2310_v0 }
 0x8ca   : > { %7524 = vmatmul.mubr.msk.bf16.vlgmr.msra.gmra.mrb[52].mxu0 %vm1591_vm13, %v2317_v62 }
 0x8cb   : > { %7535 = vmatprep.mubr.msk.bf16.mxu0 %vm8193_vm1, %v8192_v1 }
 0x900   : > { %v2411_v5 = vpop.f32.mrb[44].mxu0 }
 0x901   : > { %v8702_v9 = vadd.f32 %v2411_v5, %v2320_v2  ;;  %v7501_v10 = vpop.f32.mrb[45].mxu0 }
 0x902   : > { %v2414_v3 = vpop.f32.mrb[46].mxu0  ;;  %v2328_v10 = vmul.f32 4.0848, %v8578_v47 }
 0x903   : > { %v8705_v58 = vadd.f32 %v2414_v3, %v2321_v35  ;;  %v7502_v4 = vpop.f32.mrb[47].mxu0 }
 0x904   : > { %v2455_v61 = vpop.f32.mrb[48].mxu1 }
 0x905   : > { %v8710_v12 = vpack.c.bf16 %v8705_v58, %v8702_v9  ;;  %v8712_v23 = vadd.f32 %v2455_v61, %v2322_v8  ;;  %v7507_v15 = vpop.f32.mrb[49].mxu1  ;;  %v2329_v8 = vmul.f32 4.0848, %v8581_v48 }
 0x906   : > { %v2458_v30 = vpop.f32.mrb[50].mxu1 }
 0x907   : > { %v8715_v37 = vadd.f32 %v2458_v30, %v2323_v29  ;;  %v7508_v19 = vpop.f32.mrb[51].mxu1  ;;  %v2657_v21 = vsel %vm1591_vm13, %v8710_v12, 0 }
 0x908   : > { %7534 = vmatpush3.bf16.xpose.msra.mxu0 %v2657_v21  ;;  %v2499_v49 = vpop.f32.mrb[48].mxu0 }
 0x909   : > { %v8722_v26 = vpack.c.bf16 %v8715_v37, %v8712_v23  ;;  %7545 = vmatprep.subr.bf16.mxu0 %v8192_v1  ;;  %v8725_v44 = vadd.f32 %v2499_v49, %v2324_v41  ;;  %v7513_v27 = vpop.f32.mrb[49].mxu0 }
 0x90a   : > { %v2502_v46 = vpop.f32.mrb[50].mxu0 }
 0x90b   : > { %v2701_v50 = vsel %vm1591_vm13, %v8722_v26, 0  ;;  %v8730_v52 = vadd.f32 %v2502_v46, %v2325_v13  ;;  %v7514_v32 = vpop.f32.mrb[51].mxu0 }
 0x90c   : > { %7540 = vmatpush3.bf16.xpose.msra.mxu1 %v2701_v50 }
 0x90d   : > { %7551 = vmatprep.subr.bf16.mxu1 %v8192_v1  ;;  %v8735_v55 = vpack.c.bf16 %v8730_v52, %v8725_v44 }
 0x90f   : > { %7536 = vmatmul.mubr.msk.bf16.vlgmr.msra.gmra.mrb[56].mxu0 %vm1591_vm13, %v8710_v12  ;;  %v2745_v34 = vsel %vm1591_vm13, %v8735_v55, 0 }
 0x910   : > { %7547 = vmatprep.mubr.msk.bf16.mxu0 %vm8193_vm1, %v8192_v1  ;;  %7546 = vmatpush3.bf16.xpose.msra.mxu0 %v2745_v34 }
 0x911   : > { %7557 = vmatprep.subr.bf16.mxu0 %v8192_v1 }
 0x913   : > { %7542 = vmatmul.mubr.msk.bf16.vlgmr.msra.gmra.mrb[60].mxu1 %vm1591_vm13, %v8722_v26 }
 0x914   : > { %7553 = vmatprep.mubr.msk.bf16.mxu1 %vm8193_vm1, %v8192_v1 }
 0x917   : > { %7548 = vmatmul.mubr.msk.bf16.vlgmr.msra.gmra.mrb[60].mxu0 %vm1591_vm13, %v8735_v55 }
 0x918   : > { %7559 = vmatprep.mubr.msk.bf16.mxu0 %vm8193_vm1, %v8192_v1 }
 0x93d   : > { %v2543_v7 = vpop.f32.mrb[52].mxu1 }
 0x93e   : > { %v8753_v56 = vadd.f32 %v2543_v7, %v2326_v6  ;;  %v7519_v25 = vpop.f32.mrb[53].mxu1 }
 0x93f   : > { %v2546_v38 = vpop.f32.mrb[54].mxu1 }
 0x940   : > { %v8756_v0 = vadd.f32 %v2546_v38, %v2327_v53  ;;  %v7520_v57 = vpop.f32.mrb[55].mxu1 }
 0x942   : > { %v8760_v28 = vpack.c.bf16 %v8756_v0, %v8753_v56 }
 0x944   : > { %v2789_v63 = vsel %vm1591_vm13, %v8760_v28, 0 }
 0x945   : > { %7552 = vmatpush3.bf16.xpose.msra.mxu1 %v2789_v63 }
 0x946   : > { %7563 = vmatprep.subr.bf16.mxu1 %v8192_v1 }
 0x94c   : > { %7554 = vmatmul.mubr.msk.bf16.vlgmr.msra.gmra.mrb[64].mxu1 %vm1591_vm13, %v8760_v28 }
 0x94d   : > { %7565 = vmatprep.mubr.msk.bf16.mxu1 %vm8193_vm1, %v8192_v1 }
 0x992   : > { %v2649_v59 = vpop.f32.mrb[56].mxu1 }
 0x993   : > { %v7531_v60 = vpop.f32.mrb[57].mxu1 }
 0x994   : > { %v8769_v62 = vpop.f32.mrb[58].mxu1 }
 0x995   : > { %v2876_v2 = vpack.c.bf16 %v8769_v62, %v2649_v59  ;;  %v7532_v5 = vpop.f32.mrb[59].mxu1 }
 0x997   : > { %7564 = vmatpush3.bf16.msra.mxu1 %v2876_v2 }
 0x998   : > { %7575 = vmatprep.subr.bf16.mxu1 %v8192_v1 }
 0x99a   : > { %7566 = vmatmul.mubr.msk.bf16.vlgmr.msra.gmra.mrb[68].mxu1 %vm1591_vm13, %v2876_v2 }
 0x99b   : > { %7577 = vmatprep.mubr.msk.bf16.mxu1 %vm8193_vm1, %v8192_v1 }
 0x99d   : > { %v2587_v35 = vpop.f32.mrb[52].mxu0 }
 0x99e   : > { %v8777_v3 = vadd.f32 %v2587_v35, %v2328_v10  ;;  %v7525_v4 = vpop.f32.mrb[53].mxu0  ;;  %v3146_v10 = vmul.f32 -6.3029, %v2649_v59 }
 0x99f   : > { %v2590_v61 = vpop.f32.mrb[54].mxu0 }
 0x9a0   : > { %v8780_v15 = vadd.f32 %v2590_v61, %v2329_v8  ;;  %v7526_v29 = vpop.f32.mrb[55].mxu0  ;;  %v3147_v61 = vmul.f32 -6.3029, %v8769_v62 }
 0x9a2   : > { %v8784_v30 = vpack.c.bf16 %v8780_v15, %v8777_v3 }
 0x9a4   : > { %v2833_v19 = vsel %vm1591_vm13, %v8784_v30, 0 }
 0x9a5   : > { %7558 = vmatpush3.bf16.xpose.msra.mxu0 %v2833_v19 }
 0x9a6   : > { %7569 = vmatprep.subr.bf16.mxu0 %v8192_v1 }
 0x9ac   : > { %7560 = vmatmul.mubr.msk.bf16.vlgmr.msra.gmra.mrb[64].mxu0 %vm1591_vm13, %v8784_v30 }
 0x9ad   : > { %7571 = vmatprep.mubr.msk.bf16.mxu0 %vm8193_vm1, %v8192_v1 }
 0x9e2   : > { %v8793_v47 = vpop.f32.mrb[56].mxu0 }
 0x9e3   : > { %v7537_v48 = vpop.f32.mrb[57].mxu0 }
 0x9e4   : > { %v8795_v21 = vpop.f32.mrb[58].mxu0 }
 0x9e5   : > { %v2877_v41 = vpack.c.bf16 %v8795_v21, %v8793_v47  ;;  %v7538_v49 = vpop.f32.mrb[59].mxu0 }
 0x9e6   : > { %v8799_v27 = vpop.f32.mrb[60].mxu1 }
 0x9e7   : > { %v7543_v13 = vpop.f32.mrb[61].mxu1  ;;  %7570 = vmatpush3.bf16.msra.mxu0 %v2877_v41 }
 0x9e8   : > { %v8801_v46 = vpop.f32.mrb[62].mxu1  ;;  %7581 = vmatprep.subr.bf16.mxu0 %v8192_v1 }
 0x9e9   : > { %v2878_v50 = vpack.c.bf16 %v8801_v46, %v8799_v27  ;;  %v7544_v32 = vpop.f32.mrb[63].mxu1 }
 0x9ea   : > { %7572 = vmatmul.mubr.msk.bf16.vlgmr.msra.gmra.mrb[68].mxu0 %vm1591_vm13, %v2877_v41  ;;  %v8807_v34 = vpop.f32.mrb[60].mxu0  ;;  %v3148_v32 = vmul.f32 -6.3029, %v8793_v47 }
 0x9eb   : > { %7576 = vmatpush3.bf16.msra.mxu1 %v2878_v50  ;;  %7583 = vmatprep.mubr.msk.bf16.mxu0 %vm8193_vm1, %v8192_v1  ;;  %v7549_v6 = vpop.f32.mrb[61].mxu0 }
 0x9ec   : > { %7587 = vmatprep.subr.bf16.mxu1 %v8192_v1  ;;  %v8812_v7 = vpop.f32.mrb[62].mxu0 }
 0x9ed   : > { %v2879_v25 = vpack.c.bf16 %v8812_v7, %v8807_v34  ;;  %v7550_v53 = vpop.f32.mrb[63].mxu0 }
 0x9ee   : > { %7578 = vmatmul.mubr.msk.bf16.vlgmr.msra.gmra.mrb[72].mxu1 %vm1591_vm13, %v2878_v50 }
 0x9ef   : > { %7589 = vmatprep.mubr.msk.bf16.mxu1 %vm8193_vm1, %v8192_v1  ;;  %7582 = vmatpush3.bf16.msra.mxu0 %v2879_v25 }
 0x9f0   : > { %7593 = vmatprep.subr.bf16.mxu0 %v8192_v1 }
 0x9f2   : > { %7584 = vmatmul.mubr.msk.bf16.vlgmr.msra.gmra.mrb[72].mxu0 %vm1591_vm13, %v2879_v25 }
 0x9f3   : > { %7595 = vmatprep.mubr.msk.bf16.mxu0 %vm8193_vm1, %v8192_v1 }
 0xa1f   : > { %v8823_v38 = vpop.f32.mrb[64].mxu1 }
 0xa20   : > { %v7555_v57 = vpop.f32.mrb[65].mxu1 }
 0xa21   : > { %v8825_v63 = vpop.f32.mrb[66].mxu1  ;;  %v3149_v57 = vmul.f32 -6.3029, %v8795_v21  ;;  %v3152_v21 = vmul.f32 -6.3029, %v8807_v34 }
 0xa22   : > { %v2880_v60 = vpack.c.bf16 %v8825_v63, %v8823_v38  ;;  %v7556_v2 = vpop.f32.mrb[67].mxu1 }
 0xa24   : > { %7588 = vmatpush3.bf16.msra.mxu1 %v2880_v60 }
 0xa25   : > { %7599 = vmatprep.subr.bf16.mxu1 %v8192_v1 }
 0xa27   : > { %7590 = vmatmul.mubr.msk.bf16.vlgmr.msra.gmra.mrb[76].mxu1 %vm1591_vm13, %v2880_v60 }
 0xa28   : > { %7600 = vmatpush3.bf16.msra.mxu1 %v8687_v51  ;;  %7601 = vmatprep.mubr.msk.bf16.mxu1 %vm8193_vm1, %v8192_v1 }
 0xa29   : > { %7611 = vmatprep.subr.bf16.mxu1 %v8192_v1 }
 0xa6d   : > { %v2919_v5 = vpop.f32.mrb[68].mxu1 }
 0xa6e   : > { %v3158_v35 = vmul.f32 2.6377, %v2919_v5  ;;  %v7567_v4 = vpop.f32.mrb[69].mxu1 }
 0xa6f   : > { %v2922_v8 = vpop.f32.mrb[70].mxu1 }
 0xa70   : > { %v3170_v29 = vadd.f32 %v3158_v35, %v3146_v10  ;;  %v3159_v19 = vmul.f32 2.6377, %v2922_v8  ;;  %v7568_v48 = vpop.f32.mrb[71].mxu1  ;;  %v3150_v35 = vmul.f32 -6.3029, %v8799_v27 }
 0xa72   : > { %v3171_v41 = vadd.f32 %v3159_v19, %v3147_v61 }
 0xa74   : > { %v3182_v49 = vpack.c.bf16 %v3171_v41, %v3170_v29  ;;  %v3151_v29 = vmul.f32 -6.3029, %v8801_v46  ;;  %v3153_v46 = vmul.f32 -6.3029, %v8812_v7  ;;  %v3154_v7 = vmul.f32 -6.3029, %v8823_v38 }
 0xa76   : > { %7602 = vmatmul.mubr.msk.bf16.vlgmr.msra.gmra.mrb[80].mxu1 %vm1591_vm13, %v3182_v49 }
 0xa77   : > { %7612 = vmatpush3.bf16.msra.mxu1 %v8722_v26  ;;  %7613 = vmatprep.mubr.msk.bf16.mxu1 %vm8193_vm1, %v8192_v1 }
 0xa78   : > { %7623 = vmatprep.subr.bf16.mxu1 %v8192_v1 }
 0xa7f   : > { %v8841_v51 = vpop.f32.mrb[64].mxu0 }
 0xa80   : > { %v7561_v59 = vpop.f32.mrb[65].mxu0 }
 0xa81   : > { %v8843_v13 = vpop.f32.mrb[66].mxu0 }
 0xa82   : > { %v2881_v62 = vpack.c.bf16 %v8843_v13, %v8841_v51  ;;  %v7562_v50 = vpop.f32.mrb[67].mxu0 }
 0xa84   : > { %7594 = vmatpush3.bf16.msra.mxu0 %v2881_v62 }
 0xa85   : > { %7605 = vmatprep.subr.bf16.mxu0 %v8192_v1 }
 0xa87   : > { %7596 = vmatmul.mubr.msk.bf16.vlgmr.msra.gmra.mrb[76].mxu0 %vm1591_vm13, %v2881_v62 }
 0xa88   : > { %7606 = vmatpush3.bf16.msra.mxu0 %v8710_v12  ;;  %7607 = vmatprep.mubr.msk.bf16.mxu0 %vm8193_vm1, %v8192_v1 }
 0xa89   : > { %7617 = vmatprep.subr.bf16.mxu0 %v8192_v1 }
 0xabd   : > { %v2963_v26 = vpop.f32.mrb[68].mxu0 }
 0xabe   : > { %v3160_v6 = vmul.f32 2.6377, %v2963_v26  ;;  %v7573_v25 = vpop.f32.mrb[69].mxu0 }
 0xabf   : > { %v2966_v53 = vpop.f32.mrb[70].mxu0 }
 0xac0   : > { %v3172_v60 = vadd.f32 %v3160_v6, %v3148_v32  ;;  %v3161_v2 = vmul.f32 2.6377, %v2966_v53  ;;  %v7574_v5 = vpop.f32.mrb[71].mxu0 }
 0xac1   : > { %v3007_v10 = vpop.f32.mrb[72].mxu1 }
 0xac2   : > { %v3173_v12 = vadd.f32 %v3161_v2, %v3149_v57  ;;  %v3162_v4 = vmul.f32 2.6377, %v3007_v10  ;;  %v7579_v8 = vpop.f32.mrb[73].mxu1  ;;  %v3155_v2 = vmul.f32 -6.3029, %v8825_v63 }
 0xac3   : > { %v3010_v61 = vpop.f32.mrb[74].mxu1 }
 0xac4   : > { %v3183_v19 = vpack.c.bf16 %v3173_v12, %v3172_v60  ;;  %v3174_v48 = vadd.f32 %v3162_v4, %v3150_v35  ;;  %v3163_v47 = vmul.f32 2.6377, %v3010_v61  ;;  %v7580_v41 = vpop.f32.mrb[75].mxu1 }
 0xac5   : > { %v3051_v59 = vpop.f32.mrb[72].mxu0 }
 0xac6   : > { %v3175_v49 = vadd.f32 %v3163_v47, %v3151_v29  ;;  %7608 = vmatmul.mubr.msk.bf16.vlgmr.msra.gmra.mrb[80].mxu0 %vm1591_vm13, %v3183_v19  ;;  %v3164_v62 = vmul.f32 2.6377, %v3051_v59  ;;  %v7585_v50 = vpop.f32.mrb[73].mxu0  ;;  %v3189_v29 = vmul.f32 3.9505, %v8683_v11 }
 0xac7   : > { %7618 = vmatpush3.bf16.msra.mxu0 %v8735_v55  ;;  %7619 = vmatprep.mubr.msk.bf16.mxu0 %vm8193_vm1, %v8192_v1  ;;  %v3054_v26 = vpop.f32.mrb[74].mxu0  ;;  %v3156_v11 = vmul.f32 -6.3029, %v8841_v51 }
 0xac8   : > { %v3184_v27 = vpack.c.bf16 %v3175_v49, %v3174_v48  ;;  %7629 = vmatprep.subr.bf16.mxu0 %v8192_v1  ;;  %v3176_v32 = vadd.f32 %v3164_v62, %v3152_v21  ;;  %v3165_v6 = vmul.f32 2.6377, %v3054_v26  ;;  %v7586_v25 = vpop.f32.mrb[75].mxu0  ;;  %v3157_v62 = vmul.f32 -6.3029, %v8843_v13 }
 0xaca   : > { %7614 = vmatmul.mubr.msk.bf16.vlgmr.msra.gmra.mrb[84].mxu1 %vm1591_vm13, %v3184_v27  ;;  %v3177_v53 = vadd.f32 %v3165_v6, %v3153_v46  ;;  %v3190_v6 = vmul.f32 3.9505, %v8702_v9 }
 0xacb   : > { %7624 = vmatpush3.bf16.msra.mxu1 %v8760_v28  ;;  %7625 = vmatprep.mubr.msk.bf16.mxu1 %vm8193_vm1, %v8192_v1 }
 0xacc   : > { %7635 = vmatprep.subr.bf16.mxu1 %v8192_v1  ;;  %v3185_v55 = vpack.c.bf16 %v3177_v53, %v3176_v32 }
 0xace   : > { %7620 = vmatmul.mubr.msk.bf16.vlgmr.msra.gmra.mrb[84].mxu0 %vm1591_vm13, %v3185_v55  ;;  %v3191_v55 = vmul.f32 3.9505, %v8705_v58 }
 0xacf   : > { %7630 = vmatpush3.bf16.msra.mxu0 %v8784_v30  ;;  %7631 = vmatprep.mubr.msk.bf16.mxu0 %vm8193_vm1, %v8192_v1  ;;  %v3188_v30 = vmul.f32 3.9505, %v8680_v45 }
 0xad0   : > { %7641 = vmatprep.subr.bf16.mxu0 %v8192_v1 }
 0xafa   : > { %v3095_v34 = vpop.f32.mrb[76].mxu1 }
 0xafb   : > { %v3166_v57 = vmul.f32 2.6377, %v3095_v34  ;;  %v7591_v28 = vpop.f32.mrb[77].mxu1 }
 0xafc   : > { %v3098_v60 = vpop.f32.mrb[78].mxu1 }
 0xafd   : > { %v3178_v5 = vadd.f32 %v3166_v57, %v3154_v7  ;;  %v3167_v10 = vmul.f32 2.6377, %v3098_v60  ;;  %v7592_v35 = vpop.f32.mrb[79].mxu1  ;;  %v3192_v57 = vmul.f32 3.9505, %v8712_v23 }
 0xaff   : > { %v3179_v12 = vadd.f32 %v3167_v10, %v3155_v2 }
 0xb01   : > { %v3186_v4 = vpack.c.bf16 %v3179_v12, %v3178_v5  ;;  %v3193_v5 = vmul.f32 3.9505, %v8715_v37 }
 0xb03   : > { %7626 = vmatmul.mubr.msk.bf16.vlgmr.msra.gmra.mrb[88].mxu1 %vm1591_vm13, %v3186_v4  ;;  %v3194_v4 = vmul.f32 3.9505, %v8725_v44 }
 0xb04   : > { %7637 = vmatprep.mubr.msk.bf16.mxu1 %vm8193_vm1, %v8192_v1 }
 0xb49   : > { %v3237_v8 = vpop.f32.mrb[80].mxu1 }
 0xb4a   : > { %v8880_v61 = vadd.f32 %v3237_v8, %v3188_v30  ;;  %v7603_v38 = vpop.f32.mrb[81].mxu1 }
 0xb4b   : > { %v3240_v19 = vpop.f32.mrb[82].mxu1  ;;  %v3195_v38 = vmul.f32 3.9505, %v8730_v52 }
 0xb4c   : > { %v8883_v63 = vadd.f32 %v3240_v19, %v3189_v29  ;;  %v7604_v48 = vpop.f32.mrb[83].mxu1 }
 0xb4e   : > { %v8887_v47 = vpack.c.bf16 %v8883_v63, %v8880_v61 }
 0xb50   : > { %v3483_v41 = vsel %vm1591_vm13, %v8887_v47, 0 }
 0xb51   : > { %7636 = vmatpush3.bf16.xpose.msra.mxu1 %v3483_v41 }
 0xb52   : > { %7647 = vmatprep.subr.bf16.mxu1 %v8192_v1 }
 0xb58   : > { %7638 = vmatmul.mubr.msk.bf16.vlgmr.msra.gmra.mrb[92].mxu1 %vm1591_vm13, %v8887_v47 }
 0xb59   : > { %7649 = vmatprep.mubr.msk.bf16.mxu1 %vm8193_vm1, %v8192_v1 }
 0xb5a   : > { %v3139_v45 = vpop.f32.mrb[76].mxu0 }
 0xb5b   : > { %v3168_v49 = vmul.f32 2.6377, %v3139_v45  ;;  %v7597_v59 = vpop.f32.mrb[77].mxu0  ;;  %v3196_v45 = vmul.f32 3.9505, %v8753_v56 }
 0xb5c   : > { %v3142_v21 = vpop.f32.mrb[78].mxu0 }
 0xb5d   : > { %v3180_v50 = vadd.f32 %v3168_v49, %v3156_v11  ;;  %v3169_v27 = vmul.f32 2.6377, %v3142_v21  ;;  %v7598_v26 = vpop.f32.mrb[79].mxu0  ;;  %v3197_v21 = vmul.f32 3.9505, %v8756_v0 }
 0xb5f   : > { %v3181_v46 = vadd.f32 %v3169_v27, %v3157_v62 }
 0xb61   : > { %v3187_v32 = vpack.c.bf16 %v3181_v46, %v3180_v50 }
 0xb63   : > { %7632 = vmatmul.mubr.msk.bf16.vlgmr.msra.gmra.mrb[88].mxu0 %vm1591_vm13, %v3187_v32 }
 0xb64   : > { %7643 = vmatprep.mubr.msk.bf16.mxu0 %vm8193_vm1, %v8192_v1 }
 0xb99   : > { %v3281_v25 = vpop.f32.mrb[80].mxu0 }
 0xb9a   : > { %v8902_v53 = vadd.f32 %v3281_v25, %v3190_v6  ;;  %v7609_v51 = vpop.f32.mrb[81].mxu0 }
 0xb9b   : > { %v3284_v34 = vpop.f32.mrb[82].mxu0  ;;  %v3198_v51 = vmul.f32 3.9505, %v8777_v3 }
 0xb9c   : > { %v8905_v13 = vadd.f32 %v3284_v34, %v3191_v55  ;;  %v7610_v7 = vpop.f32.mrb[83].mxu0 }
 0xb9d   : > { %v3325_v28 = vpop.f32.mrb[84].mxu1 }
 0xb9e   : > { %v8910_v60 = vpack.c.bf16 %v8905_v13, %v8902_v53  ;;  %v8912_v2 = vadd.f32 %v3325_v28, %v3192_v57  ;;  %v7615_v9 = vpop.f32.mrb[85].mxu1  ;;  %v3199_v57 = vmul.f32 3.9505, %v8780_v15 }
 0xb9f   : > { %v3328_v10 = vpop.f32.mrb[86].mxu1 }
 0xba0   : > { %v8915_v35 = vadd.f32 %v3328_v10, %v3193_v5  ;;  %v7616_v58 = vpop.f32.mrb[87].mxu1  ;;  %v3527_v12 = vsel %vm1591_vm13, %v8910_v60, 0 }
 0xba1   : > { %7642 = vmatpush3.bf16.xpose.msra.mxu0 %v3527_v12  ;;  %v3369_v30 = vpop.f32.mrb[84].mxu0 }
 0xba2   : > { %v8922_v23 = vpack.c.bf16 %v8915_v35, %v8912_v2  ;;  %7653 = vmatprep.subr.bf16.mxu0 %v8192_v1  ;;  %v8925_v8 = vadd.f32 %v3369_v30, %v3194_v4  ;;  %v7621_v37 = vpop.f32.mrb[85].mxu0 }
 0xba3   : > { %v3372_v29 = vpop.f32.mrb[86].mxu0 }
 0xba4   : > { %v3571_v19 = vsel %vm1591_vm13, %v8922_v23, 0  ;;  %v8930_v48 = vadd.f32 %v3372_v29, %v3195_v38  ;;  %v7622_v44 = vpop.f32.mrb[87].mxu0 }
 0xba5   : > { %7648 = vmatpush3.bf16.xpose.msra.mxu1 %v3571_v19 }
 0xba6   : > { %7659 = vmatprep.subr.bf16.mxu1 %v8192_v1  ;;  %v8935_v41 = vpack.c.bf16 %v8930_v48, %v8925_v8 }
 0xba8   : > { %7644 = vmatmul.mubr.msk.bf16.vlgmr.msra.gmra.mrb[92].mxu0 %vm1591_vm13, %v8910_v60  ;;  %v3615_v52 = vsel %vm1591_vm13, %v8935_v41, 0 }
 0xba9   : > { %7655 = vmatprep.mubr.msk.bf16.mxu0 %vm8193_vm1, %v8192_v1  ;;  %7654 = vmatpush3.bf16.xpose.msra.mxu0 %v3615_v52 }
 0xbaa   : > { %7665 = vmatprep.subr.bf16.mxu0 %v8192_v1 }
 0xbac   : > { %7650 = vmatmul.mubr.msk.bf16.vlgmr.msra.gmra.mrb[96].mxu1 %vm1591_vm13, %v8922_v23 }
 0xbad   : > { %7661 = vmatprep.mubr.msk.bf16.mxu1 %vm8193_vm1, %v8192_v1 }
 0xbb0   : > { %7656 = vmatmul.mubr.msk.bf16.vlgmr.msra.gmra.mrb[96].mxu0 %vm1591_vm13, %v8935_v41 }
 0xbb1   : > { %7667 = vmatprep.mubr.msk.bf16.mxu0 %vm8193_vm1, %v8192_v1 }
 0xbd6   : > { %v3413_v11 = vpop.f32.mrb[88].mxu1 }
 0xbd7   : > { %v8953_v49 = vadd.f32 %v3413_v11, %v3196_v45  ;;  %v7627_v59 = vpop.f32.mrb[89].mxu1 }
 0xbd8   : > { %v3416_v62 = vpop.f32.mrb[90].mxu1 }
 0xbd9   : > { %v8956_v50 = vadd.f32 %v3416_v62, %v3197_v21  ;;  %v7628_v27 = vpop.f32.mrb[91].mxu1 }
 0xbdb   : > { %v8960_v26 = vpack.c.bf16 %v8956_v50, %v8953_v49 }
 0xbdd   : > { %v3659_v46 = vsel %vm1591_vm13, %v8960_v26, 0 }
 0xbde   : > { %7660 = vmatpush3.bf16.xpose.msra.mxu1 %v3659_v46 }
 0xbdf   : > { %7671 = vmatprep.subr.bf16.mxu1 %v8192_v1 }
 0xbe5   : > { %7662 = vmatmul.mubr.msk.bf16.vlgmr.msra.gmra.mrb[100].mxu1 %vm1591_vm13, %v8960_v26 }
 0xbe6   : > { %7673 = vmatprep.mubr.msk.bf16.mxu1 %vm8193_vm1, %v8192_v1 }
 0xc2b   : > { %v3519_v56 = vpop.f32.mrb[92].mxu1 }
 0xc2c   : > { %v7639_v0 = vpop.f32.mrb[93].mxu1 }
 0xc2d   : > { %v8969_v32 = vpop.f32.mrb[94].mxu1 }
 0xc2e   : > { %v3746_v6 = vpack.c.bf16 %v8969_v32, %v3519_v56  ;;  %v7640_v25 = vpop.f32.mrb[95].mxu1 }
 0xc30   : > { %7672 = vmatpush3.bf16.msra.mxu1 %v3746_v6 }
 0xc31   : > { %7683 = vmatprep.subr.bf16.mxu1 %v8192_v1 }
 0xc33   : > { %7674 = vmatmul.mubr.msk.bf16.vlgmr.msra.gmra.mrb[104].mxu1 %vm1591_vm13, %v3746_v6 }
 0xc34   : > { %7685 = vmatprep.mubr.msk.bf16.mxu1 %vm8193_vm1, %v8192_v1 }
 0xc36   : > { %v3457_v55 = vpop.f32.mrb[88].mxu0 }
 0xc37   : > { %v8977_v34 = vadd.f32 %v3457_v55, %v3198_v51  ;;  %v7633_v7 = vpop.f32.mrb[89].mxu0  ;;  %v4016_v51 = vmul.f32 -5.5913, %v3519_v56 }
 0xc38   : > { %v3460_v28 = vpop.f32.mrb[90].mxu0 }
 0xc39   : > { %v8980_v9 = vadd.f32 %v3460_v28, %v3199_v57  ;;  %v7634_v5 = vpop.f32.mrb[91].mxu0  ;;  %v4017_v28 = vmul.f32 -5.5913, %v8969_v32 }
 0xc3b   : > { %v8984_v10 = vpack.c.bf16 %v8980_v9, %v8977_v34 }
 0xc3d   : > { %v3703_v58 = vsel %vm1591_vm13, %v8984_v10, 0 }
 0xc3e   : > { %7666 = vmatpush3.bf16.xpose.msra.mxu0 %v3703_v58 }
 0xc3f   : > { %7677 = vmatprep.subr.bf16.mxu0 %v8192_v1 }
 0xc45   : > { %7668 = vmatmul.mubr.msk.bf16.vlgmr.msra.gmra.mrb[100].mxu0 %vm1591_vm13, %v8984_v10 }
 0xc46   : > { %7679 = vmatprep.mubr.msk.bf16.mxu0 %vm8193_vm1, %v8192_v1 }
 0xc7b   : > { %v8993_v3 = vpop.f32.mrb[92].mxu0 }
 0xc7c   : > { %v7645_v15 = vpop.f32.mrb[93].mxu0 }
 0xc7d   : > { %v8995_v12 = vpop.f32.mrb[94].mxu0 }
 0xc7e   : > { %v3747_v4 = vpack.c.bf16 %v8995_v12, %v8993_v3  ;;  %v7646_v30 = vpop.f32.mrb[95].mxu0 }
 0xc7f   : > { %v8999_v37 = vpop.f32.mrb[96].mxu1 }
 0xc80   : > { %v7651_v38 = vpop.f32.mrb[97].mxu1  ;;  %7678 = vmatpush3.bf16.msra.mxu0 %v3747_v4 }
 0xc81   : > { %v9001_v29 = vpop.f32.mrb[98].mxu1  ;;  %7689 = vmatprep.subr.bf16.mxu0 %v8192_v1 }
 0xc82   : > { %v3748_v19 = vpack.c.bf16 %v9001_v29, %v8999_v37  ;;  %v7652_v44 = vpop.f32.mrb[99].mxu1 }
 0xc83   : > { %7680 = vmatmul.mubr.msk.bf16.vlgmr.msra.gmra.mrb[104].mxu0 %vm1591_vm13, %v3747_v4  ;;  %v9007_v52 = vpop.f32.mrb[96].mxu0  ;;  %v4018_v44 = vmul.f32 -5.5913, %v8993_v3 }
 0xc84   : > { %7684 = vmatpush3.bf16.msra.mxu1 %v3748_v19  ;;  %7691 = vmatprep.mubr.msk.bf16.mxu0 %vm8193_vm1, %v8192_v1  ;;  %v7657_v45 = vpop.f32.mrb[97].mxu0 }
 0xc85   : > { %7695 = vmatprep.subr.bf16.mxu1 %v8192_v1  ;;  %v9012_v11 = vpop.f32.mrb[98].mxu0 }
 0xc86   : > { %v3749_v59 = vpack.c.bf16 %v9012_v11, %v9007_v52  ;;  %v7658_v21 = vpop.f32.mrb[99].mxu0 }
 0xc87   : > { %7686 = vmatmul.mubr.msk.bf16.vlgmr.msra.gmra.mrb[108].mxu1 %vm1591_vm13, %v3748_v19 }
 0xc88   : > { %7697 = vmatprep.mubr.msk.bf16.mxu1 %vm8193_vm1, %v8192_v1  ;;  %7690 = vmatpush3.bf16.msra.mxu0 %v3749_v59 }
 0xc89   : > { %7701 = vmatprep.subr.bf16.mxu0 %v8192_v1 }
 0xc8b   : > { %7692 = vmatmul.mubr.msk.bf16.vlgmr.msra.gmra.mrb[108].mxu0 %vm1591_vm13, %v3749_v59 }
 0xc8c   : > { %7703 = vmatprep.mubr.msk.bf16.mxu0 %vm8193_vm1, %v8192_v1 }
 0xcb8   : > { %v9023_v62 = vpop.f32.mrb[100].mxu1 }
 0xcb9   : > { %v7663_v27 = vpop.f32.mrb[101].mxu1 }
 0xcba   : > { %v9025_v46 = vpop.f32.mrb[102].mxu1  ;;  %v4019_v27 = vmul.f32 -5.5913, %v8995_v12  ;;  %v4022_v12 = vmul.f32 -5.5913, %v9007_v52 }
 0xcbb   : > { %v3750_v0 = vpack.c.bf16 %v9025_v46, %v9023_v62  ;;  %v7664_v6 = vpop.f32.mrb[103].mxu1 }
 0xcbd   : > { %7696 = vmatpush3.bf16.msra.mxu1 %v3750_v0 }
 0xcbe   : > { %7707 = vmatprep.subr.bf16.mxu1 %v8192_v1 }
 0xcc0   : > { %7698 = vmatmul.mubr.msk.bf16.vlgmr.msra.gmra.mrb[112].mxu1 %vm1591_vm13, %v3750_v0 }
 0xcc1   : > { %7708 = vmatpush3.bf16.msra.mxu1 %v8887_v47  ;;  %7709 = vmatprep.mubr.msk.bf16.mxu1 %vm8193_vm1, %v8192_v1 }
 0xcc2   : > { %7719 = vmatprep.subr.bf16.mxu1 %v8192_v1 }
 0xd06   : > { %v3789_v25 = vpop.f32.mrb[104].mxu1 }
 0xd07   : > { %v4028_v55 = vmul.f32 2.3037, %v3789_v25  ;;  %v7675_v7 = vpop.f32.mrb[105].mxu1 }
 0xd08   : > { %v3792_v57 = vpop.f32.mrb[106].mxu1 }
 0xd09   : > { %v4040_v5 = vadd.f32 %v4028_v55, %v4016_v51  ;;  %v4029_v58 = vmul.f32 2.3037, %v3792_v57  ;;  %v7676_v15 = vpop.f32.mrb[107].mxu1  ;;  %v4020_v55 = vmul.f32 -5.5913, %v8999_v37 }
 0xd0b   : > { %v4041_v4 = vadd.f32 %v4029_v58, %v4017_v28 }
 0xd0d   : > { %v4052_v30 = vpack.c.bf16 %v4041_v4, %v4040_v5  ;;  %v4021_v5 = vmul.f32 -5.5913, %v9001_v29  ;;  %v4023_v29 = vmul.f32 -5.5913, %v9012_v11  ;;  %v4024_v11 = vmul.f32 -5.5913, %v9023_v62 }
 0xd0f   : > { %7710 = vmatmul.mubr.msk.bf16.vlgmr.msra.gmra.mrb[116].mxu1 %vm1591_vm13, %v4052_v30 }
 0xd10   : > { %7720 = vmatpush3.bf16.msra.mxu1 %v8922_v23  ;;  %7721 = vmatprep.mubr.msk.bf16.mxu1 %vm8193_vm1, %v8192_v1 }
 0xd11   : > { %7731 = vmatprep.subr.bf16.mxu1 %v8192_v1 }
 0xd18   : > { %v9041_v47 = vpop.f32.mrb[100].mxu0 }
 0xd19   : > { %v7669_v56 = vpop.f32.mrb[101].mxu0 }
 0xd1a   : > { %v9043_v38 = vpop.f32.mrb[102].mxu0 }
 0xd1b   : > { %v3751_v32 = vpack.c.bf16 %v9043_v38, %v9041_v47  ;;  %v7670_v19 = vpop.f32.mrb[103].mxu0 }
 0xd1d   : > { %7702 = vmatpush3.bf16.msra.mxu0 %v3751_v32 }
 0xd1e   : > { %7713 = vmatprep.subr.bf16.mxu0 %v8192_v1 }
 0xd20   : > { %7704 = vmatmul.mubr.msk.bf16.vlgmr.msra.gmra.mrb[112].mxu0 %vm1591_vm13, %v3751_v32 }
 0xd21   : > { %7714 = vmatpush3.bf16.msra.mxu0 %v8910_v60  ;;  %7715 = vmatprep.mubr.msk.bf16.mxu0 %vm8193_vm1, %v8192_v1 }
 0xd22   : > { %7725 = vmatprep.subr.bf16.mxu0 %v8192_v1 }
 0xd56   : > { %v3833_v23 = vpop.f32.mrb[104].mxu0 }
 0xd57   : > { %v4030_v45 = vmul.f32 2.3037, %v3833_v23  ;;  %v7681_v59 = vpop.f32.mrb[105].mxu0 }
 0xd58   : > { %v3836_v21 = vpop.f32.mrb[106].mxu0 }
 0xd59   : > { %v4042_v0 = vadd.f32 %v4030_v45, %v4018_v44  ;;  %v4031_v6 = vmul.f32 2.3037, %v3836_v21  ;;  %v7682_v25 = vpop.f32.mrb[107].mxu0 }
 0xd5a   : > { %v3877_v51 = vpop.f32.mrb[108].mxu1 }
 0xd5b   : > { %v4043_v60 = vadd.f32 %v4031_v6, %v4019_v27  ;;  %v4032_v7 = vmul.f32 2.3037, %v3877_v51  ;;  %v7687_v57 = vpop.f32.mrb[109].mxu1  ;;  %v4025_v6 = vmul.f32 -5.5913, %v9025_v46 }
 0xd5c   : > { %v3880_v28 = vpop.f32.mrb[110].mxu1 }
 0xd5d   : > { %v4053_v58 = vpack.c.bf16 %v4043_v60, %v4042_v0  ;;  %v4044_v15 = vadd.f32 %v4032_v7, %v4020_v55  ;;  %v4033_v3 = vmul.f32 2.3037, %v3880_v28  ;;  %v7688_v4 = vpop.f32.mrb[111].mxu1 }
 0xd5e   : > { %v3921_v56 = vpop.f32.mrb[108].mxu0 }
 0xd5f   : > { %v4045_v30 = vadd.f32 %v4033_v3, %v4021_v5  ;;  %7716 = vmatmul.mubr.msk.bf16.vlgmr.msra.gmra.mrb[116].mxu0 %vm1591_vm13, %v4053_v58  ;;  %v4034_v32 = vmul.f32 2.3037, %v3921_v56  ;;  %v7693_v19 = vpop.f32.mrb[109].mxu0  ;;  %v4059_v5 = vmul.f32 3.7418, %v8883_v63 }
 0xd60   : > { %7726 = vmatpush3.bf16.msra.mxu0 %v8935_v41  ;;  %7727 = vmatprep.mubr.msk.bf16.mxu0 %vm8193_vm1, %v8192_v1  ;;  %v3924_v23 = vpop.f32.mrb[110].mxu0  ;;  %v4026_v63 = vmul.f32 -5.5913, %v9041_v47 }
 0xd61   : > { %v4054_v37 = vpack.c.bf16 %v4045_v30, %v4044_v15  ;;  %7737 = vmatprep.subr.bf16.mxu0 %v8192_v1  ;;  %v4046_v44 = vadd.f32 %v4034_v32, %v4022_v12  ;;  %v4035_v45 = vmul.f32 2.3037, %v3924_v23  ;;  %v7694_v59 = vpop.f32.mrb[111].mxu0  ;;  %v4027_v32 = vmul.f32 -5.5913, %v9043_v38 }
 0xd63   : > { %7722 = vmatmul.mubr.msk.bf16.vlgmr.msra.gmra.mrb[120].mxu1 %vm1591_vm13, %v4054_v37  ;;  %v4047_v21 = vadd.f32 %v4035_v45, %v4023_v29  ;;  %v4060_v45 = vmul.f32 3.7418, %v8902_v53 }
 0xd64   : > { %7732 = vmatpush3.bf16.msra.mxu1 %v8960_v26  ;;  %7733 = vmatprep.mubr.msk.bf16.mxu1 %vm8193_vm1, %v8192_v1 }
 0xd65   : > { %7743 = vmatprep.subr.bf16.mxu1 %v8192_v1  ;;  %v4055_v41 = vpack.c.bf16 %v4047_v21, %v4046_v44 }
 0xd67   : > { %7728 = vmatmul.mubr.msk.bf16.vlgmr.msra.gmra.mrb[120].mxu0 %vm1591_vm13, %v4055_v41  ;;  %v4061_v41 = vmul.f32 3.7418, %v8905_v13 }
 0xd68   : > { %7738 = vmatpush3.bf16.msra.mxu0 %v8984_v10  ;;  %7739 = vmatprep.mubr.msk.bf16.mxu0 %vm8193_vm1, %v8192_v1  ;;  %v4058_v10 = vmul.f32 3.7418, %v8880_v61 }
 0xd69   : > { %7749 = vmatprep.subr.bf16.mxu0 %v8192_v1 }
 0xd93   : > { %v3965_v52 = vpop.f32.mrb[112].mxu1 }
 0xd94   : > { %v4036_v27 = vmul.f32 2.3037, %v3965_v52  ;;  %v7699_v26 = vpop.f32.mrb[113].mxu1 }
 0xd95   : > { %v3968_v0 = vpop.f32.mrb[114].mxu1 }
 0xd96   : > { %v4048_v25 = vadd.f32 %v4036_v27, %v4024_v11  ;;  %v4037_v51 = vmul.f32 2.3037, %v3968_v0  ;;  %v7700_v55 = vpop.f32.mrb[115].mxu1  ;;  %v4062_v27 = vmul.f32 3.7418, %v8912_v2 }
 0xd98   : > { %v4049_v60 = vadd.f32 %v4037_v51, %v4025_v6 }
 0xd9a   : > { %v4056_v7 = vpack.c.bf16 %v4049_v60, %v4048_v25  ;;  %v4063_v25 = vmul.f32 3.7418, %v8915_v35 }
 0xd9c   : > { %7734 = vmatmul.mubr.msk.bf16.vlgmr.msra.gmra.mrb[124].mxu1 %vm1591_vm13, %v4056_v7  ;;  %v4064_v7 = vmul.f32 3.7418, %v8925_v8 }
 0xd9d   : > { %7745 = vmatprep.mubr.msk.bf16.mxu1 %vm8193_vm1, %v8192_v1 }
 0xde2   : > { %v4107_v57 = vpop.f32.mrb[116].mxu1 }
 0xde3   : > { %v9080_v28 = vadd.f32 %v4107_v57, %v4058_v10  ;;  %v7711_v62 = vpop.f32.mrb[117].mxu1 }
 0xde4   : > { %v4110_v58 = vpop.f32.mrb[118].mxu1  ;;  %v4065_v62 = vmul.f32 3.7418, %v8930_v48 }
 0xde5   : > { %v9083_v46 = vadd.f32 %v4110_v58, %v4059_v5  ;;  %v7712_v15 = vpop.f32.mrb[119].mxu1 }
 0xde7   : > { %v9087_v3 = vpack.c.bf16 %v9083_v46, %v9080_v28 }
 0xde9   : > { %v4353_v4 = vsel %vm1591_vm13, %v9087_v3, 0 }
 0xdea   : > { %7744 = vmatpush3.bf16.xpose.msra.mxu1 %v4353_v4 }
 0xdeb   : > { %7755 = vmatprep.subr.bf16.mxu1 %v8192_v1 }
 0xdf1   : > { %7746 = vmatmul.mubr.msk.bf16.vlgmr.msra.gmra.mrb[128].mxu1 %vm1591_vm13, %v9087_v3 }
 0xdf2   : > { %7757 = vmatprep.mubr.msk.bf16.mxu1 %vm8193_vm1, %v8192_v1 }
 0xdf3   : > { %v4009_v61 = vpop.f32.mrb[112].mxu0 }
 0xdf4   : > { %v4038_v30 = vmul.f32 2.3037, %v4009_v61  ;;  %v7705_v56 = vpop.f32.mrb[113].mxu0  ;;  %v4066_v61 = vmul.f32 3.7418, %v8953_v49 }
 0xdf5   : > { %v4012_v12 = vpop.f32.mrb[114].mxu0 }
 0xdf6   : > { %v4050_v19 = vadd.f32 %v4038_v30, %v4026_v63  ;;  %v4039_v37 = vmul.f32 2.3037, %v4012_v12  ;;  %v7706_v23 = vpop.f32.mrb[115].mxu0  ;;  %v4067_v12 = vmul.f32 3.7418, %v8956_v50 }
 0xdf8   : > { %v4051_v29 = vadd.f32 %v4039_v37, %v4027_v32 }
 0xdfa   : > { %v4057_v44 = vpack.c.bf16 %v4051_v29, %v4050_v19 }
 0xdfc   : > { %7740 = vmatmul.mubr.msk.bf16.vlgmr.msra.gmra.mrb[124].mxu0 %vm1591_vm13, %v4057_v44 }
 0xdfd   : > { %7751 = vmatprep.mubr.msk.bf16.mxu0 %vm8193_vm1, %v8192_v1 }
 0xe32   : > { %v4151_v59 = vpop.f32.mrb[116].mxu0 }
 0xe33   : > { %v9102_v21 = vadd.f32 %v4151_v59, %v4060_v45  ;;  %v7717_v47 = vpop.f32.mrb[117].mxu0 }
 0xe34   : > { %v4154_v52 = vpop.f32.mrb[118].mxu0  ;;  %v4068_v47 = vmul.f32 3.7418, %v8977_v34 }
 0xe35   : > { %v9105_v38 = vadd.f32 %v4154_v52, %v4061_v41  ;;  %v7718_v11 = vpop.f32.mrb[119].mxu0 }
 0xe36   : > { %v4195_v26 = vpop.f32.mrb[120].mxu1 }
 0xe37   : > { %v9110_v0 = vpack.c.bf16 %v9105_v38, %v9102_v21  ;;  %v9112_v6 = vadd.f32 %v4195_v26, %v4062_v27  ;;  %v7723_v53 = vpop.f32.mrb[121].mxu1  ;;  %v4069_v27 = vmul.f32 3.7418, %v8980_v9 }
 0xe38   : > { %v4198_v51 = vpop.f32.mrb[122].mxu1 }
 0xe39   : > { %v9115_v55 = vadd.f32 %v4198_v51, %v4063_v25  ;;  %v7724_v13 = vpop.f32.mrb[123].mxu1  ;;  %v4397_v60 = vsel %vm1591_vm13, %v9110_v0, 0 }
 0xe3a   : > { %7750 = vmatpush3.bf16.xpose.msra.mxu0 %v4397_v60  ;;  %v4239_v10 = vpop.f32.mrb[120].mxu0 }
 0xe3b   : > { %v9122_v2 = vpack.c.bf16 %v9115_v55, %v9112_v6  ;;  %7761 = vmatprep.subr.bf16.mxu0 %v8192_v1  ;;  %v9125_v57 = vadd.f32 %v4239_v10, %v4064_v7  ;;  %v7729_v35 = vpop.f32.mrb[121].mxu0 }
 0xe3c   : > { %v4242_v5 = vpop.f32.mrb[122].mxu0 }
 0xe3d   : > { %v4441_v58 = vsel %vm1591_vm13, %v9122_v2, 0  ;;  %v9130_v15 = vadd.f32 %v4242_v5, %v4065_v62  ;;  %v7730_v8 = vpop.f32.mrb[123].mxu0 }
 0xe3e   : > { %7756 = vmatpush3.bf16.xpose.msra.mxu1 %v4441_v58 }
 0xe3f   : > { %7767 = vmatprep.subr.bf16.mxu1 %v8192_v1  ;;  %v9135_v4 = vpack.c.bf16 %v9130_v15, %v9125_v57 }
 0xe41   : > { %7752 = vmatmul.mubr.msk.bf16.vlgmr.msra.gmra.mrb[128].mxu0 %vm1591_vm13, %v9110_v0  ;;  %v4485_v48 = vsel %vm1591_vm13, %v9135_v4, 0 }
 0xe42   : > { %7763 = vmatprep.mubr.msk.bf16.mxu0 %vm8193_vm1, %v8192_v1  ;;  %7762 = vmatpush3.bf16.xpose.msra.mxu0 %v4485_v48 }
 0xe43   : > { %7773 = vmatprep.subr.bf16.mxu0 %v8192_v1 }
 0xe45   : > { %7758 = vmatmul.mubr.msk.bf16.vlgmr.msra.gmra.mrb[132].mxu1 %vm1591_vm13, %v9122_v2 }
 0xe46   : > { %7769 = vmatprep.mubr.msk.bf16.mxu1 %vm8193_vm1, %v8192_v1 }
 0xe49   : > { %7764 = vmatmul.mubr.msk.bf16.vlgmr.msra.gmra.mrb[132].mxu0 %vm1591_vm13, %v9135_v4 }
 0xe4a   : > { %7775 = vmatprep.mubr.msk.bf16.mxu0 %vm8193_vm1, %v8192_v1 }
 0xe6f   : > { %v4283_v63 = vpop.f32.mrb[124].mxu1 }
 0xe70   : > { %v9153_v30 = vadd.f32 %v4283_v63, %v4066_v61  ;;  %v7735_v56 = vpop.f32.mrb[125].mxu1 }
 0xe71   : > { %v4286_v32 = vpop.f32.mrb[126].mxu1 }
 0xe72   : > { %v9156_v19 = vadd.f32 %v4286_v32, %v4067_v12  ;;  %v7736_v37 = vpop.f32.mrb[127].mxu1 }
 0xe74   : > { %v9160_v23 = vpack.c.bf16 %v9156_v19, %v9153_v30 }
 0xe76   : > { %v4529_v29 = vsel %vm1591_vm13, %v9160_v23, 0 }
 0xe77   : > { %7768 = vmatpush3.bf16.xpose.msra.mxu1 %v4529_v29 }
 0xe78   : > { %7779 = vmatprep.subr.bf16.mxu1 %v8192_v1 }
 0xe7e   : > { %7770 = vmatmul.mubr.msk.bf16.vlgmr.msra.gmra.mrb[136].mxu1 %vm1591_vm13, %v9160_v23 }
 0xe7f   : > { %7781 = vmatprep.mubr.msk.bf16.mxu1 %vm8193_vm1, %v8192_v1 }
 0xec4   : > { %v4389_v49 = vpop.f32.mrb[128].mxu1 }
 0xec5   : > { %v7747_v50 = vpop.f32.mrb[129].mxu1 }
 0xec6   : > { %v9169_v44 = vpop.f32.mrb[130].mxu1 }
 0xec7   : > { %v4616_v45 = vpack.c.bf16 %v9169_v44, %v4389_v49  ;;  %v7748_v59 = vpop.f32.mrb[131].mxu1 }
 0xec9   : > { %7780 = vmatpush3.bf16.msra.mxu1 %v4616_v45 }
 0xeca   : > { %7791 = vmatprep.subr.bf16.mxu1 %v8192_v1 }
 0xecc   : > { %7782 = vmatmul.mubr.msk.bf16.vlgmr.msra.gmra.mrb[140].mxu1 %vm1591_vm13, %v4616_v45 }
 0xecd   : > { %7793 = vmatprep.mubr.msk.bf16.mxu1 %vm8193_vm1, %v8192_v1 }
 0xecf   : > { %v4327_v41 = vpop.f32.mrb[124].mxu0 }
 0xed0   : > { %v9177_v52 = vadd.f32 %v4327_v41, %v4068_v47  ;;  %v7741_v11 = vpop.f32.mrb[125].mxu0  ;;  %v4886_v47 = vmul.f32 -3.1427, %v4389_v49 }
 0xed1   : > { %v4330_v26 = vpop.f32.mrb[126].mxu0 }
 0xed2   : > { %v9180_v53 = vadd.f32 %v4330_v26, %v4069_v27  ;;  %v7742_v25 = vpop.f32.mrb[127].mxu0  ;;  %v4887_v26 = vmul.f32 -3.1427, %v9169_v44 }
 0xed4   : > { %v9184_v51 = vpack.c.bf16 %v9180_v53, %v9177_v52 }
 0xed6   : > { %v4573_v13 = vsel %vm1591_vm13, %v9184_v51, 0 }
 0xed7   : > { %7774 = vmatpush3.bf16.xpose.msra.mxu0 %v4573_v13 }
 0xed8   : > { %7785 = vmatprep.subr.bf16.mxu0 %v8192_v1 }
 0xede   : > { %7776 = vmatmul.mubr.msk.bf16.vlgmr.msra.gmra.mrb[136].mxu0 %vm1591_vm13, %v9184_v51 }
 0xedf   : > { %7787 = vmatprep.mubr.msk.bf16.mxu0 %vm8193_vm1, %v8192_v1 }
 0xf14   : > { %v9193_v34 = vpop.f32.mrb[128].mxu0 }
 0xf15   : > { %v7753_v9 = vpop.f32.mrb[129].mxu0 }
 0xf16   : > { %v9195_v60 = vpop.f32.mrb[130].mxu0 }
 0xf17   : > { %v4617_v7 = vpack.c.bf16 %v9195_v60, %v9193_v34  ;;  %v7754_v10 = vpop.f32.mrb[131].mxu0 }
 0xf18   : > { %v9199_v35 = vpop.f32.mrb[132].mxu1 }
 0xf19   : > { %v7759_v62 = vpop.f32.mrb[133].mxu1  ;;  %7786 = vmatpush3.bf16.msra.mxu0 %v4617_v7 }
 0xf1a   : > { %v9201_v5 = vpop.f32.mrb[134].mxu1  ;;  %7797 = vmatprep.subr.bf16.mxu0 %v8192_v1 }
 0xf1b   : > { %v4618_v58 = vpack.c.bf16 %v9201_v5, %v9199_v35  ;;  %v7760_v8 = vpop.f32.mrb[135].mxu1 }
 0xf1c   : > { %7788 = vmatmul.mubr.msk.bf16.vlgmr.msra.gmra.mrb[140].mxu0 %vm1591_vm13, %v4617_v7  ;;  %v9207_v48 = vpop.f32.mrb[132].mxu0  ;;  %v4888_v8 = vmul.f32 -3.1427, %v9193_v34 }
 0xf1d   : > { %7792 = vmatpush3.bf16.msra.mxu1 %v4618_v58  ;;  %7799 = vmatprep.mubr.msk.bf16.mxu0 %vm8193_vm1, %v8192_v1  ;;  %v7765_v61 = vpop.f32.mrb[133].mxu0 }
 0xf1e   : > { %7803 = vmatprep.subr.bf16.mxu1 %v8192_v1  ;;  %v9212_v63 = vpop.f32.mrb[134].mxu0 }
 0xf1f   : > { %v4619_v56 = vpack.c.bf16 %v9212_v63, %v9207_v48  ;;  %v7766_v12 = vpop.f32.mrb[135].mxu0 }
 0xf20   : > { %7794 = vmatmul.mubr.msk.bf16.vlgmr.msra.gmra.mrb[144].mxu1 %vm1591_vm13, %v4618_v58 }
 0xf21   : > { %7805 = vmatprep.mubr.msk.bf16.mxu1 %vm8193_vm1, %v8192_v1  ;;  %7798 = vmatpush3.bf16.msra.mxu0 %v4619_v56 }
 0xf22   : > { %7809 = vmatprep.subr.bf16.mxu0 %v8192_v1 }
 0xf24   : > { %7800 = vmatmul.mubr.msk.bf16.vlgmr.msra.gmra.mrb[144].mxu0 %vm1591_vm13, %v4619_v56 }
 0xf25   : > { %7811 = vmatprep.mubr.msk.bf16.mxu0 %vm8193_vm1, %v8192_v1 }
 0xf51   : > { %v9223_v32 = vpop.f32.mrb[136].mxu1 }
 0xf52   : > { %v7771_v37 = vpop.f32.mrb[137].mxu1 }
 0xf53   : > { %v9225_v29 = vpop.f32.mrb[138].mxu1  ;;  %v4889_v37 = vmul.f32 -3.1427, %v9195_v60  ;;  %v4892_v60 = vmul.f32 -3.1427, %v9207_v48 }
 0xf54   : > { %v4620_v50 = vpack.c.bf16 %v9225_v29, %v9223_v32  ;;  %v7772_v45 = vpop.f32.mrb[139].mxu1 }
 0xf56   : > { %7804 = vmatpush3.bf16.msra.mxu1 %v4620_v50 }
 0xf57   : > { %7815 = vmatprep.subr.bf16.mxu1 %v8192_v1 }
 0xf59   : > { %7806 = vmatmul.mubr.msk.bf16.vlgmr.msra.gmra.mrb[148].mxu1 %vm1591_vm13, %v4620_v50 }
 0xf5a   : > { %7816 = vmatpush3.bf16.msra.mxu1 %v9087_v3  ;;  %7817 = vmatprep.mubr.msk.bf16.mxu1 %vm8193_vm1, %v8192_v1 }
 0xf5b   : > { %7827 = vmatprep.subr.bf16.mxu1 %v8192_v1 }
 0xf9f   : > { %v4659_v59 = vpop.f32.mrb[140].mxu1 }
 0xfa0   : > { %v4898_v41 = vmul.f32 1.2046, %v4659_v59  ;;  %v7783_v11 = vpop.f32.mrb[141].mxu1 }
 0xfa1   : > { %v4662_v27 = vpop.f32.mrb[142].mxu1 }
 0xfa2   : > { %v4910_v25 = vadd.f32 %v4898_v41, %v4886_v47  ;;  %v4899_v13 = vmul.f32 1.2046, %v4662_v27  ;;  %v7784_v9 = vpop.f32.mrb[143].mxu1  ;;  %v4890_v41 = vmul.f32 -3.1427, %v9199_v35 }
 0xfa4   : > { %v4911_v7 = vadd.f32 %v4899_v13, %v4887_v26 }
 0xfa6   : > { %v4922_v10 = vpack.c.bf16 %v4911_v7, %v4910_v25  ;;  %v4891_v25 = vmul.f32 -3.1427, %v9201_v5  ;;  %v4893_v5 = vmul.f32 -3.1427, %v9212_v63  ;;  %v4894_v63 = vmul.f32 -3.1427, %v9223_v32 }
 0xfa8   : > { %7818 = vmatmul.mubr.msk.bf16.vlgmr.msra.gmra.mrb[152].mxu1 %vm1591_vm13, %v4922_v10 }
 0xfa9   : > { %7828 = vmatpush3.bf16.msra.mxu1 %v9122_v2  ;;  %7829 = vmatprep.mubr.msk.bf16.mxu1 %vm8193_vm1, %v8192_v1 }
 0xfaa   : > { %7839 = vmatprep.subr.bf16.mxu1 %v8192_v1 }
 0xfb1   : > { %v9241_v3 = vpop.f32.mrb[136].mxu0 }
 0xfb2   : > { %v7777_v49 = vpop.f32.mrb[137].mxu0 }
 0xfb3   : > { %v9243_v62 = vpop.f32.mrb[138].mxu0 }
 0xfb4   : > { %v4621_v44 = vpack.c.bf16 %v9243_v62, %v9241_v3  ;;  %v7778_v58 = vpop.f32.mrb[139].mxu0 }
 0xfb6   : > { %7810 = vmatpush3.bf16.msra.mxu0 %v4621_v44 }
 0xfb7   : > { %7821 = vmatprep.subr.bf16.mxu0 %v8192_v1 }
 0xfb9   : > { %7812 = vmatmul.mubr.msk.bf16.vlgmr.msra.gmra.mrb[148].mxu0 %vm1591_vm13, %v4621_v44 }
 0xfba   : > { %7822 = vmatpush3.bf16.msra.mxu0 %v9110_v0  ;;  %7823 = vmatprep.mubr.msk.bf16.mxu0 %vm8193_vm1, %v8192_v1 }
 0xfbb   : > { %7833 = vmatprep.subr.bf16.mxu0 %v8192_v1 }
 0xfef   : > { %v4703_v2 = vpop.f32.mrb[140].mxu0 }
 0xff0   : > { %v4900_v61 = vmul.f32 1.2046, %v4703_v2  ;;  %v7789_v56 = vpop.f32.mrb[141].mxu0 }
 0xff1   : > { %v4706_v12 = vpop.f32.mrb[142].mxu0 }
 0xff2   : > { %v4912_v50 = vadd.f32 %v4900_v61, %v4888_v8  ;;  %v4901_v45 = vmul.f32 1.2046, %v4706_v12  ;;  %v7790_v59 = vpop.f32.mrb[143].mxu0 }
 0xff3   : > { %v4747_v47 = vpop.f32.mrb[144].mxu1 }
 0xff4   : > { %v4913_v0 = vadd.f32 %v4901_v45, %v4889_v37  ;;  %v4902_v11 = vmul.f32 1.2046, %v4747_v47  ;;  %v7795_v27 = vpop.f32.mrb[145].mxu1  ;;  %v4895_v45 = vmul.f32 -3.1427, %v9225_v29 }
 0xff5   : > { %v4750_v26 = vpop.f32.mrb[146].mxu1 }
 0xff6   : > { %v4923_v13 = vpack.c.bf16 %v4913_v0, %v4912_v50  ;;  %v4914_v9 = vadd.f32 %v4902_v11, %v4890_v41  ;;  %v4903_v34 = vmul.f32 1.2046, %v4750_v26  ;;  %v7796_v7 = vpop.f32.mrb[147].mxu1 }
 0xff7   : > { %v4791_v49 = vpop.f32.mrb[144].mxu0 }
 0xff8   : > { %v4915_v10 = vadd.f32 %v4903_v34, %v4891_v25  ;;  %7824 = vmatmul.mubr.msk.bf16.vlgmr.msra.gmra.mrb[152].mxu0 %vm1591_vm13, %v4923_v13  ;;  %v4904_v44 = vmul.f32 1.2046, %v4791_v49  ;;  %v7801_v58 = vpop.f32.mrb[145].mxu0  ;;  %v4929_v25 = vmul.f32 2.8769, %v9083_v46 }
 0xff9   : > { %7834 = vmatpush3.bf16.msra.mxu0 %v9135_v4  ;;  %7835 = vmatprep.mubr.msk.bf16.mxu0 %vm8193_vm1, %v8192_v1  ;;  %v4794_v2 = vpop.f32.mrb[146].mxu0  ;;  %v4896_v46 = vmul.f32 -3.1427, %v9241_v3 }
 0xffa   : > { %v4924_v35 = vpack.c.bf16 %v4915_v10, %v4914_v9  ;;  %7845 = vmatprep.subr.bf16.mxu0 %v8192_v1  ;;  %v4916_v8 = vadd.f32 %v4904_v44, %v4892_v60  ;;  %v4905_v61 = vmul.f32 1.2046, %v4794_v2  ;;  %v7802_v56 = vpop.f32.mrb[147].mxu0  ;;  %v4897_v44 = vmul.f32 -3.1427, %v9243_v62 }
 0xffc   : > { %7830 = vmatmul.mubr.msk.bf16.vlgmr.msra.gmra.mrb[156].mxu1 %vm1591_vm13, %v4924_v35  ;;  %v4917_v12 = vadd.f32 %v4905_v61, %v4893_v5  ;;  %v4930_v61 = vmul.f32 2.8769, %v9102_v21 }
 0xffd   : > { %7840 = vmatpush3.bf16.msra.mxu1 %v9160_v23  ;;  %7841 = vmatprep.mubr.msk.bf16.mxu1 %vm8193_vm1, %v8192_v1 }
 0xffe   : > { %7851 = vmatprep.subr.bf16.mxu1 %v8192_v1  ;;  %v4925_v4 = vpack.c.bf16 %v4917_v12, %v4916_v8 }
0x1000   : > { %7836 = vmatmul.mubr.msk.bf16.vlgmr.msra.gmra.mrb[156].mxu0 %vm1591_vm13, %v4925_v4  ;;  %v4931_v4 = vmul.f32 2.8769, %v9105_v38 }
0x1001   : > { %7846 = vmatpush3.bf16.msra.mxu0 %v9184_v51  ;;  %7847 = vmatprep.mubr.msk.bf16.mxu0 %vm8193_vm1, %v8192_v1  ;;  %v4928_v51 = vmul.f32 2.8769, %v9080_v28 }
0x1002   : > { %7857 = vmatprep.subr.bf16.mxu0 %v8192_v1 }
0x102c   : > { %v4835_v48 = vpop.f32.mrb[148].mxu1 }
0x102d   : > { %v4906_v37 = vmul.f32 1.2046, %v4835_v48  ;;  %v7807_v23 = vpop.f32.mrb[149].mxu1 }
0x102e   : > { %v4838_v50 = vpop.f32.mrb[150].mxu1 }
0x102f   : > { %v4918_v59 = vadd.f32 %v4906_v37, %v4894_v63  ;;  %v4907_v47 = vmul.f32 1.2046, %v4838_v50  ;;  %v7808_v41 = vpop.f32.mrb[151].mxu1  ;;  %v4932_v37 = vmul.f32 2.8769, %v9112_v6 }
0x1031   : > { %v4919_v0 = vadd.f32 %v4907_v47, %v4895_v45 }
0x1033   : > { %v4926_v11 = vpack.c.bf16 %v4919_v0, %v4918_v59  ;;  %v4933_v59 = vmul.f32 2.8769, %v9115_v55 }
0x1035   : > { %7842 = vmatmul.mubr.msk.bf16.vlgmr.msra.gmra.mrb[160].mxu1 %vm1591_vm13, %v4926_v11  ;;  %v4934_v11 = vmul.f32 2.8769, %v9125_v57 }
0x1036   : > { %7853 = vmatprep.mubr.msk.bf16.mxu1 %vm8193_vm1, %v8192_v1 }
0x107b   : > { %v4977_v27 = vpop.f32.mrb[152].mxu1 }
0x107c   : > { %v9280_v26 = vadd.f32 %v4977_v27, %v4928_v51  ;;  %v7819_v32 = vpop.f32.mrb[153].mxu1 }
0x107d   : > { %v4980_v13 = vpop.f32.mrb[154].mxu1  ;;  %v4935_v32 = vmul.f32 2.8769, %v9130_v15 }
0x107e   : > { %v9283_v29 = vadd.f32 %v4980_v13, %v4929_v25  ;;  %v7820_v9 = vpop.f32.mrb[155].mxu1 }
0x1080   : > { %v9287_v34 = vpack.c.bf16 %v9283_v29, %v9280_v26 }
0x1082   : > { %v5223_v7 = vsel %vm1591_vm13, %v9287_v34, 0 }
0x1083   : > { %7852 = vmatpush3.bf16.xpose.msra.mxu1 %v5223_v7 }
0x1084   : > { %7863 = vmatprep.subr.bf16.mxu1 %v8192_v1 }
0x108a   : > { %7854 = vmatmul.mubr.msk.bf16.vlgmr.msra.gmra.mrb[164].mxu1 %vm1591_vm13, %v9287_v34 }
0x108b   : > { %7865 = vmatprep.mubr.msk.bf16.mxu1 %vm8193_vm1, %v8192_v1 }
0x108c   : > { %v4879_v28 = vpop.f32.mrb[148].mxu0 }
0x108d   : > { %v4908_v10 = vmul.f32 1.2046, %v4879_v28  ;;  %v7813_v49 = vpop.f32.mrb[149].mxu0  ;;  %v4936_v28 = vmul.f32 2.8769, %v9153_v30 }
0x108e   : > { %v4882_v60 = vpop.f32.mrb[150].mxu0 }
0x108f   : > { %v4920_v58 = vadd.f32 %v4908_v10, %v4896_v46  ;;  %v4909_v35 = vmul.f32 1.2046, %v4882_v60  ;;  %v7814_v2 = vpop.f32.mrb[151].mxu0  ;;  %v4937_v60 = vmul.f32 2.8769, %v9156_v19 }
0x1091   : > { %v4921_v5 = vadd.f32 %v4909_v35, %v4897_v44 }
0x1093   : > { %v4927_v8 = vpack.c.bf16 %v4921_v5, %v4920_v58 }
0x1095   : > { %7848 = vmatmul.mubr.msk.bf16.vlgmr.msra.gmra.mrb[160].mxu0 %vm1591_vm13, %v4927_v8 }
0x1096   : > { %7859 = vmatprep.mubr.msk.bf16.mxu0 %vm8193_vm1, %v8192_v1 }
0x10cb   : > { %v5021_v56 = vpop.f32.mrb[152].mxu0 }
0x10cc   : > { %v9302_v12 = vadd.f32 %v5021_v56, %v4930_v61  ;;  %v7825_v3 = vpop.f32.mrb[153].mxu0 }
0x10cd   : > { %v5024_v48 = vpop.f32.mrb[154].mxu0  ;;  %v4938_v3 = vmul.f32 2.8769, %v9177_v52 }
0x10ce   : > { %v9305_v62 = vadd.f32 %v5024_v48, %v4931_v4  ;;  %v7826_v63 = vpop.f32.mrb[155].mxu0 }
0x10cf   : > { %v5065_v23 = vpop.f32.mrb[156].mxu1 }
0x10d0   : > { %v9310_v50 = vpack.c.bf16 %v9305_v62, %v9302_v12  ;;  %v9312_v45 = vadd.f32 %v5065_v23, %v4932_v37  ;;  %v7831_v21 = vpop.f32.mrb[157].mxu1  ;;  %v4939_v37 = vmul.f32 2.8769, %v9180_v53 }
0x10d1   : > { %v5068_v47 = vpop.f32.mrb[158].mxu1 }
0x10d2   : > { %v9315_v41 = vadd.f32 %v5068_v47, %v4933_v59  ;;  %v7832_v38 = vpop.f32.mrb[159].mxu1  ;;  %v5267_v0 = vsel %vm1591_vm13, %v9310_v50, 0 }
0x10d3   : > { %7858 = vmatpush3.bf16.xpose.msra.mxu0 %v5267_v0  ;;  %v5109_v51 = vpop.f32.mrb[156].mxu0 }
0x10d4   : > { %v9322_v6 = vpack.c.bf16 %v9315_v41, %v9312_v45  ;;  %7869 = vmatprep.subr.bf16.mxu0 %v8192_v1  ;;  %v9325_v27 = vadd.f32 %v5109_v51, %v4934_v11  ;;  %v7837_v55 = vpop.f32.mrb[157].mxu0 }
0x10d5   : > { %v5112_v25 = vpop.f32.mrb[158].mxu0 }
0x10d6   : > { %v5311_v13 = vsel %vm1591_vm13, %v9322_v6, 0  ;;  %v9330_v9 = vadd.f32 %v5112_v25, %v4935_v32  ;;  %v7838_v57 = vpop.f32.mrb[159].mxu0 }
0x10d7   : > { %7864 = vmatpush3.bf16.xpose.msra.mxu1 %v5311_v13 }
0x10d8   : > { %7875 = vmatprep.subr.bf16.mxu1 %v8192_v1  ;;  %v9335_v7 = vpack.c.bf16 %v9330_v9, %v9325_v27 }
0x10da   : > { %7860 = vmatmul.mubr.msk.bf16.vlgmr.msra.gmra.mrb[164].mxu0 %vm1591_vm13, %v9310_v50  ;;  %v5355_v15 = vsel %vm1591_vm13, %v9335_v7, 0 }
0x10db   : > { %7871 = vmatprep.mubr.msk.bf16.mxu0 %vm8193_vm1, %v8192_v1  ;;  %7870 = vmatpush3.bf16.xpose.msra.mxu0 %v5355_v15 }
0x10dc   : > { %7881 = vmatprep.subr.bf16.mxu0 %v8192_v1 }
0x10de   : > { %7866 = vmatmul.mubr.msk.bf16.vlgmr.msra.gmra.mrb[168].mxu1 %vm1591_vm13, %v9322_v6 }
0x10df   : > { %7877 = vmatprep.mubr.msk.bf16.mxu1 %vm8193_vm1, %v8192_v1 }
0x10e2   : > { %7872 = vmatmul.mubr.msk.bf16.vlgmr.msra.gmra.mrb[168].mxu0 %vm1591_vm13, %v9335_v7 }
0x10e3   : > { %7883 = vmatprep.mubr.msk.bf16.mxu0 %vm8193_vm1, %v8192_v1 }
0x1108   : > { %v5153_v46 = vpop.f32.mrb[160].mxu1 }
0x1109   : > { %v9353_v10 = vadd.f32 %v5153_v46, %v4936_v28  ;;  %v7843_v49 = vpop.f32.mrb[161].mxu1 }
0x110a   : > { %v5156_v44 = vpop.f32.mrb[162].mxu1 }
0x110b   : > { %v9356_v58 = vadd.f32 %v5156_v44, %v4937_v60  ;;  %v7844_v35 = vpop.f32.mrb[163].mxu1 }
0x110d   : > { %v9360_v2 = vpack.c.bf16 %v9356_v58, %v9353_v10 }
0x110f   : > { %v5399_v5 = vsel %vm1591_vm13, %v9360_v2, 0 }
0x1110   : > { %7876 = vmatpush3.bf16.xpose.msra.mxu1 %v5399_v5 }
0x1111   : > { %7887 = vmatprep.subr.bf16.mxu1 %v8192_v1 }
0x1117   : > { %7878 = vmatmul.mubr.msk.bf16.vlgmr.msra.gmra.mrb[172].mxu1 %vm1591_vm13, %v9360_v2 }
0x1118   : > { %7889 = vmatprep.mubr.msk.bf16.mxu1 %vm8193_vm1, %v8192_v1 }
0x115d   : > { %v5259_v30 = vpop.f32.mrb[164].mxu1 }
0x115e   : > { %v7855_v19 = vpop.f32.mrb[165].mxu1 }
0x115f   : > { %v9369_v8 = vpop.f32.mrb[166].mxu1 }
0x1160   : > { %v5486_v61 = vpack.c.bf16 %v9369_v8, %v5259_v30  ;;  %v7856_v56 = vpop.f32.mrb[167].mxu1 }
0x1162   : > { %7888 = vmatpush3.bf16.msra.mxu1 %v5486_v61 }
0x1163   : > { %7899 = vmatprep.subr.bf16.mxu1 %v8192_v1 }
0x1165   : > { %7890 = vmatmul.mubr.msk.bf16.vlgmr.msra.gmra.mrb[176].mxu1 %vm1591_vm13, %v5486_v61 }
0x1166   : > { %7901 = vmatprep.mubr.msk.bf16.mxu1 %vm8193_vm1, %v8192_v1 }
0x1168   : > { %v5197_v4 = vpop.f32.mrb[160].mxu0 }
0x1169   : > { %v9377_v48 = vadd.f32 %v5197_v4, %v4938_v3  ;;  %v7849_v63 = vpop.f32.mrb[161].mxu0  ;;  %v5756_v3 = vmul.f32 -3.0525, %v5259_v30 }
0x116a   : > { %v5200_v23 = vpop.f32.mrb[162].mxu0 }
0x116b   : > { %v9380_v21 = vadd.f32 %v5200_v23, %v4939_v37  ;;  %v7850_v59 = vpop.f32.mrb[163].mxu0  ;;  %v5757_v23 = vmul.f32 -3.0525, %v9369_v8 }
0x116d   : > { %v9384_v47 = vpack.c.bf16 %v9380_v21, %v9377_v48 }
0x116f   : > { %v5443_v38 = vsel %vm1591_vm13, %v9384_v47, 0 }
0x1170   : > { %7882 = vmatpush3.bf16.xpose.msra.mxu0 %v5443_v38 }
0x1171   : > { %7893 = vmatprep.subr.bf16.mxu0 %v8192_v1 }
0x1177   : > { %7884 = vmatmul.mubr.msk.bf16.vlgmr.msra.gmra.mrb[172].mxu0 %vm1591_vm13, %v9384_v47 }
0x1178   : > { %7895 = vmatprep.mubr.msk.bf16.mxu0 %vm8193_vm1, %v8192_v1 }
0x11ad   : > { %v9393_v52 = vpop.f32.mrb[164].mxu0 }
0x11ae   : > { %v7861_v53 = vpop.f32.mrb[165].mxu0 }
0x11af   : > { %v9395_v0 = vpop.f32.mrb[166].mxu0 }
0x11b0   : > { %v5487_v11 = vpack.c.bf16 %v9395_v0, %v9393_v52  ;;  %v7862_v51 = vpop.f32.mrb[167].mxu0 }
0x11b1   : > { %v9399_v55 = vpop.f32.mrb[168].mxu1 }
0x11b2   : > { %v7867_v32 = vpop.f32.mrb[169].mxu1  ;;  %7894 = vmatpush3.bf16.msra.mxu0 %v5487_v11 }
0x11b3   : > { %v9401_v25 = vpop.f32.mrb[170].mxu1  ;;  %7905 = vmatprep.subr.bf16.mxu0 %v8192_v1 }
0x11b4   : > { %v5488_v13 = vpack.c.bf16 %v9401_v25, %v9399_v55  ;;  %v7868_v57 = vpop.f32.mrb[171].mxu1 }
0x11b5   : > { %7896 = vmatmul.mubr.msk.bf16.vlgmr.msra.gmra.mrb[176].mxu0 %vm1591_vm13, %v5487_v11  ;;  %v9407_v15 = vpop.f32.mrb[168].mxu0  ;;  %v5758_v57 = vmul.f32 -3.0525, %v9393_v52 }
0x11b6   : > { %7900 = vmatpush3.bf16.msra.mxu1 %v5488_v13  ;;  %7907 = vmatprep.mubr.msk.bf16.mxu0 %vm8193_vm1, %v8192_v1  ;;  %v7873_v28 = vpop.f32.mrb[169].mxu0 }
0x11b7   : > { %7911 = vmatprep.subr.bf16.mxu1 %v8192_v1  ;;  %v9412_v46 = vpop.f32.mrb[170].mxu0 }
0x11b8   : > { %v5489_v49 = vpack.c.bf16 %v9412_v46, %v9407_v15  ;;  %v7874_v60 = vpop.f32.mrb[171].mxu0 }
0x11b9   : > { %7902 = vmatmul.mubr.msk.bf16.vlgmr.msra.gmra.mrb[180].mxu1 %vm1591_vm13, %v5488_v13 }
0x11ba   : > { %7913 = vmatprep.mubr.msk.bf16.mxu1 %vm8193_vm1, %v8192_v1  ;;  %7906 = vmatpush3.bf16.msra.mxu0 %v5489_v49 }
0x11bb   : > { %7917 = vmatprep.subr.bf16.mxu0 %v8192_v1 }
0x11bd   : > { %7908 = vmatmul.mubr.msk.bf16.vlgmr.msra.gmra.mrb[180].mxu0 %vm1591_vm13, %v5489_v49 }
0x11be   : > { %7919 = vmatprep.mubr.msk.bf16.mxu0 %vm8193_vm1, %v8192_v1 }
0x11ea   : > { %v9423_v44 = vpop.f32.mrb[172].mxu1 }
0x11eb   : > { %v7879_v35 = vpop.f32.mrb[173].mxu1 }
0x11ec   : > { %v9425_v5 = vpop.f32.mrb[174].mxu1  ;;  %v5759_v35 = vmul.f32 -3.0525, %v9395_v0 }
0x11ed   : > { %v5490_v19 = vpack.c.bf16 %v9425_v5, %v9423_v44  ;;  %v7880_v61 = vpop.f32.mrb[175].mxu1 }
0x11ef   : > { %7912 = vmatpush3.bf16.msra.mxu1 %v5490_v19 }
0x11f0   : > { %7923 = vmatprep.subr.bf16.mxu1 %v8192_v1 }
0x11f2   : > { %7914 = vmatmul.mubr.msk.bf16.vlgmr.msra.gmra.mrb[184].mxu1 %vm1591_vm13, %v5490_v19 }
0x11f3   : > { %7924 = vmatpush3.bf16.msra.mxu1 %v9287_v34  ;;  %7925 = vmatprep.mubr.msk.bf16.mxu1 %vm8193_vm1, %v8192_v1 }
0x11f4   : > { %7935 = vmatprep.subr.bf16.mxu1 %v8192_v1 }
0x1238   : > { %v5529_v56 = vpop.f32.mrb[176].mxu1 }
0x1239   : > { %v5768_v4 = vmul.f32 1.2012, %v5529_v56  ;;  %v7891_v63 = vpop.f32.mrb[177].mxu1 }
0x123a   : > { %v5532_v37 = vpop.f32.mrb[178].mxu1 }
0x123b   : > { %v5780_v59 = vadd.f32 %v5768_v4, %v5756_v3  ;;  %v5769_v38 = vmul.f32 1.2012, %v5532_v37  ;;  %v7892_v53 = vpop.f32.mrb[179].mxu1  ;;  %v5760_v4 = vmul.f32 -3.0525, %v9399_v55 }
0x123d   : > { %v5781_v11 = vadd.f32 %v5769_v38, %v5757_v23 }
0x123f   : > { %v5792_v51 = vpack.c.bf16 %v5781_v11, %v5780_v59  ;;  %v5761_v59 = vmul.f32 -3.0525, %v9401_v25 }
0x1241   : > { %7926 = vmatmul.mubr.msk.bf16.vlgmr.msra.gmra.mrb[188].mxu1 %vm1591_vm13, %v5792_v51  ;;  %v1009_v51 = vmul.f32 %v8399_v54, %v8307_v43 }
0x1242   : > { %7936 = vmatpush3.bf16.msra.mxu1 %v9322_v6  ;;  %7937 = vmatprep.mubr.msk.bf16.mxu1 %vm8193_vm1, %v8192_v1 }
0x1243   : > { %7947 = vmatprep.subr.bf16.mxu1 %v8192_v1 }
0x124a   : > { %v9441_v34 = vpop.f32.mrb[172].mxu0 }
0x124b   : > { %v7885_v30 = vpop.f32.mrb[173].mxu0 }
0x124c   : > { %v9443_v32 = vpop.f32.mrb[174].mxu0 }
0x124d   : > { %v5491_v8 = vpack.c.bf16 %v9443_v32, %v9441_v34  ;;  %v7886_v13 = vpop.f32.mrb[175].mxu0 }
0x124f   : > { %7918 = vmatpush3.bf16.msra.mxu0 %v5491_v8 }
0x1250   : > { %7929 = vmatprep.subr.bf16.mxu0 %v8192_v1 }
0x1252   : > { %7920 = vmatmul.mubr.msk.bf16.vlgmr.msra.gmra.mrb[184].mxu0 %vm1591_vm13, %v5491_v8  ;;  %v5762_v8 = vmul.f32 -3.0525, %v9407_v15 }
0x1253   : > { %7930 = vmatpush3.bf16.msra.mxu0 %v9310_v50  ;;  %7931 = vmatprep.mubr.msk.bf16.mxu0 %vm8193_vm1, %v8192_v1 }
0x1254   : > { %7941 = vmatprep.subr.bf16.mxu0 %v8192_v1 }
0x1288   : > { %v5573_v6 = vpop.f32.mrb[176].mxu0 }
0x1289   : > { %v5770_v28 = vmul.f32 1.2012, %v5573_v6  ;;  %v7897_v49 = vpop.f32.mrb[177].mxu0 }
0x128a   : > { %v5576_v60 = vpop.f32.mrb[178].mxu0  ;;  %v1088_v49 = vpack.c.bf16 %v1009_v51, %v1009_v51 }
0x128b   : > { %v5782_v19 = vadd.f32 %v5770_v28, %v5758_v57  ;;  %v5771_v61 = vmul.f32 1.2012, %v5576_v60  ;;  %v7898_v56 = vpop.f32.mrb[179].mxu0  ;;  %v5763_v57 = vmul.f32 -3.0525, %v9412_v46 }
0x128c   : > { %v5617_v3 = vpop.f32.mrb[180].mxu1  ;;  %v5764_v60 = vmul.f32 -3.0525, %v9423_v44 }
0x128d   : > { %v5783_v50 = vadd.f32 %v5771_v61, %v5759_v35  ;;  %v5772_v63 = vmul.f32 1.2012, %v5617_v3  ;;  %v7903_v37 = vpop.f32.mrb[181].mxu1  ;;  %v5765_v61 = vmul.f32 -3.0525, %v9425_v5 }
0x128e   : > { %v5620_v23 = vpop.f32.mrb[182].mxu1  ;;  %v5798_v37 = vmul.f32 2.8366, %v9280_v26  ;;  %v5766_v26 = vmul.f32 -3.0525, %v9441_v34 }
0x128f   : > { %v5793_v38 = vpack.c.bf16 %v5783_v50, %v5782_v19  ;;  %v5784_v53 = vadd.f32 %v5772_v63, %v5760_v4  ;;  %v5773_v52 = vmul.f32 1.2012, %v5620_v23  ;;  %v7904_v11 = vpop.f32.mrb[183].mxu1 }
0x1290   : > { %v5661_v30 = vpop.f32.mrb[180].mxu0 }
0x1291   : > { %v5785_v0 = vadd.f32 %v5773_v52, %v5761_v59  ;;  %7932 = vmatmul.mubr.msk.bf16.vlgmr.msra.gmra.mrb[188].mxu0 %vm1591_vm13, %v5793_v38  ;;  %v5774_v55 = vmul.f32 1.2012, %v5661_v30  ;;  %v7909_v13 = vpop.f32.mrb[181].mxu0  ;;  %v5799_v38 = vmul.f32 2.8366, %v9283_v29 }
0x1292   : > { %7942 = vmatpush3.bf16.msra.mxu0 %v9335_v7  ;;  %7943 = vmatprep.mubr.msk.bf16.mxu0 %vm8193_vm1, %v8192_v1  ;;  %v5664_v6 = vpop.f32.mrb[182].mxu0  ;;  %v5767_v29 = vmul.f32 -3.0525, %v9443_v32 }
0x1293   : > { %v5794_v25 = vpack.c.bf16 %v5785_v0, %v5784_v53  ;;  %7953 = vmatprep.subr.bf16.mxu0 %v8192_v1  ;;  %v5786_v43 = vadd.f32 %v5774_v55, %v5762_v8  ;;  %v5775_v54 = vmul.f32 1.2012, %v5664_v6  ;;  %v7910_v28 = vpop.f32.mrb[183].mxu0 }
0x1294   : > { %v5801_v28 = vmul.f32 2.8366, %v9305_v62 }
0x1295   : > { %7938 = vmatmul.mubr.msk.bf16.vlgmr.msra.gmra.mrb[192].mxu1 %vm1591_vm13, %v5794_v25  ;;  %v5787_v15 = vadd.f32 %v5775_v54, %v5763_v57 }
0x1296   : > { %7948 = vmatpush3.bf16.msra.mxu1 %v9360_v2  ;;  %7949 = vmatprep.mubr.msk.bf16.mxu1 %vm8193_vm1, %v8192_v1 }
0x1297   : > { %7995 = vmatprep.subr.msk.bf16.mxu1 %vm768_vm6, %v1088_v49  ;;  %v5795_v7 = vpack.c.bf16 %v5787_v15, %v5786_v43 }
0x1299   : > { %7944 = vmatmul.mubr.msk.bf16.vlgmr.msra.gmra.mrb[192].mxu0 %vm1591_vm13, %v5795_v7 }
0x129a   : > { %7954 = vmatpush3.bf16.msra.mxu0 %v9384_v47  ;;  %7955 = vmatprep.mubr.msk.bf16.mxu0 %vm8193_vm1, %v8192_v1  ;;  %v6446_v47 = vsel %vm768_vm6, %v1088_v49, 0 }
0x129b   : > { %7996 = vmatprep.subr.msk.bf16.mxu0 %vm768_vm6, %v1088_v49 }
0x12c5   : > { %v5705_v46 = vpop.f32.mrb[184].mxu1 }
0x12c6   : > { %v5776_v35 = vmul.f32 1.2012, %v5705_v46  ;;  %v7915_v2 = vpop.f32.mrb[185].mxu1  ;;  %v5802_v46 = vmul.f32 2.8366, %v9312_v45 }
0x12c7   : > { %v5708_v19 = vpop.f32.mrb[186].mxu1 }
0x12c8   : > { %v5788_v56 = vadd.f32 %v5776_v35, %v5764_v60  ;;  %v5777_v3 = vmul.f32 1.2012, %v5708_v19  ;;  %v7916_v4 = vpop.f32.mrb[187].mxu1 }
0x12ca   : > { %v5789_v50 = vadd.f32 %v5777_v3, %v5765_v61  ;;  %v5804_v3 = vmul.f32 2.8366, %v9325_v27  ;;  %v9521_v27 = vld [vmem:[%s9851_s6] sm:$0xff] }
0x12cc   : > { %v5796_v63 = vpack.c.bf16 %v5789_v50, %v5788_v56 }
0x12ce   : > { %7950 = vmatmul.mubr.msk.bf16.vlgmr.msra.gmra.mrb[196].mxu1 %vm1591_vm13, %v5796_v63 }
0x12cf   : > { %7960 = vmatpush3.bf16.xpose.msra.mxu1 %v6446_v47 }
0x12d0   : > { %7971 = vmatprep.subr.bf16.mxu1 %v8192_v1 }
0x1314   : > { %v5847_v44 = vpop.f32.mrb[188].mxu1 }
0x1315   : > { %v6074_v23 = vadd.f32 %v5847_v44, %v5798_v37  ;;  %v7927_v59 = vpop.f32.mrb[189].mxu1 }
0x1316   : > { %v5850_v5 = vpop.f32.mrb[190].mxu1 }
0x1317   : > { %v6086_v53 = vadd.f32 %v6074_v23, %v8427_v18  ;;  %v6075_v52 = vadd.f32 %v5850_v5, %v5799_v38  ;;  %v7928_v11 = vpop.f32.mrb[191].mxu1  ;;  %v9530_v23 = vld [vmem:[%s9851_s6 + $0x8] sm:$0xff] }
0x1318   : > { %v8159_v11 = vld [vmem:[%s9848_s3] sm:$0xff] }
0x1319   : > { %v6087_v51 = vadd.f32 %v6075_v52, %v8430_v20  ;;  %6218 = vrot.lane.b32.xlu1 %v6086_v53, %s8200_s29  ;;  %v5800_v20 = vmul.f32 2.8366, %v9302_v12  ;;  %v5803_v12 = vmul.f32 2.8366, %v9315_v41  ;;  %v5805_v41 = vmul.f32 2.8366, %v9330_v9 }
0x131b   : > { %6220 = vrot.lane.b32.xlu0 %v6087_v51, %s8200_s29 }
0x1325   : > { %v5749_v0 = vpop.f32.mrb[184].mxu0 }
0x1326   : > { %v5778_v30 = vmul.f32 1.2012, %v5749_v0  ;;  %v7921_v8 = vpop.f32.mrb[185].mxu0  ;;  %v6102_v0 = vmul.f32 %v8159_v11, %v8159_v11  ;;  %v8164_v11 = vld [vmem:[%s9849_s4 + $0x10] sm:$0xff] }
0x1327   : > { %v5752_v55 = vpop.f32.mrb[186].mxu0 }
0x1328   : > { %v5790_v13 = vadd.f32 %v5778_v30, %v5766_v26  ;;  %v5779_v25 = vmul.f32 1.2012, %v5752_v55  ;;  %v7922_v18 = vpop.f32.mrb[187].mxu0  ;;  %v8160_v30 = vld [vmem:[%s9848_s3 + $0x10] sm:$0xff] }
0x1329   : > { %v6104_v8 = vmul.f32 %v8160_v30, %v8160_v30 }
0x132a   : > { %v5791_v6 = vadd.f32 %v5779_v25, %v5767_v29  ;;  %v5806_v29 = vmul.f32 2.8366, %v9353_v10 }
0x132b   : > { %v6112_v55 = vsel %vm768_vm6, %v6104_v8, 0.0 }
0x132c   : > { %v5797_v57 = vpack.c.bf16 %v5791_v6, %v5790_v13  ;;  %v5807_v6 = vmul.f32 2.8366, %v9356_v58 }
0x132e   : > { %7956 = vmatmul.mubr.msk.bf16.vlgmr.msra.gmra.mrb[196].mxu0 %vm1591_vm13, %v5797_v57 }
0x132f   : > { %7966 = vmatpush3.bf16.xpose.msra.mxu0 %v6446_v47 }
0x1330   : > { %7979 = vmatprep.subr.mxu0 %v8192_v1 }
0x1364   : > { %v5891_v43 = vpop.f32.mrb[188].mxu0 }
0x1365   : > { %v6076_v54 = vadd.f32 %v5891_v43, %v5800_v20  ;;  %v7933_v34 = vpop.f32.mrb[189].mxu0 }
0x1366   : > { %v5894_v49 = vpop.f32.mrb[190].mxu0 }
0x1367   : > { %v9494_v32 = vadd.f32 %v6076_v54, %v8447_v31  ;;  %v6077_v15 = vadd.f32 %v5894_v49, %v5801_v28  ;;  %v7934_v7 = vpop.f32.mrb[191].mxu0  ;;  %v9561_v28 = vld [vmem:[%s9851_s6 + $0x10] sm:$0xff] }
0x1368   : > { %v5935_v60 = vpop.f32.mrb[192].mxu1 }
0x1369   : > { %v6078_v35 = vadd.f32 %v5935_v60, %v5802_v46  ;;  %v7939_v2 = vpop.f32.mrb[193].mxu1  ;;  %6222 = vrot.lane.b32.xlu1 %v9494_v32, %s8200_s29  ;;  %v6089_v61 = vadd.f32 %v6077_v15, %v8451_v33 }
0x136a   : > { %v5938_v19 = vpop.f32.mrb[194].mxu1 }
0x136b   : > { %v6090_v62 = vadd.f32 %v6078_v35, %v8422_v14  ;;  %v6079_v56 = vadd.f32 %v5938_v19, %v5803_v12  ;;  %v7940_v31 = vpop.f32.mrb[195].mxu1 }
0x136c   : > { %v5979_v45 = vpop.f32.mrb[192].mxu0 }
0x136d   : > { %v9504_v4 = vadd.f32 %v6079_v56, %v8424_v17  ;;  %6242 = vrot.lane.b32.xlu0 %v6090_v62, %s8200_s29  ;;  %6224 = vrot.lane.b32.xlu1 %v6089_v61, %s8200_s29  ;;  %v6080_v50 = vadd.f32 %v5979_v45, %v5804_v3  ;;  %v7945_v63 = vpop.f32.mrb[193].mxu0 }
0x136e   : > { %v5982_v47 = vpop.f32.mrb[194].mxu0 }
0x136f   : > { %v6092_v33 = vadd.f32 %v6080_v50, %v8456_v36  ;;  %v6081_v14 = vadd.f32 %v5982_v47, %v5805_v41  ;;  %v7946_v37 = vpop.f32.mrb[195].mxu0 }
0x1370   : > { %v8162_v37 = vld [vmem:[%s9848_s3 + $0x18] sm:$0xff] }
0x1371   : > { %6244 = vrot.lane.b32.xlu1 %v9504_v4, %s8200_s29  ;;  %6246 = vrot.lane.b32.xlu0 %v6092_v33, %s8200_s29  ;;  %v9514_v17 = vadd.f32 %v6081_v14, %v8464_v42 }
0x1375   : > { %6248 = vrot.lane.b32.xlu1 %v9514_v17, %s8200_s29 }
0x138b   : > { %v6219_v9 = vpop.permute.xlu1 %6218 }
0x138c   : > { %v6230_v36 = vsel %vm1591_vm13, %v6086_v53, %v6219_v9 }
0x138d   : > { %v9525_v44 = vmul.f32 %v6230_v36, %v9521_v27  ;;  %v6221_v42 = vpop.permute.xlu0 %6220 }
0x138e   : > { %v6231_v59 = vsel %vm1591_vm13, %v6087_v51, %v6221_v42  ;;  %v6106_v51 = vsel %vm768_vm6, %v6102_v0, 0.0  ;;  %v6148_v0 = vmul.f32 %v8164_v11, %v8164_v11 }
0x138f   : > { %v6286_v38 = vmul.f32 %v9525_v44, %v9525_v44  ;;  %v9536_v5 = vmul.f32 %v6231_v59, %v9530_v23 }
0x1391   : > { %v6290_v52 = vsel %vm768_vm6, %v6286_v38, 0.0  ;;  %v6287_v53 = vmul.f32 %v9536_v5, %v9536_v5 }
0x1392   : > { %6291 = vadd.xlane.f32.xlu0 %v6290_v52 }
0x1393   : > { %v6293_v26 = vsel %vm768_vm6, %v6287_v53, 0.0 }
0x1399   : > { %6294 = vadd.xlane.f32.xlu1 %v6293_v26 }
0x139d   : > { %6107 = vadd.xlane.f32.xlu1 %v6106_v51 }
0x13a1   : > { %v6023_v13 = vpop.f32.mrb[196].mxu1  ;;  %6113 = vadd.xlane.f32.xlu1 %v6112_v55  ;;  %v8165_v55 = vld [vmem:[%s9849_s4 + $0x8] sm:$0xff] }
0x13a2   : > { %v6082_v25 = vadd.f32 %v6023_v13, %v5806_v29  ;;  %v7951_v18 = vpop.f32.mrb[197].mxu1  ;;  %v6147_v29 = vmul.f32 %v8165_v55, %v8165_v55 }
0x13a3   : > { %v6026_v57 = vpop.f32.mrb[198].mxu1  ;;  %v8166_v18 = vld [vmem:[%s9849_s4 + $0x18] sm:$0xff] }
0x13a4   : > { %v9553_v20 = vadd.f32 %v6082_v25, %v8434_v22  ;;  %v6083_v43 = vadd.f32 %v6026_v57, %v5807_v6  ;;  %v7952_v54 = vpop.f32.mrb[199].mxu1  ;;  %v9571_v22 = vld [vmem:[%s9851_s6 + $0x18] sm:$0xff]  ;;  %v6153_v25 = vsel %vm768_vm6, %v6147_v29, 0.0  ;;  %v6149_v6 = vmul.f32 %v8166_v18, %v8166_v18 }
0x13a6   : > { %v9556_v34 = vadd.f32 %v6083_v43, %v8436_v24  ;;  %v6159_v57 = vsel %vm768_vm6, %v6149_v6, 0.0  ;;  %v5808_v43 = vmul.f32 2.8366, %v9377_v48 }
0x13db   : > { %v6223_v10 = vpop.permute.xlu1 %6222 }
0x13dc   : > { %v6232_v49 = vsel %vm1591_vm13, %v9494_v32, %v6223_v10 }
0x13dd   : > { %v9566_v58 = vmul.f32 %v6232_v49, %v9561_v28 }
0x13df   : > { %v6225_v15 = vpop.permute.xlu1 %6224  ;;  %v6243_v24 = vpop.permute.xlu0 %6242  ;;  %v6288_v7 = vmul.f32 %v9566_v58, %v9566_v58 }
0x13e0   : > { %v6233_v46 = vsel %vm1591_vm13, %v6089_v61, %v6225_v15  ;;  %v6254_v60 = vsel %vm1591_vm13, %v6090_v62, %v6243_v24  ;;  %v8161_v61 = vld [vmem:[%s9848_s3 + $0x8] sm:$0xff]  ;;  %v5809_v15 = vmul.f32 2.8366, %v9380_v21 }
0x13e1   : > { %v9578_v35 = vmul.f32 %v6233_v46, %v9571_v22  ;;  %v9581_v32 = vmul.f32 %v6254_v60, %v9521_v27  ;;  %v6296_v2 = vsel %vm768_vm6, %v6288_v7, 0.0  ;;  %v6103_v62 = vmul.f32 %v8161_v61, %v8161_v61 }
0x13e2   : > { %6297 = vadd.xlane.f32.xlu0 %v6296_v2 }
0x13e3   : > { %v6245_v12 = vpop.permute.xlu1 %6244  ;;  %v6289_v19 = vmul.f32 %v9578_v35, %v9578_v35  ;;  %v6346_v56 = vmul.f32 %v9581_v32, %v9581_v32  ;;  %v6247_v31 = vpop.permute.xlu0 %6246  ;;  %v6109_v14 = vsel %vm768_vm6, %v6103_v62, 0.0 }
0x13e4   : > { %v6256_v3 = vsel %vm1591_vm13, %v6092_v33, %v6247_v31  ;;  %v6255_v63 = vsel %vm1591_vm13, %v9504_v4, %v6245_v12  ;;  %v6105_v33 = vmul.f32 %v8162_v37, %v8162_v37  ;;  %v8163_v4 = vld [vmem:[%s9849_s4] sm:$0xff] }
0x13e5   : > { %v6299_v45 = vsel %vm768_vm6, %v6289_v19, 0.0  ;;  %v6350_v50 = vsel %vm768_vm6, %v6346_v56, 0.0  ;;  %v9597_v41 = vmul.f32 %v6256_v3, %v9561_v28  ;;  %v6146_v36 = vmul.f32 %v8163_v4, %v8163_v4 }
0x13e6   : > { %6300 = vadd.xlane.f32.xlu0 %v6299_v45  ;;  %6351 = vadd.xlane.f32.xlu1 %v6350_v50  ;;  %v9609_v42 = vmul.f32 %v6255_v63, %v9530_v23  ;;  %v6115_v52 = vsel %vm768_vm6, %v6105_v33, 0.0 }
0x13e7   : > { %v6249_v47 = vpop.permute.xlu1 %6248  ;;  %v6348_v9 = vmul.f32 %v9597_v41, %v9597_v41  ;;  %v6150_v53 = vsel %vm768_vm6, %v6146_v36, 0.0 }
0x13e8   : > { %v6257_v59 = vsel %vm1591_vm13, %v9514_v17, %v6249_v47  ;;  %v6347_v51 = vmul.f32 %v9609_v42, %v9609_v42  ;;  %v6156_v17 = vsel %vm768_vm6, %v6148_v0, 0.0 }
0x13e9   : > { %v6356_v38 = vsel %vm768_vm6, %v6348_v9, 0.0  ;;  %v9620_v26 = vmul.f32 %v6257_v59, %v9571_v22 }
0x13ea   : > { %6110 = vadd.xlane.f32.xlu0 %v6109_v14  ;;  %6357 = vadd.xlane.f32.xlu1 %v6356_v38  ;;  %v6353_v30 = vsel %vm768_vm6, %v6347_v51, 0.0 }
0x13eb   : > { %v6349_v8 = vmul.f32 %v9620_v26, %v9620_v26 }
0x13ed   : > { %v6359_v13 = vsel %vm768_vm6, %v6349_v8, 0.0 }
0x13ee   : > { %6116 = vadd.xlane.f32.xlu0 %v6115_v52  ;;  %6151 = vadd.xlane.f32.xlu1 %v6150_v53 }
0x13f2   : > { %6354 = vadd.xlane.f32.xlu0 %v6353_v30  ;;  %6157 = vadd.xlane.f32.xlu1 %v6156_v17 }
0x13f6   : > { %6360 = vadd.xlane.f32.xlu0 %v6359_v13 }
0x13fa   : > { %6154 = vadd.xlane.f32.xlu0 %v6153_v25 }
0x13fe   : > { %6160 = vadd.xlane.f32.xlu0 %v6159_v57 }
0x1401   : > { %v6067_v54 = vpop.f32.mrb[196].mxu0 }
0x1402   : > { %v6084_v10 = vadd.f32 %v6067_v54, %v5808_v43  ;;  %v7957_v49 = vpop.f32.mrb[197].mxu0  ;;  %v6201_v54 = vrot.slane %v8380_v39, 4 }
0x1403   : > { %v6070_v24 = vpop.f32.mrb[198].mxu0  ;;  %6266 = vrot.lane.b32.xlu1 %v9553_v20, %s8200_s29 }
0x1404   : > { %v9642_v7 = vadd.f32 %v6084_v10, %v8495_v16  ;;  %v6085_v46 = vadd.f32 %v6070_v24, %v5809_v15  ;;  %v7958_v60 = vpop.f32.mrb[199].mxu0 }
0x1406   : > { %v9647_v2 = vadd.f32 %v6085_v46, %v8500_v40 }
0x1407   : > { %6270 = vrot.lane.b32.xlu1 %v9642_v7, %s8200_s29 }
0x140b   : > { %6272 = vrot.lane.b32.xlu1 %v9647_v2, %s8200_s29 }
0x1414   : > { %6268 = vrot.lane.b32.xlu0 %v9556_v34, %s8200_s29 }
0x141f   : > { %v6292_v48 = vpop.xlane.xlu0 %6291 }
0x1420   : > { %8087 = vrsqrt.f32 %v6292_v48  ;;  %vm6304_vm15 = vcmp.eq.f32.partialorder %v6292_v48, inf  ;;  %v6307_v61 = vand.u32 2147483648, %v6292_v48  ;;  %vm6306_vm2 = vcmp.eq.f32.partialorder %v6292_v48, 0.0 }
0x1426   : > { %v6295_v12 = vpop.xlane.xlu1 %6294 }
0x1427   : > { %8089 = vrsqrt.f32 %v6295_v12  ;;  %vm6311_vm3 = vcmp.eq.f32.partialorder %v6295_v12, inf  ;;  %v6314_v4 = vand.u32 2147483648, %v6295_v12  ;;  %vm6313_vm7 = vcmp.eq.f32.partialorder %v6295_v12, 0.0 }
0x142a   : > { %v8088_v21 = vpop.eup %8087  ;;  %v6108_v19 = vpop.xlane.xlu1 %6107 }
0x142b   : > { %v6303_v16 = vmul.f32 %v8088_v21, %v6292_v48  ;;  %8091 = vrsqrt.f32 %v6108_v19  ;;  %vm6120_vm4 = vcmp.eq.f32.partialorder %v6108_v19, inf  ;;  %v6123_v36 = vand.u32 2147483648, %v6108_v19 }
0x142c   : > { %vm6122_vm8 = vcmp.eq.f32.partialorder %v6108_v19, 0.0 }
0x142d   : > { %v6305_v56 = vsel %vm6304_vm15, %v6292_v48, %v6303_v16 }
0x142e   : > { %v6308_v40 = vsel %vm6306_vm2, %v6307_v61, %v6305_v56  ;;  %v6114_v62 = vpop.xlane.xlu1 %6113 }
0x142f   : > { %8093 = vrsqrt.f32 %v6114_v62  ;;  %v6330_v31 = vadd.f32 1e-05, %v6308_v40  ;;  %vm6134_vm9 = vcmp.eq.f32.partialorder %v6114_v62, inf  ;;  %vm6136_vm10 = vcmp.eq.f32.partialorder %v6114_v62, 0.0 }
0x1430   : > { %v6137_v55 = vand.u32 2147483648, %v6114_v62 }
0x1431   : > { %v8090_v3 = vpop.eup %8089  ;;  %8095 = vrcp.f32 %v6330_v31 }
0x1432   : > { %v6310_v63 = vmul.f32 %v8090_v3, %v6295_v12 }
0x1434   : > { %v6312_v9 = vsel %vm6311_vm3, %v6295_v12, %v6310_v63 }
0x1435   : > { %v8092_v45 = vpop.eup %8091  ;;  %v6315_v38 = vsel %vm6313_vm7, %v6314_v4, %v6312_v9 }
0x1436   : > { %v6119_v47 = vmul.f32 %v8092_v45, %v6108_v19  ;;  %v6331_v30 = vadd.f32 1e-05, %v6315_v38 }
0x1438   : > { %v6121_v59 = vsel %vm6120_vm4, %v6108_v19, %v6119_v47 }
0x1439   : > { %v8094_v33 = vpop.eup %8093  ;;  %v6124_v51 = vsel %vm6122_vm8, %v6123_v36, %v6121_v59 }
0x143a   : > { %v6133_v52 = vmul.f32 %v8094_v33, %v6114_v62 }
0x143b   : > { %v8096_v0 = vpop.eup %8095 }
0x143c   : > { %v6135_v8 = vsel %vm6134_vm9, %v6114_v62, %v6133_v52  ;;  %v6338_v6 = vmul.f32 %v8096_v0, %v6124_v51 }
0x143d   : > { %v9666_v15 = vsel %vm6136_vm10, %v6137_v55, %v6135_v8 }
0x143e   : > { %v9675_v12 = vmul.f32 %v6338_v6, %v9525_v44 }
0x146f   : > { %v6298_v50 = vpop.xlane.xlu0 %6297 }
0x1470   : > { %8097 = vrsqrt.f32 %v6298_v50  ;;  %vm6318_vm11 = vcmp.eq.f32.partialorder %v6298_v50, inf  ;;  %v6321_v25 = vand.u32 2147483648, %v6298_v50  ;;  %vm6320_vm12 = vcmp.eq.f32.partialorder %v6298_v50, 0.0 }
0x1473   : > { %v6352_v14 = vpop.xlane.xlu1 %6351  ;;  %v6301_v37 = vpop.xlane.xlu0 %6300 }
0x1474   : > { %8099 = vrsqrt.f32 %v6352_v14  ;;  %vm6364_vm14 = vcmp.eq.f32.partialorder %v6352_v14, inf  ;;  %v6367_v19 = vand.u32 2147483648, %v6352_v14  ;;  %vm6325_vm15 = vcmp.eq.f32.partialorder %v6301_v37, inf }
0x1475   : > { %8101 = vrsqrt.f32 %v6301_v37  ;;  %v6328_v56 = vand.u32 2147483648, %v6301_v37  ;;  %vm6366_vm2 = vcmp.eq.f32.partialorder %v6352_v14, 0.0  ;;  %vm6327_vm3 = vcmp.eq.f32.partialorder %v6301_v37, 0.0 }
0x1477   : > { %v9653_v53 = vpop.xlane.xlu0 %6110  ;;  %v9655_v11 = vpop.xlane.xlu1 %6357 }
0x1478   : > { %8103 = vrsqrt.f32 %v9653_v53  ;;  %vm6127_vm4 = vcmp.eq.f32.partialorder %v9653_v53, inf  ;;  %vm6129_vm7 = vcmp.eq.f32.partialorder %v9653_v53, 0.0  ;;  %vm6378_vm8 = vcmp.eq.f32.partialorder %v9655_v11, inf }
0x1479   : > { %8105 = vrsqrt.f32 %v9655_v11  ;;  %vm6380_vm9 = vcmp.eq.f32.partialorder %v9655_v11, 0.0  ;;  %v6381_v36 = vand.u32 2147483648, %v9655_v11 }
0x147a   : > { %v8098_v17 = vpop.eup %8097 }
0x147b   : > { %v6317_v29 = vmul.f32 %v8098_v17, %v6298_v50  ;;  %v9659_v13 = vpop.xlane.xlu0 %6116  ;;  %v9661_v18 = vpop.xlane.xlu1 %6151 }
0x147c   : > { %8107 = vrsqrt.f32 %v9659_v13  ;;  %vm6141_vm10 = vcmp.eq.f32.partialorder %v9659_v13, inf  ;;  %v6167_v8 = vand.u32 2147483648, %v9661_v18  ;;  %v6144_v55 = vand.u32 2147483648, %v9659_v13 }
0x147d   : > { %v6319_v57 = vsel %vm6318_vm11, %v6298_v50, %v6317_v29  ;;  %8109 = vrcp.f32 %v6331_v30  ;;  %vm6143_vm11 = vcmp.eq.f32.partialorder %v9659_v13, 0.0 }
0x147e   : > { %v8100_v43 = vpop.eup %8099  ;;  %v6322_v10 = vsel %vm6320_vm12, %v6321_v25, %v6319_v57  ;;  %8111 = vrsqrt.f32 %v9661_v18  ;;  %vm6164_vm12 = vcmp.eq.f32.partialorder %v9661_v18, inf }
0x147f   : > { %v8102_v49 = vpop.eup %8101  ;;  %v6332_v24 = vadd.f32 1e-05, %v6322_v10  ;;  %v6363_v46 = vmul.f32 %v8100_v43, %v6352_v14  ;;  %v9669_v60 = vpop.xlane.xlu0 %6354 }
0x1480   : > { %v6324_v48 = vmul.f32 %v8102_v49, %v6301_v37  ;;  %v9671_v21 = vpop.xlane.xlu1 %6157  ;;  %8113 = vrsqrt.f32 %v9669_v60  ;;  %v6374_v29 = vand.u32 2147483648, %v9669_v60 }
0x1481   : > { %v6365_v16 = vsel %vm6364_vm14, %v6352_v14, %v6363_v46  ;;  %8115 = vrcp.f32 %v6332_v24  ;;  %vm6371_vm14 = vcmp.eq.f32.partialorder %v9669_v60, inf }
0x1482   : > { %v8104_v61 = vpop.eup %8103  ;;  %v6326_v40 = vsel %vm6325_vm15, %v6301_v37, %v6324_v48  ;;  %v6368_v31 = vsel %vm6366_vm2, %v6367_v19, %v6365_v16  ;;  %v6130_v37 = vand.u32 2147483648, %v9653_v53  ;;  %vm6373_vm15 = vcmp.eq.f32.partialorder %v9669_v60, 0.0 }
0x1483   : > { %v8106_v62 = vpop.eup %8105  ;;  %v6329_v3 = vsel %vm6327_vm3, %v6328_v56, %v6326_v40  ;;  %v6126_v45 = vmul.f32 %v8104_v61, %v9653_v53  ;;  %v9679_v50 = vpop.xlane.xlu0 %6360  ;;  %v6390_v9 = vadd.f32 1e-05, %v6368_v31  ;;  %vm6166_vm2 = vcmp.eq.f32.partialorder %v9661_v18, 0.0 }
0x1484   : > { %v6333_v44 = vadd.f32 1e-05, %v6329_v3  ;;  %v6377_v63 = vmul.f32 %v8106_v62, %v9655_v11  ;;  %v6267_v47 = vpop.permute.xlu1 %6266  ;;  %8117 = vrsqrt.f32 %v9679_v50  ;;  %vm6385_vm3 = vcmp.eq.f32.partialorder %v9679_v50, inf }
0x1485   : > { %v6128_v14 = vsel %vm6127_vm4, %v9653_v53, %v6126_v45  ;;  %v6278_v59 = vsel %vm1591_vm13, %v9553_v20, %v6267_v47  ;;  %vm6387_vm4 = vcmp.eq.f32.partialorder %v9679_v50, 0.0  ;;  %v6388_v48 = vand.u32 2147483648, %v9679_v50 }
0x1486   : > { %v8108_v33 = vpop.eup %8107  ;;  %8119 = vrcp.f32 %v6333_v44  ;;  %v6379_v4 = vsel %vm6378_vm8, %v9655_v11, %v6377_v63  ;;  %v6131_v11 = vsel %vm6129_vm7, %v6130_v37, %v6128_v14  ;;  %v9708_v25 = vmul.f32 %v6278_v59, %v9521_v27 }
0x1487   : > { %8121 = vrsqrt.f32 %v9671_v21  ;;  %v9695_v38 = vpop.xlane.xlu0 %6154  ;;  %v8110_v52 = vpop.eup %8109  ;;  %v6382_v0 = vsel %vm6380_vm9, %v6381_v36, %v6379_v4  ;;  %v6140_v51 = vmul.f32 %v8108_v33, %v9659_v13  ;;  %vm6178_vm7 = vcmp.eq.f32.partialorder %v9671_v21, inf }
0x1488   : > { %v6271_v17 = vpop.permute.xlu1 %6270  ;;  %8123 = vrsqrt.f32 %v9695_v38  ;;  %v8112_v30 = vpop.eup %8111  ;;  %v6392_v53 = vadd.f32 1e-05, %v6382_v0  ;;  %v6339_v10 = vmul.f32 %v8110_v52, %v6131_v11  ;;  %v6406_v61 = vmul.f32 %v9708_v25, %v9708_v25 }
0x1489   : > { %8125 = vrcp.f32 %v6390_v9  ;;  %v6280_v57 = vsel %vm1591_vm13, %v9642_v7, %v6271_v17  ;;  %v6142_v49 = vsel %vm6141_vm10, %v9659_v13, %v6140_v51  ;;  %v6163_v46 = vmul.f32 %v8112_v30, %v9661_v18 }
0x148a   : > { %v8114_v20 = vpop.eup %8113  ;;  %v9735_v40 = vmul.f32 %v6280_v57, %v9561_v28  ;;  %v6343_v62 = vmul.f32 %v6339_v10, %v9536_v5  ;;  %v6145_v31 = vsel %vm6143_vm11, %v6144_v55, %v6142_v49  ;;  %v6410_v52 = vsel %vm768_vm6, %v6406_v61, 0.0 }
0x148b   : > { %v6370_v6 = vmul.f32 %v8114_v20, %v9669_v60  ;;  %v9713_v43 = vpop.xlane.xlu0 %6160  ;;  %v8116_v24 = vpop.eup %8115  ;;  %v6174_v51 = vand.u32 2147483648, %v9695_v38  ;;  %vm6173_vm8 = vcmp.eq.f32.partialorder %v9695_v38, 0.0  ;;  %vm6180_vm10 = vcmp.eq.f32.partialorder %v9671_v21, 0.0 }
0x148c   : > { %v6273_v27 = vpop.permute.xlu1 %6272  ;;  %8127 = vrsqrt.f32 %v9713_v43  ;;  %v6437_v63 = vpack.c.bf16 %v6343_v62, %v9675_v12  ;;  %v6340_v47 = vmul.f32 %v8116_v24, %v9666_v15  ;;  %vm6185_vm9 = vcmp.eq.f32.partialorder %v9713_v43, inf }
0x148d   : > { %v6372_v7 = vsel %vm6371_vm14, %v9669_v60, %v6370_v6  ;;  %v6281_v16 = vsel %vm1591_vm13, %v9647_v2, %v6273_v27  ;;  %8129 = vrcp.f32 %v6392_v53  ;;  %v6202_v10 = vadd.f32 %v6201_v54, %v8380_v39 }
0x148e   : > { %v8118_v19 = vpop.eup %8117  ;;  %v6375_v56 = vsel %vm6373_vm15, %v6374_v29, %v6372_v7  ;;  %v9742_v60 = vmul.f32 %v6281_v16, %v9571_v22  ;;  %v6181_v22 = vand.u32 2147483648, %v9671_v21  ;;  %7961 = vmatprep.mubr.msk.bf16.mxu1 %vm768_vm6, %v6437_v63  ;;  %v6344_v0 = vmul.f32 %v6340_v47, %v9566_v58 }
0x148f   : > { %v6391_v3 = vadd.f32 1e-05, %v6375_v56  ;;  %v6384_v45 = vmul.f32 %v8118_v19, %v9679_v50  ;;  %v6269_v2 = vpop.permute.xlu0 %6268  ;;  %v6188_v27 = vand.u32 2147483648, %v9713_v43  ;;  %vm6187_vm11 = vcmp.eq.f32.partialorder %v9713_v43, 0.0 }
0x1490   : > { %v8120_v44 = vpop.eup %8119  ;;  %v6279_v28 = vsel %vm1591_vm13, %v9556_v34, %v6269_v2  ;;  %v6408_v34 = vmul.f32 %v9735_v40, %v9735_v40  ;;  %vm6171_vm13 = vcmp.eq.f32.partialorder %v9695_v38, inf  ;;  %v6409_v17 = vmul.f32 %v9742_v60, %v9742_v60 }
0x1491   : > { %v8122_v5 = vpop.eup %8121  ;;  %v6341_v14 = vmul.f32 %v8120_v44, %v6145_v31  ;;  %8131 = vrcp.f32 %v6391_v3  ;;  %v6386_v13 = vsel %vm6385_vm3, %v9679_v50, %v6384_v45  ;;  %v9752_v37 = vmul.f32 %v6279_v28, %v9530_v23 }
0x1492   : > { %v8124_v33 = vpop.eup %8123  ;;  %v6389_v12 = vsel %vm6387_vm4, %v6388_v48, %v6386_v13  ;;  %v6165_v50 = vsel %vm6164_vm12, %v9661_v18, %v6163_v46  ;;  %v6177_v59 = vmul.f32 %v8122_v5, %v9671_v21  ;;  %v6413_v29 = vsel %vm768_vm6, %v6408_v34, 0.0 }
0x1493   : > { %v6393_v15 = vadd.f32 1e-05, %v6389_v12  ;;  %v6170_v9 = vmul.f32 %v8124_v33, %v9695_v38  ;;  %v6407_v23 = vmul.f32 %v9752_v37, %v9752_v37  ;;  %v6345_v4 = vmul.f32 %v6341_v14, %v9578_v35  ;;  %v8126_v36 = vpop.eup %8125 }
0x1494   : > { %v6168_v53 = vsel %vm6166_vm2, %v6167_v8, %v6165_v50  ;;  %v6179_v6 = vsel %vm6178_vm7, %v9671_v21, %v6177_v59  ;;  %v6415_v49 = vsel %vm768_vm6, %v6409_v17, 0.0  ;;  %v6203_v19 = vrot.slane %v6202_v10, 2 }
0x1495   : > { %8133 = vrcp.f32 %v6393_v15  ;;  %v6411_v11 = vsel %vm768_vm6, %v6407_v23, 0.0  ;;  %v6172_v30 = vsel %vm6171_vm13, %v9695_v38, %v6170_v9  ;;  %v6438_v20 = vpack.c.bf16 %v6345_v4, %v6344_v0 }
0x1496   : > { %v8128_v35 = vpop.eup %8127  ;;  %v6412_v55 = vadd.f32 %v6411_v11, %v6410_v52  ;;  %v6175_v18 = vsel %vm6173_vm8, %v6174_v51, %v6172_v30  ;;  %v6398_v24 = vmul.f32 %v8126_v36, %v6168_v53  ;;  %v6182_v7 = vsel %vm6180_vm10, %v6181_v22, %v6179_v6 }
0x1497   : > { %v6184_v58 = vmul.f32 %v8128_v35, %v9713_v43  ;;  %7962 = vmatmul.mubr.msk.bf16.vlgmr.msra.gmra.mrb[200].mxu1 %vm768_vm6, %v6438_v20  ;;  %v8130_v57 = vpop.eup %8129  ;;  %v6204_v44 = vadd.f32 %v6203_v19, %v6202_v10 }
0x1498   : > { %v6414_v38 = vadd.f32 %v6413_v29, %v6412_v55  ;;  %7975 = vmatprep.mubr.msk.bf16.mxu1 %vm8193_vm1, %v8192_v1  ;;  %v6400_v54 = vmul.f32 %v8130_v57, %v6182_v7  ;;  %v6402_v61 = vmul.f32 %v6398_v24, %v9581_v32  ;;  %v9809_v32 = vld [vmem:[%s9852_s7] sm:$0x3] }
0x1499   : > { %v6186_v8 = vsel %vm6185_vm9, %v9713_v43, %v6184_v58  ;;  %v6205_v14 = vrot.slane %v6204_v44, 1 }
0x149a   : > { %v6416_v21 = vadd.f32 %v6415_v49, %v6414_v38  ;;  %v6189_v39 = vsel %vm6187_vm11, %v6188_v27, %v6186_v8  ;;  %v6404_v63 = vmul.f32 %v6400_v54, %v9597_v41 }
0x149b   : > { %v8132_v46 = vpop.eup %8131  ;;  %v6206_v41 = vadd.f32 %v6205_v14, %v6204_v44 }
0x149c   : > { %v6417_v48 = vrot.slane %v6416_v21, 4  ;;  %v6399_v16 = vmul.f32 %v8132_v46, %v6175_v18 }
0x149d   : > { %vm6209_vm15 = vcmp.eq.f32.partialorder %v6206_v41, inf  ;;  %v6212_v23 = vand.u32 2147483648, %v6206_v41  ;;  %vm6211_vm2 = vcmp.eq.f32.partialorder %v6206_v41, 0.0 }
0x149e   : > { %v6418_v56 = vadd.f32 %v6417_v48, %v6416_v21  ;;  %v6403_v62 = vmul.f32 %v6399_v16, %v9609_v42 }
0x149f   : > { %v8134_v31 = vpop.eup %8133 }
0x14a0   : > { %v6401_v3 = vmul.f32 %v8134_v31, %v6189_v39  ;;  %v6419_v45 = vrot.slane %v6418_v56, 2  ;;  %v6497_v2 = vpack.c.bf16 %v6403_v62, %v6402_v61 }
0x14a2   : > { %v6420_v43 = vadd.f32 %v6419_v45, %v6418_v56  ;;  %7967 = vmatprep.mubr.msk.bf16.mxu0 %vm768_vm6, %v6497_v2  ;;  %v6405_v28 = vmul.f32 %v6401_v3, %v9620_v26 }
0x14a4   : > { %v6421_v47 = vrot.slane %v6420_v43, 1  ;;  %v6498_v5 = vpack.c.bf16 %v6405_v28, %v6404_v63 }
0x14a6   : > { %v6422_v13 = vadd.f32 %v6421_v47, %v6420_v43  ;;  %7968 = vmatmul.mubr.msk.bf16.vlgmr.msra.gmra.mrb[200].mxu0 %vm768_vm6, %v6498_v5 }
0x14a7   : > { %7980 = vmatpush3.xpose.msk.msra.mxu0 %vm768_vm6, %v9809_v32  ;;  %7981 = vmatprep.mubr.msk.f32.mxu0 %vm8193_vm1, %v8192_v1 }
0x14a8   : > { %8135 = vrsqrt.f32 %v6422_v13  ;;  %7984 = vmatprep.subr.mxu0 %v8192_v1  ;;  %vm6425_vm12 = vcmp.eq.f32.partialorder %v6422_v13, inf  ;;  %v6428_v33 = vand.u32 2147483648, %v6422_v13  ;;  %vm6427_vm14 = vcmp.eq.f32.partialorder %v6422_v13, 0.0 }
0x14a9   : > { %8137 = vrsqrt.f32 %v6206_v41 }
0x14b2   : > { %v8136_v42 = vpop.eup %8135 }
0x14b3   : > { %v6424_v26 = vmul.f32 %v8136_v42, %v6422_v13  ;;  %v8138_v34 = vpop.eup %8137 }
0x14b4   : > { %v6208_v9 = vmul.f32 %v8138_v34, %v6206_v41 }
0x14b5   : > { %v6426_v22 = vsel %vm6425_vm12, %v6422_v13, %v6424_v26 }
0x14b6   : > { %v6429_v12 = vsel %vm6427_vm14, %v6428_v33, %v6426_v22  ;;  %v6210_v4 = vsel %vm6209_vm15, %v6206_v41, %v6208_v9  ;;  %v7120_v22 = vld [vmem:[%s9853_s8] ss:$0 sm:$0xff] }
0x14b7   : > { %v6430_v15 = vadd.f32 1e-05, %v6429_v12  ;;  %v6213_v36 = vsel %vm6211_vm2, %v6212_v23, %v6210_v4 }
0x14b9   : > { %8139 = vrcp.f32 %v6430_v15 }
0x14c3   : > { %v8140_v50 = vpop.eup %8139 }
0x14c4   : > { %v6432_v59 = vmul.f32 %v8140_v50, %v6213_v36 }
0x14c6   : > { %v6433_v52 = vmul.f32 %v6432_v59, %v9708_v25  ;;  %v6434_v0 = vmul.f32 %v6432_v59, %v9752_v37  ;;  %v6435_v17 = vmul.f32 %v6432_v59, %v9735_v40  ;;  %v6436_v11 = vmul.f32 %v6432_v59, %v9742_v60 }
0x14c8   : > { %v6588_v51 = vpack.c.bf16 %v6434_v0, %v6433_v52  ;;  %v6589_v35 = vpack.c.bf16 %v6436_v11, %v6435_v17 }
0x14ca   : > { %7972 = vmatpush3.bf16.msra.mxu1 %v6588_v51 }
0x14cb   : > { %7973 = vmatprep.subr.bf16.mxu1 %v8192_v1 }
0x14ce   : > { %7974 = vmatpush3.bf16.msra.mxu1 %v6589_v35 }
0x156a   : > { %v7963_v30 = vpop.f32.mrb[200].mxu1 }
0x156b   : > { %v7113_v55 = vmul.f32 -1.442695, %v7963_v30  ;;  %v6482_v20 = vpop.f32.mrb[201].mxu1 }
0x156c   : > { %v7111_v29 = vmul.f32 -1.442695, %v6482_v20  ;;  %v7964_v58 = vpop.f32.mrb[202].mxu1 }
0x156d   : > { %8141 = vpow2.f32 %v7113_v55  ;;  %v7114_v53 = vmul.f32 -1.442695, %v7964_v58  ;;  %v6485_v25 = vpop.f32.mrb[203].mxu1 }
0x156e   : > { %8143 = vpow2.f32 %v7111_v29  ;;  %v7112_v37 = vmul.f32 -1.442695, %v6485_v25 }
0x156f   : > { %8145 = vpow2.f32 %v7114_v53 }
0x1570   : > { %8147 = vpow2.f32 %v7112_v37 }
0x1577   : > { %v8142_v40 = vpop.eup %8141 }
0x1578   : > { %v8144_v6 = vpop.eup %8143  ;;  %v6568_v60 = vadd.f32 1.0, %v8142_v40 }
0x1579   : > { %v7969_v38 = vpop.f32.mrb[200].mxu0  ;;  %v8146_v57 = vpop.eup %8145  ;;  %v6566_v10 = vadd.f32 1.0, %v8144_v6 }
0x157a   : > { %v6539_v49 = vpop.f32.mrb[201].mxu0  ;;  %v8148_v27 = vpop.eup %8147  ;;  %8149 = vrcp.f32 %v6568_v60  ;;  %v6569_v18 = vadd.f32 1.0, %v8146_v57 }
0x157b   : > { %v7970_v8 = vpop.f32.mrb[202].mxu0  ;;  %8151 = vrcp.f32 %v6566_v10  ;;  %v6567_v21 = vadd.f32 1.0, %v8148_v27 }
0x157c   : > { %v6542_v24 = vpop.f32.mrb[203].mxu0  ;;  %8153 = vrcp.f32 %v6569_v18 }
0x157d   : > { %8155 = vrcp.f32 %v6567_v21 }
0x1584   : > { %v8150_v46 = vpop.eup %8149 }
0x1585   : > { %v8152_v7 = vpop.eup %8151  ;;  %v6580_v48 = vmul.f32 %v8150_v46, %v7963_v30 }
0x1586   : > { %v8154_v16 = vpop.eup %8153  ;;  %v6578_v19 = vmul.f32 %v8152_v7, %v6482_v20 }
0x1587   : > { %v8156_v39 = vpop.eup %8155  ;;  %v6581_v54 = vmul.f32 %v8154_v16, %v7964_v58  ;;  %v6584_v56 = vmul.f32 %v7969_v38, %v6580_v48 }
0x1588   : > { %v6579_v61 = vmul.f32 %v8156_v39, %v6485_v25  ;;  %v6582_v62 = vmul.f32 %v6578_v19, %v6539_v49 }
0x1589   : > { %v6585_v31 = vmul.f32 %v7970_v8, %v6581_v54 }
0x158a   : > { %v6583_v3 = vmul.f32 %v6579_v61, %v6542_v24 }
0x158b   : > { %v6587_v45 = vpack.c.bf16 %v6585_v31, %v6584_v56 }
0x158c   : > { %v6586_v2 = vpack.c.bf16 %v6583_v3, %v6582_v62 }
0x158e   : > { %6590 = vxpose.xlu0.c.b16.start [1/2] (short) (narrow) %v6586_v2, 16 }
0x1592   : > { %6591 = vxpose.xlu0.c.b16.end [2/2] (short) (narrow) %v6587_v45, 16 }
0x15f4   : > { %v6598_v44 = vpop.trf.xlu0 }
0x15f5   : > { %7976 = vmatmul.mubr.msk.bf16.vlgmr.msra.gmra.mrb[204].mxu1 %vm768_vm6, %v6598_v44 }
0x16c8   : > { %v6643_v43 = vpop.f32.mrb[204].mxu1 }
0x16c9   : > { %v6649_v63 = vmul.f32 %v6643_v43, %v6643_v43  ;;  %v7977_v28 = vpop.f32.mrb[205].mxu1 }
0x16ca   : > { %v6646_v47 = vpop.f32.mrb[206].mxu1 }
0x16cb   : > { %7982 = vmatmul.mubr.msk.f32.vlgmr.msra.gmra.mrb[204].mxu0 %vm768_vm6, %v6649_v63  ;;  %v7978_v5 = vpop.f32.mrb[207].mxu1 }
0x16cc   : > { %7985 = vmatpush3.msk.msra.mxu0 %vm545_vm0, %v9809_v32  ;;  %7986 = vmatprep.mubr.msk.f32.mxu0 %vm8193_vm1, %v8192_v1  ;;  %vm6809_vm0 = vcmask 257024  }
0x179e   : > { %v6719_v14 = vpop.f32.mrb[204].mxu0 }
0x179f   : > { %v6723_v13 = vmul.f32 0.0625, %v6719_v14  ;;  %v7983_v41 = vpop.f32.mrb[205].mxu0 }
0x17a1   : > { %v6724_v42 = vadd.f32 1e-05, %v6723_v13 }
0x17a3   : > { %8157 = vrsqrt.f32 %v6724_v42 }
0x17ad   : > { %v8158_v26 = vpop.eup %8157 }
0x17ae   : > { %7987 = vmatmul.mubr.msk.f32.vlgmr.msra.gmra.mrb[206].mxu0 %vm541_vm5, %v8158_v26 }
0x1881   : > { %v6795_v33 = vpop.f32.mrb[206].mxu0 }
0x1882   : > { %v6799_v12 = vmul.f32 %v6795_v33, %v6643_v43  ;;  %v7988_v34 = vpop.f32.mrb[207].mxu0 }
0x1884   : > { %v6807_v15 = vmul.f32 %v7120_v22, %v6799_v12 }
0x1886   : > { %v6808_v1 = vpack.c.bf16 %v6807_v15, %v6807_v15 }
0x1888   : > { %6810 = vst.msk [vmem:[%s477_s26] sm:$0xf] %vm6809_vm0, %v6808_v1 }
0x1889 PF: > { %s19_s11 = sadd.s32 1, %s8190_s11   ;;  %s9855_s30 = smov %s8186_s10 }
0x188a   : > { %p16_p5 = scmp.ge.s32.totalorder %s19_s11, 4   ;;  %s9856_s10 = smov %s9858_s12 }
0x188c   :  { %18 = sbr.rel (!%p16_p5) target bundleno = 2 (0x2), region = 104 }

</bundles_post_ra>
